<compile_context>
chip_gen: v7x
topology: tpu7x:2x2x1
jax: 0.10.0
libtpu: 0.0.40
codegen_flags: <defaults>
</compile_context>

<pallas_src>
import numpy as np
import jax
import jax.numpy as jnp
from jax import lax
from jax.experimental import pallas as pl
from jax.experimental.pallas import tpu as pltpu


# ---------------------------------------------------------------------------
# Fused gated_resnet kernel builder (conv_input + nin skip + gated conv_out)
# ---------------------------------------------------------------------------

def _make_fused_gated_resnet(N, H, W, kh, kw, C, n_skip):
    """One pallas_call per gated_resnet block (per stream).

    Stream state, skip inputs and outputs all live in a persistent zero-padded
    channels-last slab (N, Hp*Wp, C), Hp=H+2 (1 top pad + 1 bottom slack row),
    Wp=W+2 (1 left + 1 right pad), shared by both streams.  The conv output at
    flat "accumulator frame" row r = h*Wp + w is valid for w < W; it maps back
    into the padded slab frame with a constant flat shift S = Wp + 1.
    """
    Wp, Hp = W + 2, H + 2
    HPW, HWv = Hp * Wp, H * Wp
    S = Wp + 1                       # flat shift: acc frame -> padded slab frame
    T = kh * kw
    K = T * 2 * C
    offsets = [dh * Wp + dw for dh in range(kh) for dw in range(kw)]

    def concat_elu_bf16(v):
        # concat_elu with ONE transcendental per element; single bf16 cast.
        em1 = jnp.exp(-jnp.abs(v)) - 1.0
        pos = v > 0
        return jnp.concatenate(
            [jnp.where(pos, v, em1), jnp.where(pos, em1, -v)],
            axis=-1).astype(jnp.bfloat16)

    def im2col(ee):
        # T statically shifted views of the padded slab, lane-concatenated ->
        # one big-K MXU matmul instead of T small dots + VPU accumulator adds.
        return jnp.concatenate([ee[off:off + HWv, :] for off in offsets], axis=-1)

    def kernel(*refs):
        x_ref = refs[0]
        rest = refs[1:]
        a_refs = rest[:n_skip]
        mask_ref, w_ci_ref = rest[n_skip:n_skip + 2]
        wn_refs = rest[n_skip + 2:2 * n_skip + 2]
        b_in_ref, wa_ref, wb_ref, ba_ref, bb_ref, o_ref = rest[2 * n_skip + 2:]

        x = x_ref[0]                                   # (HPW, C) f32, zero pads
        mask = mask_ref[...]                           # (HWv, 1) f32 {0, 1}

        # conv_input(concat_elu(og)): single im2col matmul, f32 MXU accumulation.
        h = jnp.dot(im2col(concat_elu_bf16(x)), w_ci_ref[...],
                    preferred_element_type=jnp.float32)           # (HWv, C)

        # fused nin skip(s); skip slabs share the padded frame, so one shifted
        # slice aligns each with the accumulator frame (no wrapper concat).
        for a_ref, wn_ref in zip(a_refs, wn_refs):
            a = a_ref[0, S:S + HWv, :]                            # (HWv, C)
            h = h + jnp.dot(concat_elu_bf16(a), wn_ref[...],
                            preferred_element_type=jnp.float32)

        h = (h + b_in_ref[...]) * mask                 # zero the garbage columns
        # TODO(synk): nn.Dropout2d(0.5) is modeled in eval mode (identity).

        # re-pad h in VMEM (it never leaves the kernel), gated conv_out.
        zt = jnp.zeros((S, C), jnp.float32)
        zb = jnp.zeros((HPW - S - HWv, C), jnp.float32)
        cols2 = im2col(concat_elu_bf16(jnp.concatenate([zt, h, zb], axis=0)))
        va = jnp.dot(cols2, wa_ref[...], preferred_element_type=jnp.float32) + ba_ref[...]
        vb = jnp.dot(cols2, wb_ref[...], preferred_element_type=jnp.float32) + bb_ref[...]

        out = (x[S:S + HWv, :] + va * jax.nn.sigmoid(vb)) * mask
        # single aligned, lane-dense full-block store in the persistent layout.
        o_ref[0] = jnp.concatenate([zt, out, zb], axis=0)

    def img_spec():
        return pl.BlockSpec((1, HPW, C), lambda n: (n, 0, 0))

    def const_spec(shape):
        # grid-invariant weight/bias/mask blocks (fetched once).
        return pl.BlockSpec(shape, lambda n: (0,) * len(shape))

    in_specs = (
        [img_spec()]
        + [img_spec() for _ in range(n_skip)]
        + [const_spec((HWv, 1)), const_spec((K, C))]
        + [const_spec((2 * C, C)) for _ in range(n_skip)]
        + [const_spec((1, C)), const_spec((K, C)), const_spec((K, C)),
           const_spec((1, C)), const_spec((1, C))]
    )

    call = pl.pallas_call(
        kernel,
        out_shape=jax.ShapeDtypeStruct((N, HPW, C), jnp.float32),
        grid=(N,),
        in_specs=in_specs,
        out_specs=pl.BlockSpec((1, HPW, C), lambda n: (n, 0, 0)),
        # TODO(synk): add an H-row "parallel" grid axis (1-row halo) for large
        # images (v7x: 64 MiB VMEM, 2 TensorCores).
        compiler_params=pltpu.CompilerParams(
            dimension_semantics=("parallel",),
            vmem_limit_bytes=32 * 1024 * 1024),
    )

    def run(x_slab, a_slabs, mask, p):
        return call(x_slab, *a_slabs, mask, p['w_ci'], *p['wns'],
                    p['b_in'], p['wa'], p['wb'], p['ba'], p['bb'])

    return run


# ---------------------------------------------------------------------------
# Parameters (synthetic; weight_norm absorbed into effective weights)
# ---------------------------------------------------------------------------

def init_params(key, nr_resnet, F):
    scale = 0.05
    params = []
    for i in range(nr_resnet):
        ks = jax.random.split(jax.random.fold_in(key, i), 12)
        params.append({
            'u': {    # gated_resnet(down_shifted_conv2d (2,3), skip=1)
                'w_ci': scale * jax.random.normal(ks[0], (F, 2 * F, 2, 3), jnp.float32),
                'b_ci': scale * jax.random.normal(ks[1], (F,), jnp.float32),
                'w_nin': scale * jax.random.normal(ks[2], (F, 2 * F), jnp.float32),
                'b_nin': scale * jax.random.normal(ks[3], (F,), jnp.float32),
                'w_co': scale * jax.random.normal(ks[4], (2 * F, 2 * F, 2, 3), jnp.float32),
                'b_co': scale * jax.random.normal(ks[5], (2 * F,), jnp.float32),
            },
            'ul': {   # gated_resnet(down_right_shifted_conv2d (2,2), skip=2)
                'w_ci': scale * jax.random.normal(ks[6], (F, 2 * F, 2, 2), jnp.float32),
                'b_ci': scale * jax.random.normal(ks[7], (F,), jnp.float32),
                'w_nin': scale * jax.random.normal(ks[8], (F, 4 * F), jnp.float32),
                'b_nin': scale * jax.random.normal(ks[9], (F,), jnp.float32),
                'w_co': scale * jax.random.normal(ks[10], (2 * F, 2 * F, 2, 2), jnp.float32),
                'b_co': scale * jax.random.normal(ks[11], (2 * F,), jnp.float32),
            },
        })
    return params


def _prep_conv_w_im2col(w_oihw, dtype):
    co, ci, kh, kw = w_oihw.shape
    # (out, in, kh, kw) -> (kh, kw, in, out) -> (kh*kw*in, out)
    # row index = (dh*kw + dw)*in + c_in, matching the in-kernel im2col layout.
    return jnp.transpose(w_oihw, (2, 3, 1, 0)).reshape(kh * kw * ci, co).astype(dtype)


def _prep_block(p, F, n_skip, dtype):
    w_co = _prep_conv_w_im2col(p['w_co'], jnp.float32)        # (K, 2F)
    wnT = jnp.transpose(p['w_nin'])                           # (2*n_skip*F, F)
    if n_skip == 1:
        wns = (wnT.astype(dtype),)
    else:
        # nin over cat(u, skip): concat_elu channel order is
        # [elu(u), elu(skip), elu(-u), elu(-skip)] -> regroup per input so the
        # wrapper never materializes the channel concat.
        wns = (jnp.concatenate([wnT[0:F], wnT[2 * F:3 * F]], axis=0).astype(dtype),
               jnp.concatenate([wnT[F:2 * F], wnT[3 * F:4 * F]], axis=0).astype(dtype))
    return {
        'w_ci': _prep_conv_w_im2col(p['w_ci'], dtype),        # (K, F)
        'wns': wns,                                           # n_skip x (2F, F)
        'b_in': (p['b_ci'] + p['b_nin']).reshape(1, F),       # conv + nin bias merged
        'wa': w_co[:, :F].astype(dtype),                      # gate 'a' output half
        'wb': w_co[:, F:].astype(dtype),                      # gate 'b' output half
        'ba': p['b_co'][:F].reshape(1, F),
        'bb': p['b_co'][F:].reshape(1, F),
    }


# ---------------------------------------------------------------------------
# Model
# ---------------------------------------------------------------------------

class PixelCNNLayerDownPallas:
    def __init__(self, nr_resnet, nr_filters, N, H, W, key,
                 matmul_dtype=jnp.bfloat16):
        self.nr_resnet = nr_resnet
        self.F = F = nr_filters
        self.N, self.H, self.W = N, H, W
        self.Hp, self.Wp = H + 2, W + 2
        self.params = init_params(key, nr_resnet, F)
        # one-time layout prep (im2col weights, bf16 operands, split gate halves)
        self.prepped = [{'u': _prep_block(p['u'], F, 1, matmul_dtype),
                         'ul': _prep_block(p['ul'], F, 2, matmul_dtype)}
                        for p in self.params]
        # precomputed {0,1} mask over the accumulator frame (valid cols w < W)
        col = np.arange(H * self.Wp) % self.Wp
        self.mask = jnp.asarray((col < W).astype(np.float32).reshape(H * self.Wp, 1))
        # u stream: down_shifted_conv2d (2,3); ul: down_right_shifted_conv2d (2,2)
        self.u_block = _make_fused_gated_resnet(N, H, W, 2, 3, F, n_skip=1)
        self.ul_block = _make_fused_gated_resnet(N, H, W, 2, 2, F, n_skip=2)
        self._jit_forward = jax.jit(self._forward)

    def _forward(self, prepped, mask, u_nchw, ul_nchw, u_skips, ul_skips):
        N, H, W, F = self.N, self.H, self.W, self.F

        def to_slab(t):  # NCHW -> persistent zero-padded channels-last slab
            x = jnp.transpose(t, (0, 2, 3, 1))
            x = jnp.pad(x, ((0, 0), (1, 1), (1, 1), (0, 0)))
            return x.reshape(N, (H + 2) * (W + 2), F)

        u, ul = to_slab(u_nchw), to_slab(ul_nchw)
        u_sk = [to_slab(t) for t in u_skips]
        ul_sk = [to_slab(t) for t in ul_skips]

        for i in range(self.nr_resnet):
            # u stream: gated_resnet(down_shifted_conv2d, skip=1), a = u_list.pop()
            u = self.u_block(u, (u_sk.pop(),), mask, prepped[i]['u'])
            # ul stream: gated_resnet(down_right_shifted_conv2d, skip=2),
            # a = cat(u, ul_list.pop()) -- passed un-concatenated (split nin).
            ul = self.ul_block(ul, (u, ul_sk.pop()), mask, prepped[i]['ul'])

        def from_slab(s):
            x = s.reshape(N, H + 2, W + 2, F)[:, 1:1 + H, 1:1 + W, :]
            return jnp.transpose(x, (0, 3, 1, 2))

        return from_slab(u), from_slab(ul)

    def __call__(self, u, ul, u_list, ul_list):
        return self._jit_forward(self.prepped, self.mask, u, ul,
                                 tuple(u_list), tuple(ul_list))


# ---------------------------------------------------------------------------
# Pure-JAX reference (f32) for correctness check
# ---------------------------------------------------------------------------

def _ref_concat_elu(x):  # NHWC
    return jax.nn.elu(jnp.concatenate([x, -x], axis=-1))


def _ref_conv(x, w_oihw, b, pad):
    y = lax.conv_general_dilated(x, w_oihw, window_strides=(1, 1), padding=pad,
                                 dimension_numbers=('NHWC', 'OIHW', 'NHWC'))
    return y + b


def _ref_gated_resnet(og, a, p, F, pad):
    x = _ref_conv(_ref_concat_elu(og), p['w_ci'], p['b_ci'], pad)
    x = x + jnp.einsum('nhwc,fc->nhwf', _ref_concat_elu(a), p['w_nin']) + p['b_nin']
    y = _ref_conv(_ref_concat_elu(x), p['w_co'], p['b_co'], pad)
    return og + y[..., :F] * jax.nn.sigmoid(y[..., F:])


def reference_forward(u_nchw, ul_nchw, u_list, ul_list, params, nr_resnet, F):
    nhwc = lambda t: jnp.transpose(t, (0, 2, 3, 1))
    u, ul = nhwc(u_nchw), nhwc(ul_nchw)
    u_skips = [nhwc(t) for t in u_list]
    ul_skips = [nhwc(t) for t in ul_list]
    pad_u = ((1, 0), (1, 1))     # down_shifted (2,3)
    pad_ul = ((1, 0), (1, 0))    # down_right_shifted (2,2)
    for i in range(nr_resnet):
        u = _ref_gated_resnet(u, u_skips.pop(), params[i]['u'], F, pad_u)
        a = jnp.concatenate([u, ul_skips.pop()], axis=-1)
        ul = _ref_gated_resnet(ul, a, params[i]['ul'], F, pad_ul)
    return jnp.transpose(u, (0, 3, 1, 2)), jnp.transpose(ul, (0, 3, 1, 2))


# ---------------------------------------------------------------------------
# Main
# ---------------------------------------------------------------------------

if __name__ == "__main__":
    nr_resnet = 2
    nr_filters = 8
    N, H, W = 2, 8, 8

    key = jax.random.PRNGKey(0)
    k_u, k_ul, k_ls, k_p = jax.random.split(key, 4)
    u_in = jax.random.normal(k_u, (N, nr_filters, H, W), jnp.float32)
    ul_in = jax.random.normal(k_ul, (N, nr_filters, H, W), jnp.float32)
    ks = jax.random.split(k_ls, 2 * nr_resnet)
    u_list = [jax.random.normal(ks[i], (N, nr_filters, H, W), jnp.float32)
              for i in range(nr_resnet)]
    ul_list = [jax.random.normal(ks[nr_resnet + i], (N, nr_filters, H, W), jnp.float32)
               for i in range(nr_resnet)]

    model = PixelCNNLayerDownPallas(nr_resnet, nr_filters, N, H, W, k_p)
    u_out, ul_out = model(u_in, ul_in, list(u_list), list(ul_list))
    jax.block_until_ready((u_out, ul_out))

    u_ref, ul_ref = reference_forward(u_in, ul_in, list(u_list), list(ul_list),
                                      model.params, nr_resnet, nr_filters)
    # bf16 matmul operands (f32 accumulation) -> slightly looser tolerance.
    np.testing.assert_allclose(np.asarray(u_out), np.asarray(u_ref),
                               rtol=1e-2, atol=1e-2)
    np.testing.assert_allclose(np.asarray(ul_out), np.asarray(ul_ref),
                               rtol=1e-2, atol=1e-2)

    print("KERNEL_OK")
</pallas_src>

<mosaic_0001>
module attributes {stable_mosaic.version = 11 : i64} {
  func.func @kernel(%arg0: i32, %arg1: memref<1x100x8xf32, #tpu.memory_space<vmem>>, %arg2: memref<1x100x8xf32, #tpu.memory_space<vmem>>, %arg3: memref<80x1xf32, #tpu.memory_space<vmem>>, %arg4: memref<96x8xbf16, #tpu.memory_space<vmem>>, %arg5: memref<16x8xbf16, #tpu.memory_space<vmem>>, %arg6: memref<1x8xf32, #tpu.memory_space<vmem>>, %arg7: memref<96x8xbf16, #tpu.memory_space<vmem>>, %arg8: memref<96x8xbf16, #tpu.memory_space<vmem>>, %arg9: memref<1x8xf32, #tpu.memory_space<vmem>>, %arg10: memref<1x8xf32, #tpu.memory_space<vmem>>, %arg11: memref<1x100x8xf32, #tpu.memory_space<vmem>>) attributes {dimension_semantics = [#tpu.dimension_semantics<parallel>], iteration_bounds = array<i64: 2>, scalar_prefetch = 0 : i64, scratch_operands = 0 : i64, tpu.core_type = #tpu.core_type<tc>, window_params = [{transform_indices = @transform_0, window_bounds = array<i64: 1, 100, 8>}, {transform_indices = @transform_1, window_bounds = array<i64: 1, 100, 8>}, {pipeline_mode = #tpu.pipeline_mode<synchronous>, transform_indices = @transform_2, window_bounds = array<i64: 80, 1>}, {pipeline_mode = #tpu.pipeline_mode<synchronous>, transform_indices = @transform_3, window_bounds = array<i64: 96, 8>}, {pipeline_mode = #tpu.pipeline_mode<synchronous>, transform_indices = @transform_4, window_bounds = array<i64: 16, 8>}, {pipeline_mode = #tpu.pipeline_mode<synchronous>, transform_indices = @transform_5, window_bounds = array<i64: 1, 8>}, {pipeline_mode = #tpu.pipeline_mode<synchronous>, transform_indices = @transform_6, window_bounds = array<i64: 96, 8>}, {pipeline_mode = #tpu.pipeline_mode<synchronous>, transform_indices = @transform_7, window_bounds = array<i64: 96, 8>}, {pipeline_mode = #tpu.pipeline_mode<synchronous>, transform_indices = @transform_8, window_bounds = array<i64: 1, 8>}, {pipeline_mode = #tpu.pipeline_mode<synchronous>, transform_indices = @transform_9, window_bounds = array<i64: 1, 8>}, {transform_indices = @transform_10, window_bounds = array<i64: 1, 100, 8>}]} {
    %c0 = arith.constant 0 : index
    %c0_0 = arith.constant 0 : index
    %c0_1 = arith.constant 0 : index
    %0 = vector.load %arg1[%c0, %c0_0, %c0_1] : memref<1x100x8xf32, #tpu.memory_space<vmem>>, vector<1x100x8xf32>
    %1 = vector.shape_cast %0 : vector<1x100x8xf32> to vector<100x8xf32>
    %c0_2 = arith.constant 0 : index
    %c0_3 = arith.constant 0 : index
    %2 = vector.load %arg3[%c0_2, %c0_3] : memref<80x1xf32, #tpu.memory_space<vmem>>, vector<80x1xf32>
    %3 = math.absf %1 : vector<100x8xf32>
    %cst = arith.constant 0.000000e+00 : f32
    %4 = vector.broadcast %cst : f32 to vector<100x8xf32>
    %5 = arith.subf %4, %3 : vector<100x8xf32>
    %6 = math.exp %5 : vector<100x8xf32>
    %cst_4 = arith.constant 1.000000e+00 : f32
    %7 = vector.broadcast %cst_4 : f32 to vector<100x8xf32>
    %8 = arith.subf %6, %7 : vector<100x8xf32>
    %cst_5 = arith.constant 0.000000e+00 : f32
    %9 = vector.broadcast %cst_5 : f32 to vector<100x8xf32>
    %10 = arith.cmpf ogt, %1, %9 : vector<100x8xf32>
    %11 = arith.select %10, %1, %8 : vector<100x8xi1>, vector<100x8xf32>
    %cst_6 = arith.constant 0.000000e+00 : f32
    %12 = vector.broadcast %cst_6 : f32 to vector<100x8xf32>
    %13 = arith.subf %12, %1 : vector<100x8xf32>
    %14 = arith.select %10, %8, %13 : vector<100x8xi1>, vector<100x8xf32>
    %15 = tpu.concatenate %11, %14 in 1 : vector<100x8xf32>, vector<100x8xf32> -> vector<100x16xf32>
    %16 = arith.truncf %15 : vector<100x16xf32> to vector<100x16xbf16>
    %17 = vector.extract_strided_slice %16 {offsets = [0, 0], sizes = [80, 16], strides = [1, 1]} : vector<100x16xbf16> to vector<80x16xbf16>
    %18 = vector.extract_strided_slice %16 {offsets = [1, 0], sizes = [80, 16], strides = [1, 1]} : vector<100x16xbf16> to vector<80x16xbf16>
    %19 = vector.extract_strided_slice %16 {offsets = [2, 0], sizes = [80, 16], strides = [1, 1]} : vector<100x16xbf16> to vector<80x16xbf16>
    %20 = vector.extract_strided_slice %16 {offsets = [10, 0], sizes = [80, 16], strides = [1, 1]} : vector<100x16xbf16> to vector<80x16xbf16>
    %21 = vector.extract_strided_slice %16 {offsets = [11, 0], sizes = [80, 16], strides = [1, 1]} : vector<100x16xbf16> to vector<80x16xbf16>
    %22 = vector.extract_strided_slice %16 {offsets = [12, 0], sizes = [80, 16], strides = [1, 1]} : vector<100x16xbf16> to vector<80x16xbf16>
    %23 = tpu.concatenate %17, %18, %19, %20, %21, %22 in 1 : vector<80x16xbf16>, vector<80x16xbf16>, vector<80x16xbf16>, vector<80x16xbf16>, vector<80x16xbf16>, vector<80x16xbf16> -> vector<80x96xbf16>
    %c0_7 = arith.constant 0 : index
    %c0_8 = arith.constant 0 : index
    %24 = vector.load %arg4[%c0_7, %c0_8] : memref<96x8xbf16, #tpu.memory_space<vmem>>, vector<96x8xbf16>
    %cst_9 = arith.constant dense<0.000000e+00> : vector<80x8xf32>
    %25 = tpu.matmul %23, %24, %cst_9 {dimension_numbers = #tpu.dot_dimension_numbers<[1], [0], [0], [1], [0, 0, 1, 1], [], []>} : vector<80x96xbf16>, vector<96x8xbf16>, vector<80x8xf32> -> vector<80x8xf32>
    %c0_10 = arith.constant 0 : index
    %c11 = arith.constant 11 : index
    %c0_11 = arith.constant 0 : index
    %26 = vector.load %arg2[%c0_10, %c11, %c0_11] : memref<1x100x8xf32, #tpu.memory_space<vmem>>, vector<1x80x8xf32>
    %27 = vector.shape_cast %26 : vector<1x80x8xf32> to vector<80x8xf32>
    %28 = math.absf %27 : vector<80x8xf32>
    %cst_12 = arith.constant 0.000000e+00 : f32
    %29 = vector.broadcast %cst_12 : f32 to vector<80x8xf32>
    %30 = arith.subf %29, %28 : vector<80x8xf32>
    %31 = math.exp %30 : vector<80x8xf32>
    %cst_13 = arith.constant 1.000000e+00 : f32
    %32 = vector.broadcast %cst_13 : f32 to vector<80x8xf32>
    %33 = arith.subf %31, %32 : vector<80x8xf32>
    %cst_14 = arith.constant 0.000000e+00 : f32
    %34 = vector.broadcast %cst_14 : f32 to vector<80x8xf32>
    %35 = arith.cmpf ogt, %27, %34 : vector<80x8xf32>
    %36 = arith.select %35, %27, %33 : vector<80x8xi1>, vector<80x8xf32>
    %cst_15 = arith.constant 0.000000e+00 : f32
    %37 = vector.broadcast %cst_15 : f32 to vector<80x8xf32>
    %38 = arith.subf %37, %27 : vector<80x8xf32>
    %39 = arith.select %35, %33, %38 : vector<80x8xi1>, vector<80x8xf32>
    %40 = tpu.concatenate %36, %39 in 1 : vector<80x8xf32>, vector<80x8xf32> -> vector<80x16xf32>
    %41 = arith.truncf %40 : vector<80x16xf32> to vector<80x16xbf16>
    %c0_16 = arith.constant 0 : index
    %c0_17 = arith.constant 0 : index
    %42 = vector.load %arg5[%c0_16, %c0_17] : memref<16x8xbf16, #tpu.memory_space<vmem>>, vector<16x8xbf16>
    %cst_18 = arith.constant dense<0.000000e+00> : vector<80x8xf32>
    %43 = tpu.matmul %41, %42, %cst_18 {dimension_numbers = #tpu.dot_dimension_numbers<[1], [0], [0], [1], [0, 0, 1, 1], [], []>} : vector<80x16xbf16>, vector<16x8xbf16>, vector<80x8xf32> -> vector<80x8xf32>
    %44 = arith.addf %25, %43 : vector<80x8xf32>
    %c0_19 = arith.constant 0 : index
    %c0_20 = arith.constant 0 : index
    %45 = vector.load %arg6[%c0_19, %c0_20] : memref<1x8xf32, #tpu.memory_space<vmem>>, vector<1x8xf32>
    %46 = vector.broadcast %45 : vector<1x8xf32> to vector<80x8xf32>
    %47 = arith.addf %44, %46 : vector<80x8xf32>
    %48 = vector.broadcast %2 : vector<80x1xf32> to vector<80x8xf32>
    %49 = arith.mulf %47, %48 : vector<80x8xf32>
    %cst_21 = arith.constant 0.000000e+00 : f32
    %50 = vector.broadcast %cst_21 : f32 to vector<11x8xf32>
    %cst_22 = arith.constant 0.000000e+00 : f32
    %51 = vector.broadcast %cst_22 : f32 to vector<9x8xf32>
    %52 = tpu.concatenate %50, %49, %51 in 0 : vector<11x8xf32>, vector<80x8xf32>, vector<9x8xf32> -> vector<100x8xf32>
    %53 = math.absf %52 : vector<100x8xf32>
    %cst_23 = arith.constant 0.000000e+00 : f32
    %54 = vector.broadcast %cst_23 : f32 to vector<100x8xf32>
    %55 = arith.subf %54, %53 : vector<100x8xf32>
    %56 = math.exp %55 : vector<100x8xf32>
    %cst_24 = arith.constant 1.000000e+00 : f32
    %57 = vector.broadcast %cst_24 : f32 to vector<100x8xf32>
    %58 = arith.subf %56, %57 : vector<100x8xf32>
    %cst_25 = arith.constant 0.000000e+00 : f32
    %59 = vector.broadcast %cst_25 : f32 to vector<100x8xf32>
    %60 = arith.cmpf ogt, %52, %59 : vector<100x8xf32>
    %61 = arith.select %60, %52, %58 : vector<100x8xi1>, vector<100x8xf32>
    %cst_26 = arith.constant 0.000000e+00 : f32
    %62 = vector.broadcast %cst_26 : f32 to vector<100x8xf32>
    %63 = arith.subf %62, %52 : vector<100x8xf32>
    %64 = arith.select %60, %58, %63 : vector<100x8xi1>, vector<100x8xf32>
    %65 = tpu.concatenate %61, %64 in 1 : vector<100x8xf32>, vector<100x8xf32> -> vector<100x16xf32>
    %66 = arith.truncf %65 : vector<100x16xf32> to vector<100x16xbf16>
    %67 = vector.extract_strided_slice %66 {offsets = [0, 0], sizes = [80, 16], strides = [1, 1]} : vector<100x16xbf16> to vector<80x16xbf16>
    %68 = vector.extract_strided_slice %66 {offsets = [1, 0], sizes = [80, 16], strides = [1, 1]} : vector<100x16xbf16> to vector<80x16xbf16>
    %69 = vector.extract_strided_slice %66 {offsets = [2, 0], sizes = [80, 16], strides = [1, 1]} : vector<100x16xbf16> to vector<80x16xbf16>
    %70 = vector.extract_strided_slice %66 {offsets = [10, 0], sizes = [80, 16], strides = [1, 1]} : vector<100x16xbf16> to vector<80x16xbf16>
    %71 = vector.extract_strided_slice %66 {offsets = [11, 0], sizes = [80, 16], strides = [1, 1]} : vector<100x16xbf16> to vector<80x16xbf16>
    %72 = vector.extract_strided_slice %66 {offsets = [12, 0], sizes = [80, 16], strides = [1, 1]} : vector<100x16xbf16> to vector<80x16xbf16>
    %73 = tpu.concatenate %67, %68, %69, %70, %71, %72 in 1 : vector<80x16xbf16>, vector<80x16xbf16>, vector<80x16xbf16>, vector<80x16xbf16>, vector<80x16xbf16>, vector<80x16xbf16> -> vector<80x96xbf16>
    %c0_27 = arith.constant 0 : index
    %c0_28 = arith.constant 0 : index
    %74 = vector.load %arg7[%c0_27, %c0_28] : memref<96x8xbf16, #tpu.memory_space<vmem>>, vector<96x8xbf16>
    %cst_29 = arith.constant dense<0.000000e+00> : vector<80x8xf32>
    %75 = tpu.matmul %73, %74, %cst_29 {dimension_numbers = #tpu.dot_dimension_numbers<[1], [0], [0], [1], [0, 0, 1, 1], [], []>} : vector<80x96xbf16>, vector<96x8xbf16>, vector<80x8xf32> -> vector<80x8xf32>
    %c0_30 = arith.constant 0 : index
    %c0_31 = arith.constant 0 : index
    %76 = vector.load %arg9[%c0_30, %c0_31] : memref<1x8xf32, #tpu.memory_space<vmem>>, vector<1x8xf32>
    %77 = vector.broadcast %76 : vector<1x8xf32> to vector<80x8xf32>
    %78 = arith.addf %75, %77 : vector<80x8xf32>
    %c0_32 = arith.constant 0 : index
    %c0_33 = arith.constant 0 : index
    %79 = vector.load %arg8[%c0_32, %c0_33] : memref<96x8xbf16, #tpu.memory_space<vmem>>, vector<96x8xbf16>
    %cst_34 = arith.constant dense<0.000000e+00> : vector<80x8xf32>
    %80 = tpu.matmul %73, %79, %cst_34 {dimension_numbers = #tpu.dot_dimension_numbers<[1], [0], [0], [1], [0, 0, 1, 1], [], []>} : vector<80x96xbf16>, vector<96x8xbf16>, vector<80x8xf32> -> vector<80x8xf32>
    %c0_35 = arith.constant 0 : index
    %c0_36 = arith.constant 0 : index
    %81 = vector.load %arg10[%c0_35, %c0_36] : memref<1x8xf32, #tpu.memory_space<vmem>>, vector<1x8xf32>
    %82 = vector.broadcast %81 : vector<1x8xf32> to vector<80x8xf32>
    %83 = arith.addf %80, %82 : vector<80x8xf32>
    %84 = vector.extract_strided_slice %1 {offsets = [11, 0], sizes = [80, 8], strides = [1, 1]} : vector<100x8xf32> to vector<80x8xf32>
    %85 = arith.negf %83 : vector<80x8xf32>
    %86 = math.exp %85 : vector<80x8xf32>
    %cst_37 = arith.constant 1.000000e+00 : f32
    %87 = vector.broadcast %cst_37 : f32 to vector<80x8xf32>
    %88 = arith.addf %87, %86 : vector<80x8xf32>
    %89 = arith.divf %87, %88 : vector<80x8xf32>
    %90 = arith.mulf %78, %89 : vector<80x8xf32>
    %91 = arith.addf %84, %90 : vector<80x8xf32>
    %92 = vector.broadcast %2 : vector<80x1xf32> to vector<80x8xf32>
    %93 = arith.mulf %91, %92 : vector<80x8xf32>
    %94 = tpu.concatenate %50, %93, %51 in 0 : vector<11x8xf32>, vector<80x8xf32>, vector<9x8xf32> -> vector<100x8xf32>
    %c0_38 = arith.constant 0 : index
    %c0_39 = arith.constant 0 : index
    %c0_40 = arith.constant 0 : index
    %95 = vector.load %arg11[%c0_38, %c0_39, %c0_40] : memref<1x100x8xf32, #tpu.memory_space<vmem>>, vector<1x100x8xf32>
    %96 = vector.shape_cast %95 : vector<1x100x8xf32> to vector<100x8xf32>
    %97 = vector.shape_cast %94 : vector<100x8xf32> to vector<1x100x8xf32>
    tpu.vector_store %arg11[%c0_38, %c0_39, %c0_40], %97 {strides = array<i32>} : memref<1x100x8xf32, #tpu.memory_space<vmem>>, vector<1x100x8xf32>,
    return
  }
  func.func @transform_0(%arg0: i32) -> (i32, i32, i32) {
    %c0_i32 = arith.constant 0 : i32
    %c0_i32_0 = arith.constant 0 : i32
    %c0_i32_1 = arith.constant 0 : i32
    return %arg0, %c0_i32, %c0_i32_0 : i32, i32, i32
  }
  func.func @transform_1(%arg0: i32) -> (i32, i32, i32) {
    %c0_i32 = arith.constant 0 : i32
    %c0_i32_0 = arith.constant 0 : i32
    %c0_i32_1 = arith.constant 0 : i32
    return %arg0, %c0_i32, %c0_i32_0 : i32, i32, i32
  }
  func.func @transform_2(%arg0: i32) -> (i32, i32) {
    %c0_i32 = arith.constant 0 : i32
    %c0_i32_0 = arith.constant 0 : i32
    %c0_i32_1 = arith.constant 0 : i32
    return %c0_i32, %c0_i32_0 : i32, i32
  }
  func.func @transform_3(%arg0: i32) -> (i32, i32) {
    %c0_i32 = arith.constant 0 : i32
    %c0_i32_0 = arith.constant 0 : i32
    %c0_i32_1 = arith.constant 0 : i32
    return %c0_i32, %c0_i32_0 : i32, i32
  }
  func.func @transform_4(%arg0: i32) -> (i32, i32) {
    %c0_i32 = arith.constant 0 : i32
    %c0_i32_0 = arith.constant 0 : i32
    %c0_i32_1 = arith.constant 0 : i32
    return %c0_i32, %c0_i32_0 : i32, i32
  }
  func.func @transform_5(%arg0: i32) -> (i32, i32) {
    %c0_i32 = arith.constant 0 : i32
    %c0_i32_0 = arith.constant 0 : i32
    %c0_i32_1 = arith.constant 0 : i32
    return %c0_i32, %c0_i32_0 : i32, i32
  }
  func.func @transform_6(%arg0: i32) -> (i32, i32) {
    %c0_i32 = arith.constant 0 : i32
    %c0_i32_0 = arith.constant 0 : i32
    %c0_i32_1 = arith.constant 0 : i32
    return %c0_i32, %c0_i32_0 : i32, i32
  }
  func.func @transform_7(%arg0: i32) -> (i32, i32) {
    %c0_i32 = arith.constant 0 : i32
    %c0_i32_0 = arith.constant 0 : i32
    %c0_i32_1 = arith.constant 0 : i32
    return %c0_i32, %c0_i32_0 : i32, i32
  }
  func.func @transform_8(%arg0: i32) -> (i32, i32) {
    %c0_i32 = arith.constant 0 : i32
    %c0_i32_0 = arith.constant 0 : i32
    %c0_i32_1 = arith.constant 0 : i32
    return %c0_i32, %c0_i32_0 : i32, i32
  }
  func.func @transform_9(%arg0: i32) -> (i32, i32) {
    %c0_i32 = arith.constant 0 : i32
    %c0_i32_0 = arith.constant 0 : i32
    %c0_i32_1 = arith.constant 0 : i32
    return %c0_i32, %c0_i32_0 : i32, i32
  }
  func.func @transform_10(%arg0: i32) -> (i32, i32, i32) {
    %c0_i32 = arith.constant 0 : i32
    %c0_i32_0 = arith.constant 0 : i32
    %c0_i32_1 = arith.constant 0 : i32
    return %arg0, %c0_i32, %c0_i32_0 : i32, i32, i32
  }
}

module attributes {stable_mosaic.version = 11 : i64} {
  func.func @kernel(%arg0: i32, %arg1: memref<1x100x8xf32, #tpu.memory_space<vmem>>, %arg2: memref<1x100x8xf32, #tpu.memory_space<vmem>>, %arg3: memref<1x100x8xf32, #tpu.memory_space<vmem>>, %arg4: memref<80x1xf32, #tpu.memory_space<vmem>>, %arg5: memref<64x8xbf16, #tpu.memory_space<vmem>>, %arg6: memref<16x8xbf16, #tpu.memory_space<vmem>>, %arg7: memref<16x8xbf16, #tpu.memory_space<vmem>>, %arg8: memref<1x8xf32, #tpu.memory_space<vmem>>, %arg9: memref<64x8xbf16, #tpu.memory_space<vmem>>, %arg10: memref<64x8xbf16, #tpu.memory_space<vmem>>, %arg11: memref<1x8xf32, #tpu.memory_space<vmem>>, %arg12: memref<1x8xf32, #tpu.memory_space<vmem>>, %arg13: memref<1x100x8xf32, #tpu.memory_space<vmem>>) attributes {dimension_semantics = [#tpu.dimension_semantics<parallel>], iteration_bounds = array<i64: 2>, scalar_prefetch = 0 : i64, scratch_operands = 0 : i64, tpu.core_type = #tpu.core_type<tc>, window_params = [{transform_indices = @transform_0, window_bounds = array<i64: 1, 100, 8>}, {transform_indices = @transform_1, window_bounds = array<i64: 1, 100, 8>}, {transform_indices = @transform_2, window_bounds = array<i64: 1, 100, 8>}, {pipeline_mode = #tpu.pipeline_mode<synchronous>, transform_indices = @transform_3, window_bounds = array<i64: 80, 1>}, {pipeline_mode = #tpu.pipeline_mode<synchronous>, transform_indices = @transform_4, window_bounds = array<i64: 64, 8>}, {pipeline_mode = #tpu.pipeline_mode<synchronous>, transform_indices = @transform_5, window_bounds = array<i64: 16, 8>}, {pipeline_mode = #tpu.pipeline_mode<synchronous>, transform_indices = @transform_6, window_bounds = array<i64: 16, 8>}, {pipeline_mode = #tpu.pipeline_mode<synchronous>, transform_indices = @transform_7, window_bounds = array<i64: 1, 8>}, {pipeline_mode = #tpu.pipeline_mode<synchronous>, transform_indices = @transform_8, window_bounds = array<i64: 64, 8>}, {pipeline_mode = #tpu.pipeline_mode<synchronous>, transform_indices = @transform_9, window_bounds = array<i64: 64, 8>}, {pipeline_mode = #tpu.pipeline_mode<synchronous>, transform_indices = @transform_10, window_bounds = array<i64: 1, 8>}, {pipeline_mode = #tpu.pipeline_mode<synchronous>, transform_indices = @transform_11, window_bounds = array<i64: 1, 8>}, {transform_indices = @transform_12, window_bounds = array<i64: 1, 100, 8>}]} {
    %c0 = arith.constant 0 : index
    %c0_0 = arith.constant 0 : index
    %c0_1 = arith.constant 0 : index
    %0 = vector.load %arg1[%c0, %c0_0, %c0_1] : memref<1x100x8xf32, #tpu.memory_space<vmem>>, vector<1x100x8xf32>
    %1 = vector.shape_cast %0 : vector<1x100x8xf32> to vector<100x8xf32>
    %c0_2 = arith.constant 0 : index
    %c0_3 = arith.constant 0 : index
    %2 = vector.load %arg4[%c0_2, %c0_3] : memref<80x1xf32, #tpu.memory_space<vmem>>, vector<80x1xf32>
    %3 = math.absf %1 : vector<100x8xf32>
    %cst = arith.constant 0.000000e+00 : f32
    %4 = vector.broadcast %cst : f32 to vector<100x8xf32>
    %5 = arith.subf %4, %3 : vector<100x8xf32>
    %6 = math.exp %5 : vector<100x8xf32>
    %cst_4 = arith.constant 1.000000e+00 : f32
    %7 = vector.broadcast %cst_4 : f32 to vector<100x8xf32>
    %8 = arith.subf %6, %7 : vector<100x8xf32>
    %cst_5 = arith.constant 0.000000e+00 : f32
    %9 = vector.broadcast %cst_5 : f32 to vector<100x8xf32>
    %10 = arith.cmpf ogt, %1, %9 : vector<100x8xf32>
    %11 = arith.select %10, %1, %8 : vector<100x8xi1>, vector<100x8xf32>
    %cst_6 = arith.constant 0.000000e+00 : f32
    %12 = vector.broadcast %cst_6 : f32 to vector<100x8xf32>
    %13 = arith.subf %12, %1 : vector<100x8xf32>
    %14 = arith.select %10, %8, %13 : vector<100x8xi1>, vector<100x8xf32>
    %15 = tpu.concatenate %11, %14 in 1 : vector<100x8xf32>, vector<100x8xf32> -> vector<100x16xf32>
    %16 = arith.truncf %15 : vector<100x16xf32> to vector<100x16xbf16>
    %17 = vector.extract_strided_slice %16 {offsets = [0, 0], sizes = [80, 16], strides = [1, 1]} : vector<100x16xbf16> to vector<80x16xbf16>
    %18 = vector.extract_strided_slice %16 {offsets = [1, 0], sizes = [80, 16], strides = [1, 1]} : vector<100x16xbf16> to vector<80x16xbf16>
    %19 = vector.extract_strided_slice %16 {offsets = [10, 0], sizes = [80, 16], strides = [1, 1]} : vector<100x16xbf16> to vector<80x16xbf16>
    %20 = vector.extract_strided_slice %16 {offsets = [11, 0], sizes = [80, 16], strides = [1, 1]} : vector<100x16xbf16> to vector<80x16xbf16>
    %21 = tpu.concatenate %17, %18, %19, %20 in 1 : vector<80x16xbf16>, vector<80x16xbf16>, vector<80x16xbf16>, vector<80x16xbf16> -> vector<80x64xbf16>
    %c0_7 = arith.constant 0 : index
    %c0_8 = arith.constant 0 : index
    %22 = vector.load %arg5[%c0_7, %c0_8] : memref<64x8xbf16, #tpu.memory_space<vmem>>, vector<64x8xbf16>
    %cst_9 = arith.constant dense<0.000000e+00> : vector<80x8xf32>
    %23 = tpu.matmul %21, %22, %cst_9 {dimension_numbers = #tpu.dot_dimension_numbers<[1], [0], [0], [1], [0, 0, 1, 1], [], []>} : vector<80x64xbf16>, vector<64x8xbf16>, vector<80x8xf32> -> vector<80x8xf32>
    %c0_10 = arith.constant 0 : index
    %c11 = arith.constant 11 : index
    %c0_11 = arith.constant 0 : index
    %24 = vector.load %arg2[%c0_10, %c11, %c0_11] : memref<1x100x8xf32, #tpu.memory_space<vmem>>, vector<1x80x8xf32>
    %25 = vector.shape_cast %24 : vector<1x80x8xf32> to vector<80x8xf32>
    %26 = math.absf %25 : vector<80x8xf32>
    %cst_12 = arith.constant 0.000000e+00 : f32
    %27 = vector.broadcast %cst_12 : f32 to vector<80x8xf32>
    %28 = arith.subf %27, %26 : vector<80x8xf32>
    %29 = math.exp %28 : vector<80x8xf32>
    %cst_13 = arith.constant 1.000000e+00 : f32
    %30 = vector.broadcast %cst_13 : f32 to vector<80x8xf32>
    %31 = arith.subf %29, %30 : vector<80x8xf32>
    %cst_14 = arith.constant 0.000000e+00 : f32
    %32 = vector.broadcast %cst_14 : f32 to vector<80x8xf32>
    %33 = arith.cmpf ogt, %25, %32 : vector<80x8xf32>
    %34 = arith.select %33, %25, %31 : vector<80x8xi1>, vector<80x8xf32>
    %cst_15 = arith.constant 0.000000e+00 : f32
    %35 = vector.broadcast %cst_15 : f32 to vector<80x8xf32>
    %36 = arith.subf %35, %25 : vector<80x8xf32>
    %37 = arith.select %33, %31, %36 : vector<80x8xi1>, vector<80x8xf32>
    %38 = tpu.concatenate %34, %37 in 1 : vector<80x8xf32>, vector<80x8xf32> -> vector<80x16xf32>
    %39 = arith.truncf %38 : vector<80x16xf32> to vector<80x16xbf16>
    %c0_16 = arith.constant 0 : index
    %c0_17 = arith.constant 0 : index
    %40 = vector.load %arg6[%c0_16, %c0_17] : memref<16x8xbf16, #tpu.memory_space<vmem>>, vector<16x8xbf16>
    %cst_18 = arith.constant dense<0.000000e+00> : vector<80x8xf32>
    %41 = tpu.matmul %39, %40, %cst_18 {dimension_numbers = #tpu.dot_dimension_numbers<[1], [0], [0], [1], [0, 0, 1, 1], [], []>} : vector<80x16xbf16>, vector<16x8xbf16>, vector<80x8xf32> -> vector<80x8xf32>
    %42 = arith.addf %23, %41 : vector<80x8xf32>
    %c0_19 = arith.constant 0 : index
    %c11_20 = arith.constant 11 : index
    %c0_21 = arith.constant 0 : index
    %43 = vector.load %arg3[%c0_19, %c11_20, %c0_21] : memref<1x100x8xf32, #tpu.memory_space<vmem>>, vector<1x80x8xf32>
    %44 = vector.shape_cast %43 : vector<1x80x8xf32> to vector<80x8xf32>
    %45 = math.absf %44 : vector<80x8xf32>
    %cst_22 = arith.constant 0.000000e+00 : f32
    %46 = vector.broadcast %cst_22 : f32 to vector<80x8xf32>
    %47 = arith.subf %46, %45 : vector<80x8xf32>
    %48 = math.exp %47 : vector<80x8xf32>
    %cst_23 = arith.constant 1.000000e+00 : f32
    %49 = vector.broadcast %cst_23 : f32 to vector<80x8xf32>
    %50 = arith.subf %48, %49 : vector<80x8xf32>
    %cst_24 = arith.constant 0.000000e+00 : f32
    %51 = vector.broadcast %cst_24 : f32 to vector<80x8xf32>
    %52 = arith.cmpf ogt, %44, %51 : vector<80x8xf32>
    %53 = arith.select %52, %44, %50 : vector<80x8xi1>, vector<80x8xf32>
    %cst_25 = arith.constant 0.000000e+00 : f32
    %54 = vector.broadcast %cst_25 : f32 to vector<80x8xf32>
    %55 = arith.subf %54, %44 : vector<80x8xf32>
    %56 = arith.select %52, %50, %55 : vector<80x8xi1>, vector<80x8xf32>
    %57 = tpu.concatenate %53, %56 in 1 : vector<80x8xf32>, vector<80x8xf32> -> vector<80x16xf32>
    %58 = arith.truncf %57 : vector<80x16xf32> to vector<80x16xbf16>
    %c0_26 = arith.constant 0 : index
    %c0_27 = arith.constant 0 : index
    %59 = vector.load %arg7[%c0_26, %c0_27] : memref<16x8xbf16, #tpu.memory_space<vmem>>, vector<16x8xbf16>
    %cst_28 = arith.constant dense<0.000000e+00> : vector<80x8xf32>
    %60 = tpu.matmul %58, %59, %cst_28 {dimension_numbers = #tpu.dot_dimension_numbers<[1], [0], [0], [1], [0, 0, 1, 1], [], []>} : vector<80x16xbf16>, vector<16x8xbf16>, vector<80x8xf32> -> vector<80x8xf32>
    %61 = arith.addf %42, %60 : vector<80x8xf32>
    %c0_29 = arith.constant 0 : index
    %c0_30 = arith.constant 0 : index
    %62 = vector.load %arg8[%c0_29, %c0_30] : memref<1x8xf32, #tpu.memory_space<vmem>>, vector<1x8xf32>
    %63 = vector.broadcast %62 : vector<1x8xf32> to vector<80x8xf32>
    %64 = arith.addf %61, %63 : vector<80x8xf32>
    %65 = vector.broadcast %2 : vector<80x1xf32> to vector<80x8xf32>
    %66 = arith.mulf %64, %65 : vector<80x8xf32>
    %cst_31 = arith.constant 0.000000e+00 : f32
    %67 = vector.broadcast %cst_31 : f32 to vector<11x8xf32>
    %cst_32 = arith.constant 0.000000e+00 : f32
    %68 = vector.broadcast %cst_32 : f32 to vector<9x8xf32>
    %69 = tpu.concatenate %67, %66, %68 in 0 : vector<11x8xf32>, vector<80x8xf32>, vector<9x8xf32> -> vector<100x8xf32>
    %70 = math.absf %69 : vector<100x8xf32>
    %cst_33 = arith.constant 0.000000e+00 : f32
    %71 = vector.broadcast %cst_33 : f32 to vector<100x8xf32>
    %72 = arith.subf %71, %70 : vector<100x8xf32>
    %73 = math.exp %72 : vector<100x8xf32>
    %cst_34 = arith.constant 1.000000e+00 : f32
    %74 = vector.broadcast %cst_34 : f32 to vector<100x8xf32>
    %75 = arith.subf %73, %74 : vector<100x8xf32>
    %cst_35 = arith.constant 0.000000e+00 : f32
    %76 = vector.broadcast %cst_35 : f32 to vector<100x8xf32>
    %77 = arith.cmpf ogt, %69, %76 : vector<100x8xf32>
    %78 = arith.select %77, %69, %75 : vector<100x8xi1>, vector<100x8xf32>
    %cst_36 = arith.constant 0.000000e+00 : f32
    %79 = vector.broadcast %cst_36 : f32 to vector<100x8xf32>
    %80 = arith.subf %79, %69 : vector<100x8xf32>
    %81 = arith.select %77, %75, %80 : vector<100x8xi1>, vector<100x8xf32>
    %82 = tpu.concatenate %78, %81 in 1 : vector<100x8xf32>, vector<100x8xf32> -> vector<100x16xf32>
    %83 = arith.truncf %82 : vector<100x16xf32> to vector<100x16xbf16>
    %84 = vector.extract_strided_slice %83 {offsets = [0, 0], sizes = [80, 16], strides = [1, 1]} : vector<100x16xbf16> to vector<80x16xbf16>
    %85 = vector.extract_strided_slice %83 {offsets = [1, 0], sizes = [80, 16], strides = [1, 1]} : vector<100x16xbf16> to vector<80x16xbf16>
    %86 = vector.extract_strided_slice %83 {offsets = [10, 0], sizes = [80, 16], strides = [1, 1]} : vector<100x16xbf16> to vector<80x16xbf16>
    %87 = vector.extract_strided_slice %83 {offsets = [11, 0], sizes = [80, 16], strides = [1, 1]} : vector<100x16xbf16> to vector<80x16xbf16>
    %88 = tpu.concatenate %84, %85, %86, %87 in 1 : vector<80x16xbf16>, vector<80x16xbf16>, vector<80x16xbf16>, vector<80x16xbf16> -> vector<80x64xbf16>
    %c0_37 = arith.constant 0 : index
    %c0_38 = arith.constant 0 : index
    %89 = vector.load %arg9[%c0_37, %c0_38] : memref<64x8xbf16, #tpu.memory_space<vmem>>, vector<64x8xbf16>
    %cst_39 = arith.constant dense<0.000000e+00> : vector<80x8xf32>
    %90 = tpu.matmul %88, %89, %cst_39 {dimension_numbers = #tpu.dot_dimension_numbers<[1], [0], [0], [1], [0, 0, 1, 1], [], []>} : vector<80x64xbf16>, vector<64x8xbf16>, vector<80x8xf32> -> vector<80x8xf32>
    %c0_40 = arith.constant 0 : index
    %c0_41 = arith.constant 0 : index
    %91 = vector.load %arg11[%c0_40, %c0_41] : memref<1x8xf32, #tpu.memory_space<vmem>>, vector<1x8xf32>
    %92 = vector.broadcast %91 : vector<1x8xf32> to vector<80x8xf32>
    %93 = arith.addf %90, %92 : vector<80x8xf32>
    %c0_42 = arith.constant 0 : index
    %c0_43 = arith.constant 0 : index
    %94 = vector.load %arg10[%c0_42, %c0_43] : memref<64x8xbf16, #tpu.memory_space<vmem>>, vector<64x8xbf16>
    %cst_44 = arith.constant dense<0.000000e+00> : vector<80x8xf32>
    %95 = tpu.matmul %88, %94, %cst_44 {dimension_numbers = #tpu.dot_dimension_numbers<[1], [0], [0], [1], [0, 0, 1, 1], [], []>} : vector<80x64xbf16>, vector<64x8xbf16>, vector<80x8xf32> -> vector<80x8xf32>
    %c0_45 = arith.constant 0 : index
    %c0_46 = arith.constant 0 : index
    %96 = vector.load %arg12[%c0_45, %c0_46] : memref<1x8xf32, #tpu.memory_space<vmem>>, vector<1x8xf32>
    %97 = vector.broadcast %96 : vector<1x8xf32> to vector<80x8xf32>
    %98 = arith.addf %95, %97 : vector<80x8xf32>
    %99 = vector.extract_strided_slice %1 {offsets = [11, 0], sizes = [80, 8], strides = [1, 1]} : vector<100x8xf32> to vector<80x8xf32>
    %100 = arith.negf %98 : vector<80x8xf32>
    %101 = math.exp %100 : vector<80x8xf32>
    %cst_47 = arith.constant 1.000000e+00 : f32
    %102 = vector.broadcast %cst_47 : f32 to vector<80x8xf32>
    %103 = arith.addf %102, %101 : vector<80x8xf32>
    %104 = arith.divf %102, %103 : vector<80x8xf32>
    %105 = arith.mulf %93, %104 : vector<80x8xf32>
    %106 = arith.addf %99, %105 : vector<80x8xf32>
    %107 = vector.broadcast %2 : vector<80x1xf32> to vector<80x8xf32>
    %108 = arith.mulf %106, %107 : vector<80x8xf32>
    %109 = tpu.concatenate %67, %108, %68 in 0 : vector<11x8xf32>, vector<80x8xf32>, vector<9x8xf32> -> vector<100x8xf32>
    %c0_48 = arith.constant 0 : index
    %c0_49 = arith.constant 0 : index
    %c0_50 = arith.constant 0 : index
    %110 = vector.load %arg13[%c0_48, %c0_49, %c0_50] : memref<1x100x8xf32, #tpu.memory_space<vmem>>, vector<1x100x8xf32>
    %111 = vector.shape_cast %110 : vector<1x100x8xf32> to vector<100x8xf32>
    %112 = vector.shape_cast %109 : vector<100x8xf32> to vector<1x100x8xf32>
    tpu.vector_store %arg13[%c0_48, %c0_49, %c0_50], %112 {strides = array<i32>} : memref<1x100x8xf32, #tpu.memory_space<vmem>>, vector<1x100x8xf32>,
    return
  }
  func.func @transform_0(%arg0: i32) -> (i32, i32, i32) {
    %c0_i32 = arith.constant 0 : i32
    %c0_i32_0 = arith.constant 0 : i32
    %c0_i32_1 = arith.constant 0 : i32
    return %arg0, %c0_i32, %c0_i32_0 : i32, i32, i32
  }
  func.func @transform_1(%arg0: i32) -> (i32, i32, i32) {
    %c0_i32 = arith.constant 0 : i32
    %c0_i32_0 = arith.constant 0 : i32
    %c0_i32_1 = arith.constant 0 : i32
    return %arg0, %c0_i32, %c0_i32_0 : i32, i32, i32
  }
  func.func @transform_2(%arg0: i32) -> (i32, i32, i32) {
    %c0_i32 = arith.constant 0 : i32
    %c0_i32_0 = arith.constant 0 : i32
    %c0_i32_1 = arith.constant 0 : i32
    return %arg0, %c0_i32, %c0_i32_0 : i32, i32, i32
  }
  func.func @transform_3(%arg0: i32) -> (i32, i32) {
    %c0_i32 = arith.constant 0 : i32
    %c0_i32_0 = arith.constant 0 : i32
    %c0_i32_1 = arith.constant 0 : i32
    return %c0_i32, %c0_i32_0 : i32, i32
  }
  func.func @transform_4(%arg0: i32) -> (i32, i32) {
    %c0_i32 = arith.constant 0 : i32
    %c0_i32_0 = arith.constant 0 : i32
    %c0_i32_1 = arith.constant 0 : i32
    return %c0_i32, %c0_i32_0 : i32, i32
  }
  func.func @transform_5(%arg0: i32) -> (i32, i32) {
    %c0_i32 = arith.constant 0 : i32
    %c0_i32_0 = arith.constant 0 : i32
    %c0_i32_1 = arith.constant 0 : i32
    return %c0_i32, %c0_i32_0 : i32, i32
  }
  func.func @transform_6(%arg0: i32) -> (i32, i32) {
    %c0_i32 = arith.constant 0 : i32
    %c0_i32_0 = arith.constant 0 : i32
    %c0_i32_1 = arith.constant 0 : i32
    return %c0_i32, %c0_i32_0 : i32, i32
  }
  func.func @transform_7(%arg0: i32) -> (i32, i32) {
    %c0_i32 = arith.constant 0 : i32
    %c0_i32_0 = arith.constant 0 : i32
    %c0_i32_1 = arith.constant 0 : i32
    return %c0_i32, %c0_i32_0 : i32, i32
  }
  func.func @transform_8(%arg0: i32) -> (i32, i32) {
    %c0_i32 = arith.constant 0 : i32
    %c0_i32_0 = arith.constant 0 : i32
    %c0_i32_1 = arith.constant 0 : i32
    return %c0_i32, %c0_i32_0 : i32, i32
  }
  func.func @transform_9(%arg0: i32) -> (i32, i32) {
    %c0_i32 = arith.constant 0 : i32
    %c0_i32_0 = arith.constant 0 : i32
    %c0_i32_1 = arith.constant 0 : i32
    return %c0_i32, %c0_i32_0 : i32, i32
  }
  func.func @transform_10(%arg0: i32) -> (i32, i32) {
    %c0_i32 = arith.constant 0 : i32
    %c0_i32_0 = arith.constant 0 : i32
    %c0_i32_1 = arith.constant 0 : i32
    return %c0_i32, %c0_i32_0 : i32, i32
  }
  func.func @transform_11(%arg0: i32) -> (i32, i32) {
    %c0_i32 = arith.constant 0 : i32
    %c0_i32_0 = arith.constant 0 : i32
    %c0_i32_1 = arith.constant 0 : i32
    return %c0_i32, %c0_i32_0 : i32, i32
  }
  func.func @transform_12(%arg0: i32) -> (i32, i32, i32) {
    %c0_i32 = arith.constant 0 : i32
    %c0_i32_0 = arith.constant 0 : i32
    %c0_i32_1 = arith.constant 0 : i32
    return %arg0, %c0_i32, %c0_i32_0 : i32, i32, i32
  }
}

</mosaic_0001>

<bundles_post_ra>
// kernel: _forward.4
= control target key start
LH: loop header
LB: loop body
LE: loop exit
PB: predicated region body
PF: predicated region fallthrough
CT: control target
= control target key end

     0   :  { %s2760_s13 = smov 0   ;;  %s3934_s0 = inlined_call_operand.vmem [shape: f32[2,100,8], index: 0, kind: input, shape index: {}]   ;;  %s3935_s1 = inlined_call_operand.vmem [shape: f32[2,100,8], index: 1, kind: input, shape index: {}]   ;;  %s3936_s2 = inlined_call_operand.vmem [shape: f32[80,1], index: 2, kind: input, shape index: {}]   ;;  %s3937_s3 = inlined_call_operand.vmem [shape: bf16[96,8], index: 3, kind: input, shape index: {}]   ;;  %s3938_s4 = inlined_call_operand.vmem [shape: bf16[16,8], index: 4, kind: input, shape index: {}]   ;;  %s3939_s5 = inlined_call_operand.vmem [shape: f32[1,8], index: 5, kind: input, shape index: {}]   ;;  %s3940_s6 = inlined_call_operand.vmem [shape: bf16[96,8], index: 6, kind: input, shape index: {}]   ;;  %s3941_s7 = inlined_call_operand.vmem [shape: bf16[96,8], index: 7, kind: input, shape index: {}]   ;;  %s3942_s8 = inlined_call_operand.vmem [shape: f32[1,8], index: 8, kind: input, shape index: {}]   ;;  %s3943_s9 = inlined_call_operand.vmem [shape: f32[1,8], index: 9, kind: input, shape index: {}]   ;;  %s3944_s10 = inlined_call_operand.vmem [shape: f32[2,100,8], index: 10, kind: output, shape index: {}]  }
   0x1 LB: > { %s2183_s14 = sadd.s32 4294967295, %s2694_s13   ;;  %p2187_p0 = scmp.ge.s32.totalorder %s2694_s13, 1  ;;  %s2694_s13 = sphi %s2760_s13, %s20_s13  }
   0x2   : > { %p322_p1 = scmp.lt.s32.totalorder %s2694_s13, 3 }
   0x4   : > { %p323_p2 = pnand %p2187_p0, %p322_p1 }
   0x5   : > { %p365_p3 = scmp.lt.s32.totalorder (!%p323_p2), %s2183_s14, 1  ;;  %v2696_v0 = vmov (!%p323_p2), 0.0   ;;  %vm559_vm0 = vcmask (!%p323_p2), 64512   ;;  %vm2114_vm1 = vcmask (!%p323_p2), 60416   ;;  %s2697_s25 = smov (!%p323_p2), 8  }
   0x6   : > { %326 = sbr.rel (%p323_p2) target bundleno = 1107 (0x453), region = 60  ;;  %2317 = vmatprep.subr.bf16.mxu0 (!%p323_p2), %v2696_v0  ;;  %2339 = vmatprep.subr.bf16.mxu1 (!%p323_p2), %v2696_v0  ;;  %s2699_s17 = smov (!%p323_p2), 48  }
   0x7   : > { %s2700_s19 = smov (!%p323_p2), 32   ;;  %s2701_s23 = smov (!%p323_p2), 80  }
   0x8   : > { %s2702_s27 = smov (!%p323_p2), 16   ;;  %s2703_s28 = smov (!%p323_p2), 64  }
   0xd   : > { %s3949_s14 = smov (!%p365_p3, %s2183_s14), 1 }
   0xe   : > { %s2770_s15 = smul.u32 104, %s3949_s14 }
  0x10   : > { %s2776_s18 = scalar_lea.vmem %s3934_s0, %s2770_s15  ;;  %s2782_s21 = scalar_lea.vmem %s3944_s10, %s2770_s15 }
  0x11   : > { %v2785_v1 = vld [vmem:[%s2776_s18] sm:$0xff]  ;;  %v2788_v2 = vld [vmem:[%s2776_s18 + $0x8] sm:$0xff]  ;;  %2102 = vst.msk [vmem:[%s2782_s21] sm:$0xff] %vm559_vm0, %v2696_v0  ;;  %v2806_v11 = vld [vmem:[%s2776_s18 + $0x10] sm:$0xff]  ;;  %s2840_s24 = scalar_lea.vmem %s3935_s1, %s2770_s15 }
  0x12   : > { %2115 = vst.msk [vmem:[%s2782_s21 + $0x60] sm:$0xf] %vm2114_vm1, %v2696_v0  ;;  %v2796_v3 = vld [vmem:[%s2776_s18 + $0x20] sm:$0xff]  ;;  %v403_v4 = vand.u32 2147483647, %v2785_v1  ;;  %v2801_v6 = vld [vmem:[%s2776_s18 + $0x28] sm:$0xff] }
  0x13   : > { %v404_v5 = vand.u32 2147483647, %v2788_v2  ;;  %v407_v7 = vand.u32 2147483647, %v2796_v3  ;;  %v408_v10 = vand.u32 2147483647, %v2801_v6 }
  0x14   : > { %v415_v8 = vsub.f32 0.0, %v403_v4  ;;  %v2809_v13 = vld [vmem:[%s2776_s18 + $0x18] sm:$0xff]  ;;  %v405_v14 = vand.u32 2147483647, %v2806_v11  ;;  %v2814_v22 = vld [vmem:[%s2776_s18 + $0x30] sm:$0xff]  ;;  %v2821_v27 = vld [vmem:[%s2776_s18 + $0x40] sm:$0xff] }
  0x15   : > { %v416_v9 = vsub.f32 0.0, %v404_v5  ;;  %v419_v12 = vsub.f32 0.0, %v407_v7  ;;  %v420_v17 = vsub.f32 0.0, %v408_v10  ;;  %v406_v19 = vand.u32 2147483647, %v2809_v13  ;;  %v2817_v23 = vld [vmem:[%s2776_s18 + $0x38] sm:$0xff] }
  0x16   : > { %v427_v15 = vmul.f32 1.442695, %v415_v8  ;;  %v417_v20 = vsub.f32 0.0, %v405_v14  ;;  %v409_v26 = vand.u32 2147483647, %v2814_v22  ;;  %vm463_vm2 = vcmp.gt.f32.partialorder %v2785_v1, 0.0 }
  0x17   : > { %v429_v16 = vmul.f32 1.442695, %v416_v9  ;;  %v435_v18 = vmul.f32 1.442695, %v419_v12  ;;  %v437_v21 = vmul.f32 1.442695, %v420_v17 }
  0x18   : > { %2571 = vpow2.f32 %v427_v15  ;;  %v418_v24 = vsub.f32 0.0, %v406_v19  ;;  %v431_v25 = vmul.f32 1.442695, %v417_v20  ;;  %v487_v28 = vsub.f32 0.0, %v2785_v1  ;;  %v2827_v30 = vld [vmem:[%s2776_s18 + $0x48] sm:$0xff]  ;;  %v2834_v36 = vld [vmem:[%s2776_s18 + $0x50] sm:$0xff] }
  0x19   : > { %2573 = vpow2.f32 %v429_v16  ;;  %v410_v29 = vand.u32 2147483647, %v2817_v23  ;;  %vm464_vm3 = vcmp.gt.f32.partialorder %v2788_v2, 0.0  ;;  %v488_v31 = vsub.f32 0.0, %v2788_v2  ;;  %v2846_v40 = vld [vmem:[%s2776_s18 + $0x58] sm:$0xff]  ;;  %v2853_v46 = vld [vmem:[%s2840_s24 + $0xb] sm:$0xff] }
  0x1a   : > { %2575 = vpow2.f32 %v435_v18  ;;  %v433_v32 = vmul.f32 1.442695, %v418_v24  ;;  %v421_v33 = vsub.f32 0.0, %v409_v26  ;;  %vm467_vm4 = vcmp.gt.f32.partialorder %v2796_v3, 0.0  ;;  %v2860_v53 = vld [vmem:[%s2840_s24 + $0x13] sm:$0xff]  ;;  %v2892_v24 = vld [vmem:[%s2840_s24 + $0x1b] sm:$0xff] }
  0x1b   : > { %2577 = vpow2.f32 %v437_v21  ;;  %v422_v34 = vsub.f32 0.0, %v410_v29  ;;  %v411_v35 = vand.u32 2147483647, %v2821_v27  ;;  %vm468_vm5 = vcmp.gt.f32.partialorder %v2801_v6, 0.0 }
  0x1c   : > { %2579 = vpow2.f32 %v431_v25  ;;  %v491_v37 = vsub.f32 0.0, %v2796_v3  ;;  %v439_v38 = vmul.f32 1.442695, %v421_v33  ;;  %v412_v39 = vand.u32 2147483647, %v2827_v30  ;;  %v2909_v33 = vld [vmem:[%s2840_s24 + $0x23] sm:$0xff] }
  0x1d   : > { %2581 = vpow2.f32 %v433_v32  ;;  %v492_v41 = vsub.f32 0.0, %v2801_v6  ;;  %vm465_vm6 = vcmp.gt.f32.partialorder %v2806_v11, 0.0  ;;  %v441_v42 = vmul.f32 1.442695, %v422_v34 }
  0x1e   : > { %v423_v43 = vsub.f32 0.0, %v411_v35  ;;  %vm466_vm7 = vcmp.gt.f32.partialorder %v2809_v13, 0.0  ;;  %2583 = vpow2.f32 %v439_v38  ;;  %v424_v44 = vsub.f32 0.0, %v412_v39 }
  0x1f   : > { %v413_v45 = vand.u32 2147483647, %v2834_v36  ;;  %v489_v47 = vsub.f32 0.0, %v2806_v11  ;;  %2585 = vpow2.f32 %v441_v42  ;;  %v414_v49 = vand.u32 2147483647, %v2846_v40 }
  0x20   : > { %v443_v48 = vmul.f32 1.442695, %v423_v43  ;;  %v490_v50 = vsub.f32 0.0, %v2809_v13  ;;  %vm469_vm8 = vcmp.gt.f32.partialorder %v2814_v22, 0.0  ;;  %v445_v51 = vmul.f32 1.442695, %v424_v44 }
  0x21   : > { %v425_v52 = vsub.f32 0.0, %v413_v45  ;;  %vm470_vm9 = vcmp.gt.f32.partialorder %v2817_v23, 0.0  ;;  %v493_v55 = vsub.f32 0.0, %v2814_v22  ;;  %v426_v56 = vsub.f32 0.0, %v414_v49 }
  0x22   : > { %v2572_v54 = vpop.eup %2571  ;;  %2587 = vpow2.f32 %v443_v48  ;;  %v818_v57 = vand.u32 2147483647, %v2853_v46  ;;  %v494_v60 = vsub.f32 0.0, %v2817_v23  ;;  %vm471_vm10 = vcmp.gt.f32.partialorder %v2821_v27, 0.0  ;;  %v2927_v48 = vld [vmem:[%s2840_s24 + $0x2b] sm:$0xff] }
  0x23   : > { %v2574_v58 = vpop.eup %2573  ;;  %v2191_v59 = vadd.f32 -1.0, %v2572_v54  ;;  %2589 = vpow2.f32 %v445_v51  ;;  %v447_v61 = vmul.f32 1.442695, %v425_v52  ;;  %v449_v4 = vmul.f32 1.442695, %v426_v56 }
  0x24   : > { %v2576_v62 = vpop.eup %2575  ;;  %v2192_v63 = vadd.f32 -1.0, %v2574_v58  ;;  %v819_v5 = vand.u32 2147483647, %v2860_v53  ;;  %v828_v7 = vsub.f32 0.0, %v818_v57  ;;  %vm472_vm11 = vcmp.gt.f32.partialorder %v2827_v30, 0.0  ;;  %v2940_v58 = vld [vmem:[%s2840_s24 + $0x33] sm:$0xff] }
  0x25   : > { %v2578_v8 = vpop.eup %2577  ;;  %v499_v9 = vsel %vm463_vm2, %v2191_v59, %v487_v28  ;;  %v2873_v10 = vsel %vm463_vm2, %v2785_v1, %v2191_v59  ;;  %v2195_v12 = vadd.f32 -1.0, %v2576_v62  ;;  %2591 = vpow2.f32 %v447_v61 }
  0x26   : > { %v2580_v14 = vpop.eup %2579  ;;  %v2878_v15 = vsel %vm464_vm3, %v2788_v2, %v2192_v63  ;;  %v500_v16 = vsel %vm464_vm3, %v2192_v63, %v488_v31  ;;  %v2196_v17 = vadd.f32 -1.0, %v2578_v8  ;;  %2593 = vpow2.f32 %v449_v4 }
  0x27   : > { %v2582_v18 = vpop.eup %2581  ;;  %v2465_v19 = vpack.i.bf16 %v500_v16, %v499_v9  ;;  %v503_v1 = vsel %vm467_vm4, %v2195_v12, %v491_v37  ;;  %v2887_v20 = vsel %vm467_vm4, %v2796_v3, %v2195_v12  ;;  %v2889_v21 = vadd.f32 -1.0, %v2580_v14 }
  0x28   : > { %v2897_v2 = vsel %vm468_vm5, %v2801_v6, %v2196_v17  ;;  %v504_v25 = vsel %vm468_vm5, %v2196_v17, %v492_v41  ;;  %v2901_v26 = vadd.f32 -1.0, %v2582_v18  ;;  %v829_v28 = vsub.f32 0.0, %v819_v5  ;;  %v2584_v29 = vpop.eup %2583  ;;  %v2962_v18 = vld [vmem:[%s2840_s24 + $0x3b] sm:$0xff] }
  0x29   : > { %2466 = vrot.lane.b32.xlu0 %v2465_v19, %s2697_s25  ;;  %v2475_v3 = vpack.i.bf16 %v504_v25, %v503_v1  ;;  %v501_v31 = vsel %vm465_vm6, %v2889_v21, %v489_v47  ;;  %v838_v32 = vmul.f32 1.442695, %v828_v7  ;;  %v2586_v6 = vpop.eup %2585  ;;  %v2914_v35 = vadd.f32 -1.0, %v2584_v29 }
  0x2a   : > { %v502_v34 = vsel %vm466_vm7, %v2901_v26, %v490_v50  ;;  %v495_v37 = vsub.f32 0.0, %v2821_v27  ;;  %v840_v38 = vmul.f32 1.442695, %v829_v28  ;;  %v2918_v41 = vadd.f32 -1.0, %v2586_v6  ;;  %v2969_v28 = vld [vmem:[%s2840_s24 + $0x43] sm:$0xff] }
  0x2b   : > { %2476 = vrot.lane.b32.xlu1 %v2475_v3, %s2697_s25  ;;  %v2470_v39 = vpack.i.bf16 %v502_v34, %v501_v31  ;;  %v496_v42 = vsub.f32 0.0, %v2827_v30  ;;  %2595 = vpow2.f32 %v838_v32  ;;  %v505_v44 = vsel %vm469_vm8, %v2914_v35, %v493_v55 }
  0x2c   : > { %v2588_v43 = vpop.eup %2587  ;;  %2597 = vpow2.f32 %v840_v38  ;;  %v820_v45 = vand.u32 2147483647, %v2892_v24  ;;  %v821_v47 = vand.u32 2147483647, %v2909_v33  ;;  %v506_v50 = vsel %vm470_vm9, %v2918_v41, %v494_v60 }
  0x2d   : > { %v2590_v49 = vpop.eup %2589  ;;  %2471 = vrot.lane.b32.xlu0 %v2470_v39, %s2697_s25  ;;  %v2933_v51 = vadd.f32 -1.0, %v2588_v43  ;;  %vm473_vm12 = vcmp.gt.f32.partialorder %v2834_v36, 0.0  ;;  %v497_v52 = vsub.f32 0.0, %v2834_v36  ;;  %v2480_v54 = vpack.i.bf16 %v506_v50, %v505_v44 }
  0x2e   : > { %v2937_v55 = vadd.f32 -1.0, %v2590_v49  ;;  %v830_v56 = vsub.f32 0.0, %v820_v45  ;;  %v831_v57 = vsub.f32 0.0, %v821_v47  ;;  %vm474_vm13 = vcmp.gt.f32.partialorder %v2846_v40, 0.0  ;;  %v2997_v45 = vld [vmem:[%s2840_s24 + $0x53] sm:$0xff] }
  0x2f   : > { %v2592_v59 = vpop.eup %2591  ;;  %v507_v61 = vsel %vm471_vm10, %v2933_v51, %v495_v37  ;;  %v498_v60 = vsub.f32 0.0, %v2846_v40  ;;  %v822_v62 = vand.u32 2147483647, %v2927_v48  ;;  %2481 = vrot.lane.b32.xlu1 %v2480_v54, %s2697_s25  ;;  %v823_v14 = vand.u32 2147483647, %v2940_v58 }
  0x30   : > { %v2594_v63 = vpop.eup %2593  ;;  %v508_v4 = vsel %vm472_vm11, %v2937_v55, %v496_v42  ;;  %v2952_v5 = vadd.f32 -1.0, %v2592_v59  ;;  %v842_v7 = vmul.f32 1.442695, %v830_v56  ;;  %v844_v8 = vmul.f32 1.442695, %v831_v57 }
  0x31   : > { %v2485_v9 = vpack.i.bf16 %v508_v4, %v507_v61  ;;  %v2954_v12 = vadd.f32 -1.0, %v2594_v63  ;;  %v832_v16 = vsub.f32 0.0, %v822_v62  ;;  %vm868_vm14 = vcmp.gt.f32.partialorder %v2853_v46, 0.0 }
  0x32   : > { %v509_v17 = vsel %vm473_vm12, %v2952_v5, %v497_v52  ;;  %2599 = vpow2.f32 %v842_v7  ;;  %v833_v1 = vsub.f32 0.0, %v823_v14  ;;  %v888_v3 = vsub.f32 0.0, %v2853_v46 }
  0x33   : > { %2486 = vrot.lane.b32.xlu0 %v2485_v9, %s2697_s25  ;;  %v510_v19 = vsel %vm474_vm13, %v2954_v12, %v498_v60  ;;  %2601 = vpow2.f32 %v844_v8  ;;  %v846_v25 = vmul.f32 1.442695, %v832_v16  ;;  %v889_v31 = vsub.f32 0.0, %v2860_v53 }
  0x34   : > { %v2490_v29 = vpack.i.bf16 %v510_v19, %v509_v17  ;;  %v2977_v32 = vsel %vm465_vm6, %v2806_v11, %v2889_v21  ;;  %v848_v34 = vmul.f32 1.442695, %v833_v1  ;;  %v2983_v37 = vsel %vm466_vm7, %v2809_v13, %v2901_v26  ;;  %v2992_v21 = vld [vmem:[%s2840_s24 + $0x4b] sm:$0xff] }
  0x35   : > { %v2596_v6 = vpop.eup %2595  ;;  %2603 = vpow2.f32 %v846_v25  ;;  %v824_v38 = vand.u32 2147483647, %v2962_v18  ;;  %vm869_vm15 = vcmp.gt.f32.partialorder %v2860_v53, 0.0  ;;  %v825_v11 = vand.u32 2147483647, %v2969_v28 }
  0x36   : > { %v2598_v39 = vpop.eup %2597  ;;  %2491 = vrot.lane.b32.xlu1 %v2490_v29, %s2697_s25  ;;  %v2987_v42 = vadd.f32 -1.0, %v2596_v6  ;;  %2605 = vpow2.f32 %v848_v34  ;;  %v3006_v47 = vsel %vm469_vm8, %v2814_v22, %v2914_v35  ;;  %v3015_v52 = vsel %vm470_vm9, %v2817_v23, %v2918_v41 }
  0x37   : > { %v2994_v43 = vadd.f32 -1.0, %v2598_v39  ;;  %v834_v44 = vsub.f32 0.0, %v824_v38  ;;  %v835_v26 = vsub.f32 0.0, %v825_v11  ;;  %v826_v54 = vand.u32 2147483647, %v2992_v21 }
  0x38   : > { %v898_v13 = vsel %vm868_vm14, %v2987_v42, %v888_v3  ;;  %v827_v59 = vand.u32 2147483647, %v2997_v45  ;;  %vm870_vm1 = vcmp.gt.f32.partialorder %v2892_v24, 0.0  ;;  %v890_v22 = vsub.f32 0.0, %v2892_v24 }
  0x39   : > { %v899_v49 = vsel %vm869_vm15, %v2994_v43, %v889_v31  ;;  %v850_v50 = vmul.f32 1.442695, %v834_v44  ;;  %v852_v57 = vmul.f32 1.442695, %v835_v26  ;;  %v836_v35 = vsub.f32 0.0, %v826_v54 }
  0x3a   : > { %v2495_v56 = vpack.i.bf16 %v899_v49, %v898_v13  ;;  %v891_v60 = vsub.f32 0.0, %v2909_v33  ;;  %v837_v23 = vsub.f32 0.0, %v827_v59  ;;  %v3027_v41 = vsel %vm471_vm10, %v2821_v27, %v2933_v51 }
  0x3b   : > { %2607 = vpow2.f32 %v850_v50  ;;  %vm871_vm2 = vcmp.gt.f32.partialorder %v2909_v33, 0.0  ;;  %v854_v4 = vmul.f32 1.442695, %v836_v35  ;;  %v3034_v7 = vsel %vm472_vm11, %v2827_v30, %v2937_v55 }
  0x3c   : > { %v2600_v61 = vpop.eup %2599  ;;  %2496 = vrot.lane.b32.xlu1 %v2495_v56, %s2697_s25  ;;  %2609 = vpow2.f32 %v852_v57  ;;  %v892_v9 = vsub.f32 0.0, %v2927_v48  ;;  %v856_v14 = vmul.f32 1.442695, %v837_v23  ;;  %v3041_v27 = vsel %vm473_vm12, %v2834_v36, %v2952_v5 }
  0x3d   : > { %v2602_v62 = vpop.eup %2601  ;;  %v2205_v63 = vadd.f32 -1.0, %v2600_v61  ;;  %vm872_vm3 = vcmp.gt.f32.partialorder %v2927_v48, 0.0  ;;  %2611 = vpow2.f32 %v854_v4  ;;  %v3050_v30 = vsel %vm474_vm13, %v2846_v40, %v2954_v12 }
  0x3e   : > { %v2206_v8 = vadd.f32 -1.0, %v2602_v62  ;;  %v893_v36 = vsub.f32 0.0, %v2940_v58  ;;  %2613 = vpow2.f32 %v856_v14  ;;  %vm873_vm4 = vcmp.gt.f32.partialorder %v2940_v58, 0.0 }
  0x3f   : > { %v2604_v51 = vpop.eup %2603  ;;  %v900_v16 = vsel %vm870_vm1, %v2205_v63, %v890_v22  ;;  %v894_v12 = vsub.f32 0.0, %v2962_v18  ;;  %vm874_vm5 = vcmp.gt.f32.partialorder %v2962_v18, 0.0  ;;  %v895_v31 = vsub.f32 0.0, %v2969_v28 }
  0x40   : > { %v901_v55 = vsel %vm871_vm2, %v2206_v8, %v891_v60  ;;  %v2207_v17 = vadd.f32 -1.0, %v2604_v51  ;;  %v2606_v5 = vpop.eup %2605  ;;  %vm875_vm6 = vcmp.gt.f32.partialorder %v2969_v28, 0.0  ;;  %v896_v11 = vsub.f32 0.0, %v2992_v21 }
  0x41   : > { %v2500_v19 = vpack.i.bf16 %v901_v55, %v900_v16  ;;  %v2208_v1 = vadd.f32 -1.0, %v2606_v5  ;;  %vm876_vm7 = vcmp.gt.f32.partialorder %v2992_v21, 0.0  ;;  %v897_v26 = vsub.f32 0.0, %v2997_v45 }
  0x42   : > { %v902_v25 = vsel %vm872_vm3, %v2207_v17, %v892_v9  ;;  %vm877_vm8 = vcmp.gt.f32.partialorder %v2997_v45, 0.0  ;;  %v3084_v35 = vsel %vm868_vm14, %v2853_v46, %v2987_v42  ;;  %v3090_v61 = vsel %vm869_vm15, %v2860_v53, %v2994_v43  ;;  %v2552_v46 = vld [vmem:[%s3938_s4] sm:$0xff]   ;;  %v2554_v9 = vld [vmem:[%s3937_s3 + $0x8] sm:$0xff]  }
  0x43   : > { %2501 = vrot.lane.b32.xlu1 %v2500_v19, %s2697_s25  ;;  %v903_v40 = vsel %vm873_vm4, %v2208_v1, %v893_v36  ;;  %v3095_v60 = vsel %vm870_vm1, %v2892_v24, %v2205_v63  ;;  %v3100_v23 = vsel %vm871_vm2, %v2909_v33, %v2206_v8  ;;  %v3108_v42 = vsel %vm872_vm3, %v2927_v48, %v2207_v17 }
  0x44   : > { %v2505_v3 = vpack.i.bf16 %v903_v40, %v902_v25  ;;  %v3113_v53 = vsel %vm873_vm4, %v2940_v58, %v2208_v1  ;;  %2318 = vmatpush3.bf16.msra.mxu0 %v2552_v46  ;;  %vm3945_vm9 = vmmov 0   ;;  %vm661_vm10 = vcmask 1042432  }
  0x45   : > { %v2608_v29 = vpop.eup %2607  ;;  %2319 = vmatprep.mubr.msk.bf16.mxu0 %vm3945_vm9, %v2696_v0  ;;  %2351 = vmatprep.mubr.msk.bf16.mxu1 %vm3945_vm9, %v2696_v0  ;;  %vm639_vm11 = vcmask 1046528   ;;  %vm719_vm12 = vcmask 1041408   ;;  %vm578_vm13 = vsmask.f32 7424  ;;  %vm683_vm14 = vsmask.f32 2304 }
  0x46   : > { %v2610_v6 = vpop.eup %2609  ;;  %v2209_v34 = vadd.f32 -1.0, %v2608_v29  ;;  %2371 = vmatprep.subr.bf16.mxu0 %v2696_v0  ;;  %vm741_vm15 = vcmask 130048   ;;  %vm752_vm1 = vcmask 261120   ;;  %vm763_vm2 = vcmask 392192  }
  0x47   : > { %2506 = vrot.lane.b32.xlu1 %v2505_v3, %s2697_s25  ;;  %v2210_v38 = vadd.f32 -1.0, %v2610_v6  ;;  %v2612_v44 = vpop.eup %2611  ;;  %vm774_vm3 = vcmask 523264   ;;  %vm785_vm4 = vcmask 654336  }
  0x48   : > { %v904_v39 = vsel %vm874_vm5, %v2209_v34, %v894_v12  ;;  %v2614_v49 = vpop.eup %2613  ;;  %v2211_v54 = vadd.f32 -1.0, %v2612_v44  ;;  %v3120_v24 = vsel %vm874_vm5, %v2962_v18, %v2209_v34  ;;  %v2553_v18 = vld [vmem:[%s3937_s3] sm:$0xff]   ;;  %vm1095_vm5 = vcmask 785408  }
  0x49   : > { %v905_v13 = vsel %vm875_vm6, %v2210_v38, %v895_v31  ;;  %v2212_v56 = vadd.f32 -1.0, %v2614_v49  ;;  %v3125_v33 = vsel %vm875_vm6, %v2969_v28, %v2210_v38  ;;  %2340 = vmatpush3.bf16.msra.mxu1 %v2553_v18 }
  0x4a   : > { %v2510_v50 = vpack.i.bf16 %v905_v13, %v904_v39  ;;  %v906_v57 = vsel %vm876_vm7, %v2211_v54, %v896_v11  ;;  %v3130_v48 = vsel %vm876_vm7, %v2992_v21, %v2211_v54  ;;  %2341 = vmatprep.subr.bf16.mxu1 %v2696_v0 }
  0x4b   : > { %v907_v59 = vsel %vm877_vm8, %v2212_v56, %v897_v26  ;;  %v3135_v58 = vsel %vm877_vm8, %v2997_v45, %v2212_v56 }
  0x4c   : > { %2511 = vrot.lane.b32.xlu1 %v2510_v50, %s2697_s25  ;;  %v2515_v22 = vpack.i.bf16 %v907_v59, %v906_v57 }
  0x4d   : > { %2342 = vmatpush3.bf16.msra.mxu1 %v2554_v9 }
  0x4e   : > { %2343 = vmatprep.subr.bf16.mxu1 %v2696_v0 }
  0x50   : > { %2516 = vrot.lane.b32.xlu1 %v2515_v22, %s2697_s25 }
  0x9b   : > { %v2467_v28 = vpop.permute.xlu0 %2466 }
  0x9c   : > { %v2469_v43 = vunpack.i.h.bf16 %v2467_v28  ;;  %v2468_v62 = vunpack.i.l.bf16 %v2467_v28 }
  0x9d   : > { %v2477_v21 = vpop.permute.xlu1 %2476 }
  0x9e   : > { %v561_v45 = vsel %vm559_vm0, %v2878_v15, %v2469_v43  ;;  %v560_v63 = vsel %vm559_vm0, %v2873_v10, %v2468_v62  ;;  %v2479_v4 = vunpack.i.h.bf16 %v2477_v21  ;;  %v2478_v8 = vunpack.i.l.bf16 %v2477_v21 }
  0x9f   : > { %v3151_v14 = vpack.c.bf16 %v561_v45, %v560_v63  ;;  %v2472_v51 = vpop.permute.xlu0 %2471 }
  0xa0   : > { %v565_v16 = vsel %vm559_vm0, %v2897_v2, %v2479_v4  ;;  %v564_v55 = vsel %vm559_vm0, %v2887_v20, %v2478_v8  ;;  %v2474_v17 = vunpack.i.h.bf16 %v2472_v51  ;;  %v2473_v15 = vunpack.i.l.bf16 %v2472_v51  ;;  %v2555_v2 = vld [vmem:[%s3937_s3 + $0x10] sm:$0xff]   ;;  %v2558_v4 = vld [vmem:[%s3937_s3 + $0x28] sm:$0xff]  }
  0xa1   : > { %v3157_v36 = vpack.c.bf16 %v565_v16, %v564_v55  ;;  %v2482_v19 = vpop.permute.xlu1 %2481  ;;  %v662_v40 = vrot.slane %v3151_v14, 5  ;;  %v640_v12 = vrot.slane %v3151_v14, 1  ;;  %2344 = vmatpush3.bf16.msra.mxu1 %v2555_v2  ;;  %v720_v57 = vrot.slane %v3151_v14, 6 }
  0xa2   : > { %v563_v10 = vsel %vm559_vm0, %v2983_v37, %v2474_v17  ;;  %v562_v5 = vsel %vm559_vm0, %v2977_v32, %v2473_v15  ;;  %v2484_v20 = vunpack.i.h.bf16 %v2482_v19  ;;  %v2483_v25 = vunpack.i.l.bf16 %v2482_v19  ;;  %2345 = vmatprep.subr.bf16.mxu1 %v2696_v0 }
  0xa3   : > { %v3167_v1 = vpack.c.bf16 %v563_v10, %v562_v5  ;;  %v665_v39 = vrot.slane %v3157_v36, 5  ;;  %v643_v59 = vrot.slane %v3157_v36, 1  ;;  %v582_v62 = vshll.u32 %v3151_v14, 16 }
  0xa4   : > { %v567_v37 = vsel %vm559_vm0, %v3015_v52, %v2484_v20  ;;  %v566_v32 = vsel %vm559_vm0, %v3006_v47, %v2483_v25  ;;  %v2556_v52 = vld [vmem:[%s3937_s3 + $0x18] sm:$0xff]   ;;  %v723_v45 = vrot.slane %v3157_v36, 6  ;;  %v580_v9 = vshrl.u32 %v3151_v14, 16 }
  0xa5   : > { %v2487_v29 = vpop.permute.xlu0 %2486  ;;  %v663_v3 = vrot.slane %v3167_v1, 5  ;;  %v641_v31 = vrot.slane %v3167_v1, 1  ;;  %v3178_v6 = vpack.c.bf16 %v567_v37, %v566_v32  ;;  %v721_v44 = vrot.slane %v3167_v1, 6  ;;  %2346 = vmatpush3.bf16.msra.mxu1 %v2556_v52 }
  0xa6   : > { %v2489_v34 = vunpack.i.h.bf16 %v2487_v29  ;;  %v2488_v38 = vunpack.i.l.bf16 %v2487_v29  ;;  %2347 = vmatprep.subr.bf16.mxu1 %v2696_v0  ;;  %v587_v8 = vshll.u32 %v3167_v1, 16  ;;  %v584_v51 = vrot.slane %v582_v62, 1 }
  0xa7   : > { %v664_v11 = vsel %vm661_vm10, %v662_v40, %v663_v3  ;;  %v642_v47 = vsel %vm639_vm11, %v640_v12, %v641_v31  ;;  %v722_v18 = vsel %vm719_vm12, %v720_v57, %v721_v44  ;;  %v667_v28 = vrot.slane %v3178_v6, 5 }
  0xa8   : > { %v569_v13 = vsel %vm559_vm0, %v3034_v7, %v2489_v34  ;;  %v568_v26 = vsel %vm559_vm0, %v3027_v41, %v2488_v38  ;;  %673 = vrot.lane.b32.xlu0 %v664_v11, %s2699_s17  ;;  %651 = vrot.lane.b32.xlu1 %v642_v47, %s2700_s19  ;;  %v2492_v49 = vpop.permute.xlu1 %2491  ;;  %v666_v7 = vsel %vm661_vm10, %v663_v3, %v665_v39  ;;  %v2557_v41 = vld [vmem:[%s3937_s3 + $0x20] sm:$0xff]   ;;  %v591_v16 = vshrl.u32 %v3167_v1, 16 }
  0xa9   : > { %v3193_v50 = vpack.c.bf16 %v569_v13, %v568_v26  ;;  %v2494_v54 = vunpack.i.h.bf16 %v2492_v49  ;;  %v2493_v56 = vunpack.i.l.bf16 %v2492_v49  ;;  %2348 = vmatpush3.bf16.msra.mxu1 %v2557_v41  ;;  %v724_v17 = vsel %vm719_vm12, %v721_v44, %v723_v45 }
  0xaa   : > { %2349 = vmatprep.subr.bf16.mxu1 %v2696_v0  ;;  %v645_v10 = vrot.slane %v3178_v6, 1  ;;  %v725_v5 = vrot.slane %v3178_v6, 6  ;;  %v589_v2 = vrot.slane %v587_v8, 1  ;;  %v684_v25 = vrot.slane %v580_v9, 5 }
  0xab   : > { %v571_v22 = vsel %vm559_vm0, %v3050_v30, %v2494_v54  ;;  %v570_v46 = vsel %vm559_vm0, %v3041_v27, %v2493_v56  ;;  %v668_v30 = vsel %vm661_vm10, %v665_v39, %v667_v28  ;;  %v644_v27 = vsel %vm639_vm11, %v641_v31, %v643_v59 }
  0xac   : > { %v3208_v43 = vpack.c.bf16 %v571_v22, %v570_v46  ;;  %675 = vrot.lane.b32.xlu0 %v666_v7, %s2699_s17  ;;  %731 = vrot.lane.b32.xlu1 %v722_v18, %s2701_s23  ;;  %v669_v21 = vrot.slane %v3193_v50, 5  ;;  %v647_v19 = vrot.slane %v3193_v50, 1  ;;  %v687_v40 = vrot.slane %v591_v16, 5 }
  0xad   : > { %2350 = vmatpush3.bf16.msra.mxu1 %v2558_v4  ;;  %v688_v12 = vrot.slane %v587_v8, 6  ;;  %v646_v32 = vsel %vm639_vm11, %v643_v59, %v645_v10  ;;  %v585_v29 = vor.u32 %v584_v51, %v580_v9  ;;  %v685_v3 = vrot.slane %v582_v62, 6 }
  0xae   : > { %v2497_v63 = vpop.permute.xlu1 %2496  ;;  %v670_v55 = vsel %vm661_vm10, %v667_v28, %v669_v21  ;;  %v671_v15 = vrot.slane %v3208_v43, 5  ;;  %2435 = vmatprep.subr.bf16.mxu1 %v2696_v0  ;;  %v726_v31 = vsel %vm719_vm12, %v723_v45, %v725_v5  ;;  %v648_v34 = vsel %vm639_vm11, %v645_v10, %v647_v19 }
  0xaf   : > { %v590_v38 = vsel %vm578_vm13, %v585_v29, %v589_v2  ;;  %v727_v39 = vrot.slane %v3193_v50, 6  ;;  %v595_v52 = vshll.u32 %v3157_v36, 16  ;;  %v2499_v11 = vunpack.i.h.bf16 %v2497_v63 }
  0xb0   : > { %677 = vrot.lane.b32.xlu0 %v668_v30, %s2699_s17  ;;  %653 = vrot.lane.b32.xlu1 %v644_v27, %s2700_s19  ;;  %v672_v37 = vsel %vm661_vm10, %v669_v21, %v671_v15  ;;  %v689_v44 = vor.u32 %v688_v12, %v687_v40  ;;  %v2498_v13 = vunpack.i.l.bf16 %v2497_v63  ;;  %v686_v54 = vor.u32 %v685_v3, %v684_v25 }
  0xb1   : > { %v599_v56 = vshrl.u32 %v3157_v36, 16  ;;  %v949_v57 = vsel %vm559_vm0, %v3090_v61, %v2499_v11  ;;  %v593_v59 = vor.u32 %v591_v16, %v589_v2  ;;  %v597_v18 = vrot.slane %v595_v52, 1 }
  0xb2   : > { %v948_v41 = vsel %vm559_vm0, %v3084_v35, %v2498_v13  ;;  %v690_v30 = vsel %vm683_vm14, %v686_v54, %v689_v44  ;;  %v692_v27 = vrot.slane %v595_v52, 6  ;;  %v649_v9 = vrot.slane %v3208_v43, 1  ;;  %v394_v54 = vld [vmem:[%s3936_s2 + $0x8] sm:$0xff] }
  0xb3   : > { %v958_v28 = vpack.c.bf16 %v949_v57, %v948_v41  ;;  %v691_v63 = vrot.slane %v599_v56, 5  ;;  %v603_v51 = vshll.u32 %v3178_v6, 16  ;;  %v607_v16 = vshrl.u32 %v3178_v6, 16 }
  0xb4   : > { %679 = vrot.lane.b32.xlu0 %v670_v55, %s2699_s17  ;;  %733 = vrot.lane.b32.xlu1 %v724_v17, %s2701_s23  ;;  %v598_v15 = vsel %vm578_vm13, %v593_v59, %v597_v18  ;;  %v729_v25 = vrot.slane %v3208_v43, 6  ;;  %v2704_v57 = vmov 0  }
  0xb5   : > { %v2502_v20 = vpop.permute.xlu1 %2501  ;;  %2320 = vmatmul.mubr.msk.bf16.vlgmr.msra.gmra.mrb[0].mxu0 %vm741_vm15, %v958_v28  ;;  %v693_v10 = vor.u32 %v692_v27, %v691_v63  ;;  %v605_v40 = vrot.slane %v603_v51, 1  ;;  %v695_v29 = vrot.slane %v607_v16, 5  ;;  %v696_v3 = vrot.slane %v603_v51, 6  ;;  %2521 = vset.pattern.permute.xlu1 %v2704_v57  ;;  %v397_v28 = vld [vmem:[%s3936_s2 + $0x20] sm:$0xff]  ;;  %v402_v63 = vld [vmem:[%s3936_s2 + $0x48] sm:$0xff] }
  0xb6   : > { %v2504_v26 = vunpack.i.h.bf16 %v2502_v20  ;;  %v2503_v49 = vunpack.i.l.bf16 %v2502_v20  ;;  %2323 = vmatprep.mubr.msk.bf16.mxu0 %vm3945_vm9, %v2696_v0  ;;  %v650_v20 = vsel %vm639_vm11, %v647_v19, %v649_v9  ;;  %2520 = vset.pattern.permute.xlu0 %v2704_v57  ;;  %v401_v27 = vld [vmem:[%s3936_s2 + $0x40] sm:$0xff] }
  0xb7   : > { %v697_v19 = vor.u32 %v696_v3, %v695_v29 }
  0xb8   : > { %681 = vrot.lane.b32.xlu0 %v672_v37, %s2699_s17  ;;  %655 = vrot.lane.b32.xlu1 %v646_v32, %s2700_s19  ;;  %v951_v22 = vsel %vm559_vm0, %v3100_v23, %v2504_v26  ;;  %v950_v62 = vsel %vm559_vm0, %v3095_v60, %v2503_v49  ;;  %v728_v60 = vsel %vm719_vm12, %v725_v5, %v727_v39  ;;  %v703_v49 = vshrl.u32 %v3208_v43, 16 }
  0xb9   : > { %v2507_v47 = vpop.permute.xlu1 %2506  ;;  %v959_v21 = vpack.c.bf16 %v951_v22, %v950_v62  ;;  %v694_v37 = vsel %vm683_vm14, %v689_v44, %v693_v10  ;;  %v601_v32 = vor.u32 %v599_v56, %v597_v18  ;;  %v698_v52 = vsel %vm683_vm14, %v693_v10, %v697_v19 }
  0xba   : > { %v2509_v7 = vunpack.i.h.bf16 %v2507_v47  ;;  %v2508_v46 = vunpack.i.l.bf16 %v2507_v47  ;;  %v705_v41 = vrot.slane %v703_v49, 5 }
  0xbc   : > { %735 = vrot.lane.b32.xlu1 %v726_v31, %s2701_s23  ;;  %623 = vrot.lane.b32.xlu0 %v590_v38, %s2702_s27  ;;  %v953_v61 = vsel %vm559_vm0, %v3113_v53, %v2509_v7  ;;  %v952_v45 = vsel %vm559_vm0, %v3108_v42, %v2508_v46  ;;  %v611_v31 = vshll.u32 %v3193_v50, 16  ;;  %v609_v38 = vor.u32 %v607_v16, %v605_v40 }
  0xbd   : > { %v960_v4 = vpack.c.bf16 %v953_v61, %v952_v45  ;;  %2324 = vmatmul.mubr.msk.bf16.gmra.mrb[4].mxu0 %vm741_vm15, %v959_v21  ;;  %v399_v61 = vld [vmem:[%s3936_s2 + $0x30] sm:$0xff]  ;;  %v396_v21 = vld [vmem:[%s3936_s2 + $0x18] sm:$0xff]  ;;  %v398_v45 = vld [vmem:[%s3936_s2 + $0x28] sm:$0xff] }
  0xbe   : > { %v2512_v35 = vpop.permute.xlu1 %2511  ;;  %2327 = vmatprep.mubr.msk.bf16.mxu0 %vm3945_vm9, %v2696_v0  ;;  %v613_v11 = vrot.slane %v611_v31, 1  ;;  %v700_v44 = vrot.slane %v611_v31, 6 }
  0xbf   : > { %v2514_v23 = vunpack.i.h.bf16 %v2512_v35  ;;  %v2513_v8 = vunpack.i.l.bf16 %v2512_v35  ;;  %v400_v35 = vld [vmem:[%s3936_s2 + $0x38] sm:$0xff] }
  0xc0   : > { %657 = vrot.lane.b32.xlu1 %v648_v34, %s2700_s19  ;;  %709 = vrot.lane.b32.xlu0 %v690_v30, %s2703_s28  ;;  %v615_v34 = vshrl.u32 %v3193_v50, 16  ;;  %v614_v13 = vsel %vm578_vm13, %v609_v38, %v613_v11  ;;  %v393_v30 = vld [vmem:[%s3936_s2] sm:$0xff] }
  0xc1   : > { %v955_v53 = vsel %vm559_vm0, %v3125_v33, %v2514_v23  ;;  %v954_v42 = vsel %vm559_vm0, %v3120_v24, %v2513_v8 }
  0xc2   : > { %v961_v55 = vpack.c.bf16 %v955_v53, %v954_v42  ;;  %v2517_v17 = vpop.permute.xlu1 %2516  ;;  %v699_v47 = vrot.slane %v615_v34, 5  ;;  %v617_v59 = vor.u32 %v615_v34, %v613_v11 }
  0xc3   : > { %v2519_v5 = vunpack.i.h.bf16 %v2517_v17  ;;  %v2518_v2 = vunpack.i.l.bf16 %v2517_v17 }
  0xc4   : > { %737 = vrot.lane.b32.xlu1 %v728_v60, %s2701_s23  ;;  %625 = vrot.lane.b32.xlu0 %v598_v15, %s2702_s27  ;;  %v701_v26 = vor.u32 %v700_v44, %v699_v47 }
  0xc5   : > { %v957_v24 = vsel %vm559_vm0, %v3135_v58, %v2519_v5  ;;  %v956_v33 = vsel %vm559_vm0, %v3130_v48, %v2518_v2  ;;  %v730_v48 = vsel %vm719_vm12, %v727_v39, %v729_v25  ;;  %v606_v58 = vsel %vm578_vm13, %v601_v32, %v605_v40  ;;  %2328 = vmatmul.mubr.msk.bf16.gmra.mrb[8].mxu0 %vm741_vm15, %v960_v4 }
  0xc6   : > { %v962_v12 = vpack.c.bf16 %v957_v24, %v956_v33  ;;  %2331 = vmatprep.mubr.msk.bf16.mxu0 %vm3945_vm9, %v2696_v0  ;;  %v619_v39 = vshll.u32 %v3208_v43, 16  ;;  %v702_v7 = vsel %vm683_vm14, %v697_v19, %v701_v26  ;;  %v395_v43 = vld [vmem:[%s3936_s2 + $0x10] sm:$0xff] }
  0xc8   : > { %659 = vrot.lane.b32.xlu1 %v650_v20, %s2700_s19  ;;  %711 = vrot.lane.b32.xlu0 %v694_v37, %s2703_s28  ;;  %v621_v56 = vrot.slane %v619_v39, 1  ;;  %v706_v22 = vrot.slane %v619_v39, 6 }
  0xca   : > { %v622_v46 = vsel %vm578_vm13, %v617_v59, %v621_v56  ;;  %v707_v18 = vor.u32 %v706_v22, %v705_v41 }
  0xcc   : > { %739 = vrot.lane.b32.xlu1 %v730_v48, %s2701_s23  ;;  %627 = vrot.lane.b32.xlu0 %v606_v58, %s2702_s27  ;;  %v708_v62 = vsel %vm683_vm14, %v701_v26, %v707_v18 }
  0xcd   : > { %2332 = vmatmul.mubr.msk.bf16.gmra.mrb[12].mxu0 %vm741_vm15, %v961_v55 }
  0xce   : > { %2335 = vmatprep.mubr.msk.bf16.mxu0 %vm3945_vm9, %v2696_v0 }
  0xd0   : > { %713 = vrot.lane.b32.xlu0 %v698_v52, %s2703_s28  ;;  %1203 = vperm.xlu1 %2521, %v394_v54  }
  0xd4   : > { %629 = vrot.lane.b32.xlu0 %v614_v13, %s2702_s27  ;;  %1208 = vperm.xlu1 %2521, %v395_v43  }
  0xd5   : > { %2336 = vmatmul.mubr.msk.bf16.gmra.mrb[16].mxu0 %vm741_vm15, %v962_v12 }
  0xd6   : > { %2383 = vmatprep.mubr.msk.bf16.mxu0 %vm3945_vm9, %v2696_v0 }
  0xd8   : > { %715 = vrot.lane.b32.xlu0 %v702_v7, %s2703_s28  ;;  %1218 = vperm.xlu1 %2521, %v397_v28  }
  0xdc   : > { %631 = vrot.lane.b32.xlu0 %v622_v46, %s2702_s27  ;;  %1228 = vperm.xlu1 %2521, %v399_v61  }
  0xe0   : > { %717 = vrot.lane.b32.xlu0 %v708_v62, %s2703_s28  ;;  %1238 = vperm.xlu1 %2521, %v401_v27  }
  0xe4   : > { %1198 = vperm.xlu0 %2520, %v393_v30  }
  0xe8   : > { %1213 = vperm.xlu0 %2520, %v396_v21  }
  0xec   : > { %1223 = vperm.xlu0 %2520, %v398_v45  }
  0xf0   : > { %1233 = vperm.xlu0 %2520, %v400_v35  }
  0xf4   : > { %1243 = vperm.xlu0 %2520, %v402_v63  }
 0x11a   : > { %v674_v4 = vpop.permute.xlu0 %673  ;;  %v652_v23 = vpop.permute.xlu1 %651 }
 0x11e   : > { %v676_v8 = vpop.permute.xlu0 %675  ;;  %v732_v53 = vpop.permute.xlu1 %731 }
 0x122   : > { %v678_v60 = vpop.permute.xlu0 %677  ;;  %v654_v9 = vpop.permute.xlu1 %653 }
 0x126   : > { %v680_v42 = vpop.permute.xlu0 %679  ;;  %v734_v55 = vpop.permute.xlu1 %733 }
 0x12a   : > { %v682_v51 = vpop.permute.xlu0 %681  ;;  %v656_v33 = vpop.permute.xlu1 %655 }
 0x12e   : > { %v624_v16 = vpop.permute.xlu0 %623  ;;  %v736_v37 = vpop.permute.xlu1 %735 }
 0x12f   : > { %v743_v17 = vsel %vm741_vm15, %v3151_v14, %v624_v16  ;;  %v3409_v16 = vld [vmem:[%s3939_s5] ss:$0 sm:$0xff] }
 0x130   : > { %v754_v15 = vsel %vm752_vm1, %v743_v17, %v652_v23 }
 0x131   : > { %v765_v10 = vsel %vm763_vm2, %v754_v15, %v674_v4 }
 0x132   : > { %v710_v5 = vpop.permute.xlu0 %709  ;;  %v658_v58 = vpop.permute.xlu1 %657 }
 0x133   : > { %v776_v2 = vsel %vm774_vm3, %v765_v10, %v710_v5 }
 0x134   : > { %v787_v24 = vsel %vm785_vm4, %v776_v2, %v732_v53 }
 0x135   : > { %2352 = vmatmul.mubr.msk.bf16.vlgmr.msra.gmra.mrb[0].mxu1 %vm1095_vm5, %v787_v24 }
 0x136   : > { %v626_v20 = vpop.permute.xlu0 %625  ;;  %2355 = vmatprep.mubr.msk.bf16.mxu1 %vm3945_vm9, %v2696_v0  ;;  %v738_v11 = vpop.permute.xlu1 %737 }
 0x137   : > { %v745_v14 = vsel %vm741_vm15, %v3167_v1, %v626_v20 }
 0x138   : > { %v756_v25 = vsel %vm752_vm1, %v745_v14, %v654_v9 }
 0x139   : > { %v767_v40 = vsel %vm763_vm2, %v756_v25, %v676_v8 }
 0x13a   : > { %v712_v12 = vpop.permute.xlu0 %711  ;;  %v660_v49 = vpop.permute.xlu1 %659 }
 0x13b   : > { %v778_v32 = vsel %vm774_vm3, %v767_v40, %v712_v12 }
 0x13c   : > { %v789_v29 = vsel %vm785_vm4, %v778_v32, %v734_v55 }
 0x13d   : > { %2356 = vmatmul.mubr.msk.bf16.gmra.mrb[4].mxu1 %vm1095_vm5, %v789_v29 }
 0x13e   : > { %v628_v3 = vpop.permute.xlu0 %627  ;;  %2359 = vmatprep.mubr.msk.bf16.mxu1 %vm3945_vm9, %v2696_v0  ;;  %v740_v59 = vpop.permute.xlu1 %739 }
 0x13f   : > { %v747_v48 = vsel %vm741_vm15, %v3157_v36, %v628_v3 }
 0x140   : > { %v758_v1 = vsel %vm752_vm1, %v747_v48, %v656_v33 }
 0x141   : > { %v769_v19 = vsel %vm763_vm2, %v758_v1, %v678_v60 }
 0x142   : > { %v714_v31 = vpop.permute.xlu0 %713 }
 0x143   : > { %v780_v34 = vsel %vm774_vm3, %v769_v19, %v714_v31 }
 0x144   : > { %v791_v38 = vsel %vm785_vm4, %v780_v34, %v736_v37 }
 0x145   : > { %2360 = vmatmul.mubr.msk.bf16.gmra.mrb[8].mxu1 %vm1095_vm5, %v791_v38 }
 0x146   : > { %v630_v52 = vpop.permute.xlu0 %629  ;;  %2363 = vmatprep.mubr.msk.bf16.mxu1 %vm3945_vm9, %v2696_v0 }
 0x147   : > { %v749_v36 = vsel %vm741_vm15, %v3178_v6, %v630_v52 }
 0x148   : > { %v760_v47 = vsel %vm752_vm1, %v749_v36, %v658_v58 }
 0x149   : > { %v771_v44 = vsel %vm763_vm2, %v760_v47, %v680_v42 }
 0x14a   : > { %v716_v39 = vpop.permute.xlu0 %715 }
 0x14b   : > { %v782_v13 = vsel %vm774_vm3, %v771_v44, %v716_v39 }
 0x14c   : > { %v793_v26 = vsel %vm785_vm4, %v782_v13, %v738_v11 }
 0x14d   : > { %2364 = vmatmul.mubr.msk.bf16.gmra.mrb[12].mxu1 %vm1095_vm5, %v793_v26 }
 0x14e   : > { %v632_v54 = vpop.permute.xlu0 %631  ;;  %2367 = vmatprep.mubr.msk.bf16.mxu1 %vm3945_vm9, %v2696_v0 }
 0x14f   : > { %v751_v56 = vsel %vm741_vm15, %v3193_v50, %v632_v54  ;;  %v3416_v14 = vpop.permute.xlu1 %1203 }
 0x150   : > { %v762_v6 = vsel %vm752_vm1, %v751_v56, %v660_v49 }
 0x151   : > { %v773_v57 = vsel %vm763_vm2, %v762_v6, %v682_v51 }
 0x152   : > { %v718_v7 = vpop.permute.xlu0 %717 }
 0x153   : > { %v784_v41 = vsel %vm774_vm3, %v773_v57, %v718_v7  ;;  %v3427_v38 = vpop.permute.xlu1 %1208 }
 0x154   : > { %v795_v22 = vsel %vm785_vm4, %v784_v41, %v740_v59 }
 0x155   : > { %2368 = vmatmul.mubr.msk.bf16.gmra.mrb[16].mxu1 %vm1095_vm5, %v795_v22 }
 0x156   : > { %2419 = vmatprep.mubr.msk.bf16.mxu1 %vm3945_vm9, %v2696_v0 }
 0x163   : > { %v3412_v24 = vpop.permute.xlu0 %1198 }
 0x167   : > { %v3432_v44 = vpop.permute.xlu0 %1213 }
 0x188   : > { %v1020_v43 = vpop.f32.mrb[0].mxu0 }
 0x189   : > { %v2321_v46 = vpop.f32.mrb[1].mxu0 }
 0x18a   : > { %v1023_v18 = vpop.f32.mrb[2].mxu0 }
 0x18b   : > { %v2322_v28 = vpop.f32.mrb[3].mxu0 }
 0x190   : > { %v1028_v50 = vpop.f32.mrb[4].mxu0 }
 0x191   : > { %v2325_v62 = vpop.f32.mrb[5].mxu0 }
 0x192   : > { %v1031_v61 = vpop.f32.mrb[6].mxu0 }
 0x193   : > { %v2326_v30 = vpop.f32.mrb[7].mxu0 }
 0x198   : > { %v1036_v27 = vpop.f32.mrb[8].mxu0 }
 0x199   : > { %v2329_v21 = vpop.f32.mrb[9].mxu0 }
 0x19a   : > { %v1039_v45 = vpop.f32.mrb[10].mxu0  ;;  %v3448_v21 = vpop.permute.xlu0 %1223 }
 0x19b   : > { %v2330_v35 = vpop.f32.mrb[11].mxu0 }
 0x1a0   : > { %v3398_v63 = vpop.f32.mrb[12].mxu0 }
 0x1a1   : > { %v2333_v4 = vpop.f32.mrb[13].mxu0 }
 0x1a2   : > { %v3400_v23 = vpop.f32.mrb[14].mxu0 }
 0x1a3   : > { %v2334_v8 = vpop.f32.mrb[15].mxu0 }
 0x1a8   : > { %v3402_v60 = vpop.f32.mrb[16].mxu0 }
 0x1a9   : > { %v2337_v53 = vpop.f32.mrb[17].mxu0 }
 0x1aa   : > { %v3404_v42 = vpop.f32.mrb[18].mxu0 }
 0x1ab   : > { %v2338_v9 = vpop.f32.mrb[19].mxu0 }
 0x208   : > { %v1140_v51 = vpop.f32.mrb[0].mxu1 }
 0x209   : > { %v1141_v55 = vadd.f32 %v1140_v51, %v1020_v43  ;;  %v2353_v17 = vpop.f32.mrb[1].mxu1 }
 0x20a   : > { %v1143_v15 = vpop.f32.mrb[2].mxu1 }
 0x20b   : > { %v1186_v10 = vadd.f32 %v3409_v16, %v1141_v55  ;;  %v1144_v5 = vadd.f32 %v1143_v15, %v1023_v18  ;;  %v2354_v2 = vpop.f32.mrb[3].mxu1 }
 0x20d   : > { %v1246_v33 = vmul.f32 %v3412_v24, %v1186_v10  ;;  %v1187_v20 = vadd.f32 %v3409_v16, %v1144_v5 }
 0x20f   : > { %v1267_v25 = vrot.slane %v1246_v33, 5  ;;  %v1247_v40 = vmul.f32 %v3416_v14, %v1187_v20 }
 0x210   : > { %v1148_v12 = vpop.f32.mrb[4].mxu1 }
 0x211   : > { %v3420_v37 = vsel %vm661_vm10, 0.0, %v1267_v25  ;;  %v1268_v32 = vrot.slane %v1247_v40, 5  ;;  %v1149_v29 = vadd.f32 %v1148_v12, %v1028_v50  ;;  %v2357_v3 = vpop.f32.mrb[5].mxu1  ;;  %v3443_v50 = vpop.permute.xlu1 %1218 }
 0x212   : > { %v1299_v48 = vand.u32 2147483647, %v3420_v37  ;;  %v1151_v1 = vpop.f32.mrb[6].mxu1  ;;  %v1376_v33 = vsub.f32 0.0, %v3420_v37  ;;  %vm1354_vm6 = vcmp.gt.f32.partialorder %v3420_v37, 0.0 }
 0x213   : > { %v3424_v58 = vsel %vm661_vm10, %v1267_v25, %v1268_v32  ;;  %v1188_v19 = vadd.f32 %v3409_v16, %v1149_v29  ;;  %v1152_v31 = vadd.f32 %v1151_v1, %v1031_v61  ;;  %v2358_v34 = vpop.f32.mrb[7].mxu1 }
 0x214   : > { %v1310_v52 = vsub.f32 0.0, %v1299_v48  ;;  %v1300_v11 = vand.u32 2147483647, %v3424_v58  ;;  %vm1355_vm7 = vcmp.gt.f32.partialorder %v3424_v58, 0.0 }
 0x215   : > { %v1248_v36 = vmul.f32 %v3427_v38, %v1188_v19  ;;  %v1189_v47 = vadd.f32 %v3409_v16, %v1152_v31  ;;  %v3462_v3 = vpop.permute.xlu1 %1228 }
 0x216   : > { %v1321_v39 = vmul.f32 1.442695, %v1310_v52  ;;  %v1311_v13 = vsub.f32 0.0, %v1300_v11  ;;  %v3469_v52 = vpop.permute.xlu0 %1233 }
 0x217   : > { %v1270_v26 = vrot.slane %v1248_v36, 5  ;;  %v1249_v49 = vmul.f32 %v3432_v44, %v1189_v47 }
 0x218   : > { %v1156_v54 = vpop.f32.mrb[8].mxu1  ;;  %2615 = vpow2.f32 %v1321_v39  ;;  %v1323_v56 = vmul.f32 1.442695, %v1311_v13 }
 0x219   : > { %v3436_v6 = vsel %vm661_vm10, %v1268_v32, %v1270_v26  ;;  %v1272_v57 = vrot.slane %v1249_v49, 5  ;;  %v1157_v7 = vadd.f32 %v1156_v54, %v1036_v27  ;;  %v2361_v59 = vpop.f32.mrb[9].mxu1 }
 0x21a   : > { %v1301_v41 = vand.u32 2147483647, %v3436_v6  ;;  %v1159_v22 = vpop.f32.mrb[10].mxu1  ;;  %2617 = vpow2.f32 %v1323_v56  ;;  %v1377_v59 = vsub.f32 0.0, %v3424_v58  ;;  %vm1356_vm8 = vcmp.gt.f32.partialorder %v3436_v6, 0.0 }
 0x21b   : > { %v3440_v43 = vsel %vm661_vm10, %v1270_v26, %v1272_v57  ;;  %v1190_v46 = vadd.f32 %v3409_v16, %v1157_v7  ;;  %v1160_v18 = vadd.f32 %v1159_v22, %v1039_v45  ;;  %v2362_v28 = vpop.f32.mrb[11].mxu1 }
 0x21c   : > { %v1302_v62 = vand.u32 2147483647, %v3440_v43  ;;  %v1312_v61 = vsub.f32 0.0, %v1301_v41 }
 0x21d   : > { %v1250_v30 = vmul.f32 %v3443_v50, %v1190_v46  ;;  %v1191_v27 = vadd.f32 %v3409_v16, %v1160_v18  ;;  %v1378_v18 = vsub.f32 0.0, %v3436_v6 }
 0x21e   : > { %v1325_v35 = vmul.f32 1.442695, %v1312_v61  ;;  %v1313_v4 = vsub.f32 0.0, %v1302_v62 }
 0x21f   : > { %v1274_v8 = vrot.slane %v1250_v30, 5  ;;  %v1251_v53 = vmul.f32 %v3448_v21, %v1191_v27 }
 0x220   : > { %v1164_v9 = vpop.f32.mrb[12].mxu1  ;;  %2619 = vpow2.f32 %v1325_v35  ;;  %v1327_v45 = vmul.f32 1.442695, %v1313_v4  ;;  %v3495_v35 = vpop.permute.xlu1 %1238 }
 0x221   : > { %v3452_v51 = vsel %vm661_vm10, %v1272_v57, %v1274_v8  ;;  %v1276_v55 = vrot.slane %v1251_v53, 5  ;;  %v1165_v17 = vadd.f32 %v1164_v9, %v3398_v63  ;;  %v2365_v15 = vpop.f32.mrb[13].mxu1 }
 0x222   : > { %v2616_v10 = vpop.eup %2615  ;;  %v1303_v5 = vand.u32 2147483647, %v3452_v51  ;;  %v1167_v2 = vpop.f32.mrb[14].mxu1  ;;  %2621 = vpow2.f32 %v1327_v45 }
 0x223   : > { %v3458_v20 = vsel %vm661_vm10, %v1274_v8, %v1276_v55  ;;  %v1192_v25 = vadd.f32 %v3409_v16, %v1165_v17  ;;  %v1168_v40 = vadd.f32 %v1167_v2, %v3400_v23  ;;  %v2366_v12 = vpop.f32.mrb[15].mxu1  ;;  %v2231_v32 = vadd.f32 -1.0, %v2616_v10  ;;  %v3505_v17 = vpop.permute.xlu0 %1243 }
 0x224   : > { %v2618_v29 = vpop.eup %2617  ;;  %v1304_v63 = vand.u32 2147483647, %v3458_v20  ;;  %v1314_v48 = vsub.f32 0.0, %v1303_v5 }
 0x225   : > { %v1252_v1 = vmul.f32 %v3462_v3, %v1192_v25  ;;  %v1193_v19 = vadd.f32 %v3409_v16, %v1168_v40  ;;  %v1387_v31 = vsel %vm1354_vm6, %v2231_v32, %v1376_v33  ;;  %v2232_v34 = vadd.f32 -1.0, %v2618_v29 }
 0x226   : > { %v2522_v23 = vpack.i.bf16 %v1387_v31, %v2696_v0  ;;  %v1329_v11 = vmul.f32 1.442695, %v1314_v48  ;;  %v1315_v36 = vsub.f32 0.0, %v1304_v63  ;;  %v3473_v47 = vsel %vm1354_vm6, %v3420_v37, %v2231_v32 }
 0x227   : > { %v1278_v39 = vrot.slane %v1252_v1, 5  ;;  %v1253_v13 = vmul.f32 %v3469_v52, %v1193_v19  ;;  %v3479_v26 = vsel %vm1355_vm7, %v3424_v58, %v2232_v34  ;;  %v1388_v8 = vsel %vm1355_vm7, %v2232_v34, %v1377_v59 }
 0x228   : > { %v1172_v49 = vpop.f32.mrb[16].mxu1  ;;  %2523 = vrot.lane.b32.xlu1 %v2522_v23, %s2697_s25  ;;  %2623 = vpow2.f32 %v1329_v11  ;;  %v1331_v54 = vmul.f32 1.442695, %v1315_v36  ;;  %vm1357_vm6 = vcmp.gt.f32.partialorder %v3440_v43, 0.0  ;;  %v1380_v19 = vsub.f32 0.0, %v3452_v51 }
 0x229   : > { %v3483_v56 = vsel %vm661_vm10, %v1276_v55, %v1278_v39  ;;  %v1280_v57 = vrot.slane %v1253_v13, 5  ;;  %v1173_v37 = vadd.f32 %v1172_v49, %v3402_v60  ;;  %v2369_v7 = vpop.f32.mrb[17].mxu1  ;;  %vm1358_vm7 = vcmp.gt.f32.partialorder %v3452_v51, 0.0 }
 0x22a   : > { %v2620_v41 = vpop.eup %2619  ;;  %v1305_v22 = vand.u32 2147483647, %v3483_v56  ;;  %v1175_v46 = vpop.f32.mrb[18].mxu1  ;;  %2625 = vpow2.f32 %v1331_v54 }
 0x22b   : > { %v3491_v28 = vsel %vm661_vm10, %v1278_v39, %v1280_v57  ;;  %v1194_v62 = vadd.f32 %v3409_v16, %v1173_v37  ;;  %v1176_v61 = vadd.f32 %v1175_v46, %v3404_v42  ;;  %v2370_v60 = vpop.f32.mrb[19].mxu1  ;;  %v2233_v30 = vadd.f32 -1.0, %v2620_v41 }
 0x22c   : > { %v2622_v27 = vpop.eup %2621  ;;  %v1306_v4 = vand.u32 2147483647, %v3491_v28  ;;  %v1316_v53 = vsub.f32 0.0, %v1305_v22 }
 0x22d   : > { %v1254_v9 = vmul.f32 %v3495_v35, %v1194_v62  ;;  %v1195_v45 = vadd.f32 %v3409_v16, %v1176_v61  ;;  %v1389_v42 = vsel %vm1356_vm8, %v2233_v30, %v1378_v18  ;;  %v2234_v55 = vadd.f32 -1.0, %v2622_v27 }
 0x22e   : > { %v2527_v15 = vpack.i.bf16 %v1389_v42, %v1388_v8  ;;  %v1333_v10 = vmul.f32 1.442695, %v1316_v53  ;;  %v1317_v5 = vsub.f32 0.0, %v1306_v4  ;;  %v3510_v58 = vsel %vm1356_vm8, %v3436_v6, %v2233_v30 }
 0x22f   : > { %v1282_v2 = vrot.slane %v1254_v9, 5  ;;  %v1255_v33 = vmul.f32 %v3505_v17, %v1195_v45  ;;  %v3516_v16 = vsel %vm1357_vm6, %v3440_v43, %v2234_v55  ;;  %v1379_v6 = vsub.f32 0.0, %v3440_v43 }
 0x230   : > { %2528 = vrot.lane.b32.xlu0 %v2527_v15, %s2697_s25  ;;  %2627 = vpow2.f32 %v1333_v10  ;;  %v1335_v25 = vmul.f32 1.442695, %v1317_v5  ;;  %vm1359_vm8 = vcmp.gt.f32.partialorder %v3458_v20, 0.0  ;;  %v1381_v18 = vsub.f32 0.0, %v3458_v20 }
 0x231   : > { %v1283_v40 = vsel %vm661_vm10, %v1280_v57, %v1282_v2  ;;  %v1284_v12 = vrot.slane %v1255_v33, 5  ;;  %v1390_v36 = vsel %vm1357_vm6, %v2234_v55, %v1379_v6  ;;  %v1382_v62 = vsub.f32 0.0, %v3483_v56 }
 0x232   : > { %v2624_v32 = vpop.eup %2623  ;;  %v1307_v29 = vand.u32 2147483647, %v1283_v40  ;;  %2629 = vpow2.f32 %v1335_v25  ;;  %vm1360_vm6 = vcmp.gt.f32.partialorder %v3483_v56, 0.0  ;;  %v1383_v45 = vsub.f32 0.0, %v3491_v28 }
 0x233   : > { %v1285_v63 = vsel %vm661_vm10, %v1282_v2, %v1284_v12  ;;  %v1298_v48 = vsel %vm661_vm10, %v1284_v12, 0.0  ;;  %v2235_v1 = vadd.f32 -1.0, %v2624_v32  ;;  %v1384_v42 = vsub.f32 0.0, %v1283_v40 }
 0x234   : > { %v2626_v31 = vpop.eup %2625  ;;  %v1308_v34 = vand.u32 2147483647, %v1285_v63  ;;  %v1309_v23 = vand.u32 2147483647, %v1298_v48  ;;  %v1318_v11 = vsub.f32 0.0, %v1307_v29  ;;  %v1385_v55 = vsub.f32 0.0, %v1285_v63 }
 0x235   : > { %v1391_v39 = vsel %vm1358_vm7, %v2235_v1, %v1380_v19  ;;  %v2236_v13 = vadd.f32 -1.0, %v2626_v31  ;;  %v3529_v7 = vsel %vm1358_vm7, %v3452_v51, %v2235_v1  ;;  %vm1361_vm7 = vcmp.gt.f32.partialorder %v3491_v28, 0.0  ;;  %v3565_v19 = vld [vmem:[%s3941_s7] sm:$0xff]   ;;  %v2563_v31 = vld [vmem:[%s3940_s6 + $0x18] sm:$0xff]  }
 0x236   : > { %v1320_v49 = vsub.f32 0.0, %v1309_v23  ;;  %v2532_v54 = vpack.i.bf16 %v1391_v39, %v1390_v36  ;;  %v1337_v57 = vmul.f32 1.442695, %v1318_v11  ;;  %v1319_v37 = vsub.f32 0.0, %v1308_v34  ;;  %2441 = vmatpush3.bf16.msra.mxu1 %v3565_v19  ;;  %v3585_v36 = vld [vmem:[%s3941_s7 + $0x8] sm:$0xff]  }
 0x237   : > { %v3534_v59 = vsel %vm1359_vm8, %v3458_v20, %v2236_v13  ;;  %v1392_v61 = vsel %vm1359_vm8, %v2236_v13, %v1381_v18  ;;  %vm1362_vm8 = vcmp.gt.f32.partialorder %v1283_v40, 0.0  ;;  %v1386_v12 = vsub.f32 0.0, %v1298_v48  ;;  %2436 = vmatprep.subr.bf16.mxu1 %v2696_v0 }
 0x238   : > { %v1341_v41 = vmul.f32 1.442695, %v1320_v49  ;;  %2533 = vrot.lane.b32.xlu1 %v2532_v54, %s2697_s25  ;;  %2631 = vpow2.f32 %v1337_v57  ;;  %v1339_v43 = vmul.f32 1.442695, %v1319_v37  ;;  %vm1364_vm9 = vcmp.gt.f32.partialorder %v1298_v48, 0.0  ;;  %v2565_v57 = vld [vmem:[%s3940_s6 + $0x20] sm:$0xff]  }
 0x239   : > { %v3600_v37 = vld [vmem:[%s3941_s7 + $0x10] sm:$0xff]  }
 0x23a   : > { %v2628_v22 = vpop.eup %2627  ;;  %2633 = vpow2.f32 %v1339_v43  ;;  %2442 = vmatpush3.bf16.msra.mxu1 %v3585_v36 }
 0x23b   : > { %v2237_v46 = vadd.f32 -1.0, %v2628_v22  ;;  %2635 = vpow2.f32 %v1341_v41  ;;  %2437 = vmatprep.subr.bf16.mxu1 %v2696_v0 }
 0x23c   : > { %v2630_v51 = vpop.eup %2629 }
 0x23d   : > { %v1393_v60 = vsel %vm1360_vm6, %v2237_v46, %v1382_v62  ;;  %v2238_v30 = vadd.f32 -1.0, %v2630_v51  ;;  %v3543_v27 = vsel %vm1360_vm6, %v3483_v56, %v2237_v46  ;;  %vm1363_vm6 = vcmp.gt.f32.partialorder %v1285_v63, 0.0 }
 0x23e   : > { %v2537_v4 = vpack.i.bf16 %v1393_v60, %v1392_v61  ;;  %2443 = vmatpush3.bf16.msra.mxu1 %v3600_v37 }
 0x23f   : > { %v3547_v8 = vsel %vm1361_vm7, %v3491_v28, %v2238_v30  ;;  %v1394_v10 = vsel %vm1361_vm7, %v2238_v30, %v1383_v45  ;;  %2438 = vmatprep.subr.bf16.mxu1 %v2696_v0  ;;  %v3625_v45 = vld [vmem:[%s3941_s7 + $0x18] sm:$0xff]  }
 0x240   : > { %2538 = vrot.lane.b32.xlu0 %v2537_v4, %s2697_s25 }
 0x242   : > { %v2632_v53 = vpop.eup %2631  ;;  %2444 = vmatpush3.bf16.msra.mxu1 %v3625_v45 }
 0x243   : > { %v2239_v9 = vadd.f32 -1.0, %v2632_v53  ;;  %2439 = vmatprep.subr.bf16.mxu1 %v2696_v0 }
 0x244   : > { %v2634_v20 = vpop.eup %2633 }
 0x245   : > { %v2636_v15 = vpop.eup %2635  ;;  %v1395_v56 = vsel %vm1362_vm8, %v2239_v9, %v1384_v42  ;;  %v2240_v5 = vadd.f32 -1.0, %v2634_v20  ;;  %v3551_v2 = vsel %vm1362_vm8, %v1283_v40, %v2239_v9  ;;  %v2559_v40 = vld [vmem:[%s3940_s6] sm:$0xff]   ;;  %v2567_v9 = vld [vmem:[%s3940_s6 + $0x28] sm:$0xff]  }
 0x246   : > { %v2542_v33 = vpack.i.bf16 %v1395_v56, %v1394_v10  ;;  %v2241_v25 = vadd.f32 -1.0, %v2636_v15  ;;  %2372 = vmatpush3.bf16.msra.mxu0 %v2559_v40 }
 0x247   : > { %v1396_v32 = vsel %vm1363_vm6, %v2240_v5, %v1385_v55  ;;  %v3553_v29 = vsel %vm1363_vm6, %v1285_v63, %v2240_v5  ;;  %v2560_v63 = vld [vmem:[%s3940_s6 + $0x8] sm:$0xff]   ;;  %2373 = vmatprep.subr.bf16.mxu0 %v2696_v0 }
 0x248   : > { %2543 = vrot.lane.b32.xlu1 %v2542_v33, %s2697_s25  ;;  %v1397_v28 = vsel %vm1364_vm9, %v2241_v25, %v1386_v12  ;;  %v3556_v6 = vsel %vm1364_vm9, %v1298_v48, %v2241_v25  ;;  %v2561_v48 = vld [vmem:[%s3940_s6 + $0x10] sm:$0xff]   ;;  %vm3947_vm9 = vmmov 0  }
 0x249   : > { %v2547_v1 = vpack.i.bf16 %v1397_v28, %v1396_v32  ;;  %v3637_v32 = vld [vmem:[%s3941_s7 + $0x20] sm:$0xff]  }
 0x24a   : > { %2374 = vmatpush3.bf16.msra.mxu0 %v2560_v63  ;;  %2445 = vmatpush3.bf16.msra.mxu1 %v3637_v32 }
 0x24b   : > { %2548 = vrot.lane.b32.xlu0 %v2547_v1, %s2697_s25  ;;  %2375 = vmatprep.subr.bf16.mxu0 %v2696_v0 }
 0x24c   : > { %2440 = vmatprep.subr.bf16.mxu1 %v2696_v0 }
 0x24e   : > { %2376 = vmatpush3.bf16.msra.mxu0 %v2561_v48 }
 0x24f   : > { %2377 = vmatprep.subr.bf16.mxu0 %v2696_v0 }
 0x252   : > { %2378 = vmatpush3.bf16.msra.mxu0 %v2563_v31 }
 0x253   : > { %2379 = vmatprep.subr.bf16.mxu0 %v2696_v0 }
 0x256   : > { %2380 = vmatpush3.bf16.msra.mxu0 %v2565_v57 }
 0x257   : > { %2381 = vmatprep.subr.bf16.mxu0 %v2696_v0 }
 0x25a   : > { %2382 = vmatpush3.bf16.msra.mxu0 %v2567_v9 }
 0x25b   : > { %2403 = vmatprep.subr.bf16.mxu0 %v2696_v0 }
 0x29a   : > { %v2524_v34 = vpop.permute.xlu1 %2523 }
 0x29b   : > { %v2526_v23 = vunpack.i.h.bf16 %v2524_v34  ;;  %v2525_v11 = vunpack.i.l.bf16 %v2524_v34 }
 0x29d   : > { %v1446_v39 = vsel %vm559_vm0, 0.0, %v2525_v11  ;;  %v1447_v13 = vsel %vm559_vm0, %v3473_v47, %v2526_v23 }
 0x29e   : > { %v3592_v49 = vpack.c.bf16 %v1447_v13, %v1446_v39 }
 0x2a0   : > { %v1465_v46 = vshrl.u32 %v3592_v49, 16  ;;  %v1467_v18 = vshll.u32 %v3592_v49, 16  ;;  %v1545_v51 = vrot.slane %v3592_v49, 5  ;;  %v1524_v60 = vrot.slane %v3592_v49, 1 }
 0x2a1   : > { %v1601_v25 = vrot.slane %v3592_v49, 6 }
 0x2a2   : > { %v2529_v54 = vpop.permute.xlu0 %2528  ;;  %v1566_v4 = vrot.slane %v1465_v46, 5  ;;  %v1567_v53 = vrot.slane %v1467_v18, 6  ;;  %v1469_v12 = vrot.slane %v1467_v18, 1 }
 0x2a3   : > { %v2531_v41 = vunpack.i.h.bf16 %v2529_v54  ;;  %v2530_v43 = vunpack.i.l.bf16 %v2529_v54 }
 0x2a4   : > { %v1568_v40 = vor.u32 %v1567_v53, %v1566_v4 }
 0x2a5   : > { %v1449_v47 = vsel %vm559_vm0, %v3510_v58, %v2531_v41  ;;  %v1448_v22 = vsel %vm559_vm0, %v3479_v26, %v2530_v43 }
 0x2a6   : > { %v3610_v62 = vpack.c.bf16 %v1449_v47, %v1448_v22  ;;  %v3663_v47 = vld [vmem:[%s3941_s7 + $0x28] sm:$0xff]  }
 0x2a7   : > { %2446 = vmatpush3.bf16.msra.mxu1 %v3663_v47 }
 0x2a8   : > { %v1546_v61 = vrot.slane %v3610_v62, 5  ;;  %v1525_v58 = vrot.slane %v3610_v62, 1  ;;  %v1472_v26 = vshll.u32 %v3610_v62, 16  ;;  %v1476_v30 = vshrl.u32 %v3610_v62, 16 }
 0x2a9   : > { %v1602_v15 = vrot.slane %v3610_v62, 6 }
 0x2aa   : > { %v2534_v42 = vpop.permute.xlu1 %2533  ;;  %v1547_v20 = vsel %vm661_vm10, %v1545_v51, %v1546_v61  ;;  %v1526_v55 = vsel %vm639_vm11, %v1524_v60, %v1525_v58  ;;  %v1570_v10 = vrot.slane %v1472_v26, 6  ;;  %v1569_v33 = vrot.slane %v1476_v30, 5 }
 0x2ab   : > { %v2536_v56 = vunpack.i.h.bf16 %v2534_v42  ;;  %v2535_v5 = vunpack.i.l.bf16 %v2534_v42  ;;  %1556 = vrot.lane.b32.xlu1 %v1547_v20, %s2699_s17  ;;  %1535 = vrot.lane.b32.xlu0 %v1526_v55, %s2700_s19  ;;  %v1603_v31 = vsel %vm719_vm12, %v1601_v25, %v1602_v15  ;;  %v1474_v34 = vrot.slane %v1472_v26, 1 }
 0x2ac   : > { %v1571_v63 = vor.u32 %v1570_v10, %v1569_v33 }
 0x2ad   : > { %v1451_v28 = vsel %vm559_vm0, %v3529_v7, %v2536_v56  ;;  %v1450_v1 = vsel %vm559_vm0, %v3516_v16, %v2535_v5  ;;  %v1470_v16 = vor.u32 %v1469_v12, %v1465_v46  ;;  %v1478_v20 = vor.u32 %v1476_v30, %v1474_v34 }
 0x2ae   : > { %v3644_v48 = vpack.c.bf16 %v1451_v28, %v1450_v1  ;;  %v1572_v23 = vsel %vm683_vm14, %v1568_v40, %v1571_v63 }
 0x2af   : > { %1612 = vrot.lane.b32.xlu1 %v1603_v31, %s2701_s23  ;;  %1591 = vrot.lane.b32.xlu0 %v1572_v23, %s2703_s28  ;;  %v1475_v57 = vsel %vm578_vm13, %v1470_v16, %v1474_v34 }
 0x2b0   : > { %v1548_v7 = vrot.slane %v3644_v48, 5  ;;  %v1480_v11 = vshll.u32 %v3644_v48, 16  ;;  %v1484_v39 = vshrl.u32 %v3644_v48, 16  ;;  %v1604_v41 = vrot.slane %v3644_v48, 6 }
 0x2b1   : > { %v1527_v43 = vrot.slane %v3644_v48, 1 }
 0x2b2   : > { %v2539_v13 = vpop.permute.xlu0 %2538  ;;  %v1549_v54 = vsel %vm661_vm10, %v1546_v61, %v1548_v7  ;;  %v1573_v18 = vrot.slane %v1484_v39, 5  ;;  %v1574_v51 = vrot.slane %v1480_v11, 6  ;;  %v1482_v53 = vrot.slane %v1480_v11, 1 }
 0x2b3   : > { %v2541_v22 = vunpack.i.h.bf16 %v2539_v13  ;;  %v2540_v46 = vunpack.i.l.bf16 %v2539_v13  ;;  %1508 = vrot.lane.b32.xlu1 %v1475_v57, %s2702_s27  ;;  %1558 = vrot.lane.b32.xlu0 %v1549_v54, %s2699_s17  ;;  %v1528_v4 = vsel %vm639_vm11, %v1525_v58, %v1527_v43  ;;  %v1605_v42 = vsel %vm719_vm12, %v1602_v15, %v1604_v41 }
 0x2b4   : > { %v1575_v9 = vor.u32 %v1574_v51, %v1573_v18 }
 0x2b5   : > { %v1453_v61 = vsel %vm559_vm0, %v3543_v27, %v2541_v22  ;;  %v1452_v60 = vsel %vm559_vm0, %v3534_v59, %v2540_v46  ;;  %v1483_v59 = vsel %vm578_vm13, %v1478_v20, %v1482_v53 }
 0x2b6   : > { %v3672_v26 = vpack.c.bf16 %v1453_v61, %v1452_v60  ;;  %v1576_v56 = vsel %vm683_vm14, %v1571_v63, %v1575_v9 }
 0x2b7   : > { %1537 = vrot.lane.b32.xlu1 %v1528_v4, %s2700_s19  ;;  %1614 = vrot.lane.b32.xlu0 %v1605_v42, %s2701_s23 }
 0x2b8   : > { %v1488_v55 = vshll.u32 %v3672_v26, 16  ;;  %v1492_v27 = vshrl.u32 %v3672_v26, 16  ;;  %v1529_v58 = vrot.slane %v3672_v26, 1  ;;  %v1550_v5 = vrot.slane %v3672_v26, 5 }
 0x2b9   : > { %v1606_v40 = vrot.slane %v3672_v26, 6 }
 0x2ba   : > { %v2544_v10 = vpop.permute.xlu1 %2543  ;;  %v1577_v25 = vrot.slane %v1492_v27, 5  ;;  %v1578_v12 = vrot.slane %v1488_v55, 6  ;;  %v1551_v23 = vsel %vm661_vm10, %v1548_v7, %v1550_v5  ;;  %v1530_v16 = vsel %vm639_vm11, %v1527_v43, %v1529_v58 }
 0x2bb   : > { %v2546_v33 = vunpack.i.h.bf16 %v2544_v10  ;;  %v2545_v15 = vunpack.i.l.bf16 %v2544_v10  ;;  %1593 = vrot.lane.b32.xlu1 %v1576_v56, %s2703_s28  ;;  %1510 = vrot.lane.b32.xlu0 %v1483_v59, %s2702_s27  ;;  %v1607_v54 = vsel %vm719_vm12, %v1604_v41, %v1606_v40  ;;  %v1490_v57 = vrot.slane %v1488_v55, 1 }
 0x2bc   : > { %v1579_v11 = vor.u32 %v1578_v12, %v1577_v25 }
 0x2bd   : > { %v1455_v30 = vsel %vm559_vm0, %v3551_v2, %v2546_v33  ;;  %v1454_v28 = vsel %vm559_vm0, %v3547_v8, %v2545_v15  ;;  %v2549_v1 = vpop.permute.xlu0 %2548  ;;  %v1494_v4 = vor.u32 %v1492_v27, %v1490_v57 }
 0x2be   : > { %v3691_v63 = vpack.c.bf16 %v1455_v30, %v1454_v28  ;;  %v2551_v31 = vunpack.i.h.bf16 %v2549_v1  ;;  %v2550_v34 = vunpack.i.l.bf16 %v2549_v1  ;;  %v1580_v43 = vsel %vm683_vm14, %v1575_v9, %v1579_v11 }
 0x2bf   : > { %1560 = vrot.lane.b32.xlu1 %v1551_v23, %s2699_s17  ;;  %1539 = vrot.lane.b32.xlu0 %v1530_v16, %s2700_s19 }
 0x2c0   : > { %v1457_v2 = vsel %vm559_vm0, %v3556_v6, %v2551_v31  ;;  %v1456_v8 = vsel %vm559_vm0, %v3553_v29, %v2550_v34  ;;  %v1496_v22 = vshll.u32 %v3691_v63, 16  ;;  %v1500_v7 = vshrl.u32 %v3691_v63, 16 }
 0x2c1   : > { %v1463_v13 = vpack.c.bf16 %v1457_v2, %v1456_v8  ;;  %v1552_v46 = vrot.slane %v3691_v63, 5  ;;  %v1486_v6 = vor.u32 %v1484_v39, %v1482_v53  ;;  %v1531_v18 = vrot.slane %v3691_v63, 1 }
 0x2c2   : > { %v1581_v51 = vrot.slane %v1500_v7, 5  ;;  %v1582_v41 = vrot.slane %v1496_v22, 6  ;;  %v1498_v60 = vrot.slane %v1496_v22, 1  ;;  %v1608_v39 = vrot.slane %v3691_v63, 6 }
 0x2c3   : > { %1616 = vrot.lane.b32.xlu1 %v1607_v54, %s2701_s23  ;;  %1595 = vrot.lane.b32.xlu0 %v1580_v43, %s2703_s28  ;;  %v1491_v29 = vsel %vm578_vm13, %v1486_v6, %v1490_v57  ;;  %v1553_v61 = vsel %vm661_vm10, %v1550_v5, %v1552_v46  ;;  %v1532_v9 = vsel %vm639_vm11, %v1529_v58, %v1531_v18  ;;  %v1504_v53 = vshll.u32 %v1463_v13, 16 }
 0x2c4   : > { %v1583_v42 = vor.u32 %v1582_v41, %v1581_v51  ;;  %v1499_v20 = vsel %vm578_vm13, %v1494_v4, %v1498_v60  ;;  %v1585_v55 = vshrl.u32 %v1463_v13, 16  ;;  %v1554_v59 = vrot.slane %v1463_v13, 5 }
 0x2c5   : > { %v1609_v56 = vsel %vm719_vm12, %v1606_v40, %v1608_v39  ;;  %v1533_v27 = vrot.slane %v1463_v13, 1  ;;  %v1588_v5 = vrot.slane %v1504_v53, 6  ;;  %v1502_v15 = vor.u32 %v1500_v7, %v1498_v60 }
 0x2c6   : > { %v1584_v10 = vsel %vm683_vm14, %v1579_v11, %v1583_v42  ;;  %v1587_v58 = vrot.slane %v1585_v55, 5  ;;  %v1555_v33 = vsel %vm661_vm10, %v1552_v46, %v1554_v59  ;;  %v1506_v25 = vrot.slane %v1504_v53, 1 }
 0x2c7   : > { %1512 = vrot.lane.b32.xlu1 %v1491_v29, %s2702_s27  ;;  %1562 = vrot.lane.b32.xlu0 %v1553_v61, %s2699_s17  ;;  %v1534_v12 = vsel %vm639_vm11, %v1531_v18, %v1533_v27  ;;  %v1610_v1 = vrot.slane %v1463_v13, 6 }
 0x2c8   : > { %v1589_v30 = vor.u32 %v1588_v5, %v1587_v58  ;;  %v1507_v28 = vsel %vm578_vm13, %v1502_v15, %v1506_v25 }
 0x2c9   : > { %v1611_v31 = vsel %vm719_vm12, %v1608_v39, %v1610_v1 }
 0x2ca   : > { %v1590_v40 = vsel %vm683_vm14, %v1583_v42, %v1589_v30 }
 0x2cb   : > { %1541 = vrot.lane.b32.xlu1 %v1532_v9, %s2700_s19  ;;  %1514 = vrot.lane.b32.xlu0 %v1499_v20, %s2702_s27 }
 0x2cf   : > { %1597 = vrot.lane.b32.xlu1 %v1584_v10, %s2703_s28  ;;  %1618 = vrot.lane.b32.xlu0 %v1609_v56, %s2701_s23 }
 0x2d3   : > { %1564 = vrot.lane.b32.xlu1 %v1555_v33, %s2699_s17  ;;  %1543 = vrot.lane.b32.xlu0 %v1534_v12, %s2700_s19 }
 0x2d7   : > { %1516 = vrot.lane.b32.xlu1 %v1507_v28, %s2702_s27  ;;  %1599 = vrot.lane.b32.xlu0 %v1590_v40, %s2703_s28 }
 0x2db   : > { %1620 = vrot.lane.b32.xlu1 %v1611_v31, %s2701_s23 }
 0x31d   : > { %v1557_v34 = vpop.permute.xlu1 %1556  ;;  %v1536_v23 = vpop.permute.xlu0 %1535 }
 0x321   : > { %v1613_v16 = vpop.permute.xlu1 %1612  ;;  %v1592_v11 = vpop.permute.xlu0 %1591 }
 0x325   : > { %v1509_v2 = vpop.permute.xlu1 %1508  ;;  %v1559_v8 = vpop.permute.xlu0 %1558 }
 0x326   : > { %v1623_v54 = vsel %vm741_vm15, %v3592_v49, %v1509_v2 }
 0x327   : > { %v1633_v13 = vsel %vm752_vm1, %v1623_v54, %v1536_v23  ;;  %v3810_v23 = vld [vmem:[%s3943_s9] ss:$0 sm:$0xff] }
 0x328   : > { %v1643_v57 = vsel %vm763_vm2, %v1633_v13, %v1557_v34 }
 0x329   : > { %v1653_v22 = vsel %vm774_vm3, %v1643_v57, %v1592_v11  ;;  %v1538_v7 = vpop.permute.xlu1 %1537  ;;  %v1615_v43 = vpop.permute.xlu0 %1614 }
 0x32a   : > { %v3738_v46 = vsel %vm785_vm4, %v1653_v22, %v1613_v16 }
 0x32b   : > { %2384 = vmatmul.mubr.msk.bf16.vlgmr.msra.gmra.mrb[20].mxu0 %vm1095_vm5, %v3738_v46 }
 0x32c   : > { %2404 = vmatpush3.bf16.msra.mxu0 %v3565_v19  ;;  %2387 = vmatprep.mubr.msk.bf16.mxu0 %vm3947_vm9, %v2696_v0 }
 0x32d   : > { %v1594_v49 = vpop.permute.xlu1 %1593  ;;  %2405 = vmatprep.subr.bf16.mxu0 %v2696_v0  ;;  %v1511_v6 = vpop.permute.xlu0 %1510 }
 0x32e   : > { %v1625_v29 = vsel %vm741_vm15, %v3610_v62, %v1511_v6 }
 0x32f   : > { %v1635_v18 = vsel %vm752_vm1, %v1625_v29, %v1538_v7 }
 0x330   : > { %2406 = vmatpush3.bf16.msra.mxu0 %v3585_v36  ;;  %v1645_v51 = vsel %vm763_vm2, %v1635_v18, %v1559_v8 }
 0x331   : > { %v1561_v41 = vpop.permute.xlu1 %1560  ;;  %2407 = vmatprep.subr.bf16.mxu0 %v2696_v0  ;;  %v1655_v19 = vsel %vm774_vm3, %v1645_v51, %v1594_v49  ;;  %v1540_v61 = vpop.permute.xlu0 %1539 }
 0x332   : > { %v1665_v60 = vsel %vm785_vm4, %v1655_v19, %v1615_v43 }
 0x333   : > { %2388 = vmatmul.mubr.msk.bf16.gmra.mrb[24].mxu0 %vm1095_vm5, %v1665_v60  ;;  %2420 = vmatmul.mubr.msk.bf16.vlgmr.msra.gmra.mrb[20].mxu1 %vm1095_vm5, %v1665_v60 }
 0x334   : > { %2408 = vmatpush3.bf16.msra.mxu0 %v3600_v37  ;;  %2391 = vmatprep.mubr.msk.bf16.mxu0 %vm3947_vm9, %v2696_v0 }
 0x335   : > { %v1617_v4 = vpop.permute.xlu1 %1616  ;;  %v1596_v36 = vpop.permute.xlu0 %1595  ;;  %2423 = vmatprep.mubr.msk.bf16.mxu1 %vm3947_vm9, %v2696_v0  ;;  %2409 = vmatprep.subr.bf16.mxu0 %v2696_v0 }
 0x338   : > { %2410 = vmatpush3.bf16.msra.mxu0 %v3625_v45 }
 0x339   : > { %v1513_v62 = vpop.permute.xlu1 %1512  ;;  %v1563_v9 = vpop.permute.xlu0 %1562  ;;  %2411 = vmatprep.subr.bf16.mxu0 %v2696_v0 }
 0x33a   : > { %v1627_v42 = vsel %vm741_vm15, %v3644_v48, %v1513_v62 }
 0x33b   : > { %v1637_v37 = vsel %vm752_vm1, %v1627_v42, %v1540_v61 }
 0x33c   : > { %v1647_v20 = vsel %vm763_vm2, %v1637_v37, %v1561_v41  ;;  %2412 = vmatpush3.bf16.msra.mxu0 %v3637_v32 }
 0x33d   : > { %v1542_v39 = vpop.permute.xlu1 %1541  ;;  %v1657_v53 = vsel %vm774_vm3, %v1647_v20, %v1596_v36  ;;  %v1515_v55 = vpop.permute.xlu0 %1514  ;;  %2413 = vmatprep.subr.bf16.mxu0 %v2696_v0 }
 0x33e   : > { %v1667_v10 = vsel %vm785_vm4, %v1657_v53, %v1617_v4  ;;  %v1629_v45 = vsel %vm741_vm15, %v3672_v26, %v1515_v55 }
 0x33f   : > { %2392 = vmatmul.mubr.msk.bf16.gmra.mrb[28].mxu0 %vm1095_vm5, %v1667_v10  ;;  %2424 = vmatmul.mubr.msk.bf16.gmra.mrb[24].mxu1 %vm1095_vm5, %v1667_v10  ;;  %v1639_v48 = vsel %vm752_vm1, %v1629_v45, %v1542_v39 }
 0x340   : > { %2395 = vmatprep.mubr.msk.bf16.mxu0 %vm3947_vm9, %v2696_v0  ;;  %2427 = vmatprep.mubr.msk.bf16.mxu1 %vm3947_vm9, %v2696_v0  ;;  %v1649_v32 = vsel %vm763_vm2, %v1639_v48, %v1563_v9 }
 0x341   : > { %v1598_v59 = vpop.permute.xlu1 %1597  ;;  %2414 = vmatpush3.bf16.msra.mxu0 %v3663_v47  ;;  %v1619_v56 = vpop.permute.xlu0 %1618 }
 0x342   : > { %v1659_v26 = vsel %vm774_vm3, %v1649_v32, %v1598_v59 }
 0x343   : > { %v1669_v5 = vsel %vm785_vm4, %v1659_v26, %v1619_v56 }
 0x345   : > { %v1565_v27 = vpop.permute.xlu1 %1564  ;;  %v1544_v58 = vpop.permute.xlu0 %1543 }
 0x347   : > { %2396 = vmatmul.mubr.msk.bf16.gmra.mrb[32].mxu0 %vm1095_vm5, %v1669_v5  ;;  %2428 = vmatmul.mubr.msk.bf16.gmra.mrb[28].mxu1 %vm1095_vm5, %v1669_v5 }
 0x348   : > { %2399 = vmatprep.mubr.msk.bf16.mxu0 %vm3947_vm9, %v2696_v0  ;;  %2431 = vmatprep.mubr.msk.bf16.mxu1 %vm3947_vm9, %v2696_v0 }
 0x349   : > { %v1517_v33 = vpop.permute.xlu1 %1516  ;;  %v1600_v25 = vpop.permute.xlu0 %1599 }
 0x34a   : > { %v1631_v47 = vsel %vm741_vm15, %v3691_v63, %v1517_v33  ;;  %v3829_v33 = vld [vmem:[%s3942_s8] ss:$0 sm:$0xff] }
 0x34b   : > { %v1641_v15 = vsel %vm752_vm1, %v1631_v47, %v1544_v58 }
 0x34c   : > { %v1651_v12 = vsel %vm763_vm2, %v1641_v15, %v1565_v27 }
 0x34d   : > { %v1661_v30 = vsel %vm774_vm3, %v1651_v12, %v1600_v25  ;;  %v1621_v28 = vpop.permute.xlu1 %1620 }
 0x34e   : > { %v1671_v1 = vsel %vm785_vm4, %v1661_v30, %v1621_v28 }
 0x34f   : > { %2400 = vmatmul.mubr.msk.bf16.gmra.mrb[36].mxu0 %vm1095_vm5, %v1671_v1  ;;  %2432 = vmatmul.mubr.msk.bf16.gmra.mrb[32].mxu1 %vm1095_vm5, %v1671_v1 }
 0x350   : > { %2415 = vmatprep.mubr.msk.bf16.mxu0 %vm3947_vm9, %v2696_v0 }
 0x357   : > { %2416 = vmatmul.mubr.msk.bf16.vlgmr.msra.gmra.mrb[40].mxu0 %vm1095_vm5, %v3738_v46 }
 0x3fe   : > { %v3803_v63 = vpop.f32.mrb[20].mxu0 }
 0x3ff   : > { %v2385_v40 = vpop.f32.mrb[21].mxu0 }
 0x400   : > { %v3805_v31 = vpop.f32.mrb[22].mxu0 }
 0x401   : > { %v2386_v34 = vpop.f32.mrb[23].mxu0 }
 0x406   : > { %v1779_v16 = vpop.f32.mrb[24].mxu0  ;;  %v1907_v11 = vpop.f32.mrb[20].mxu1 }
 0x407   : > { %v1908_v2 = vadd.f32 %v3810_v23, %v1907_v11  ;;  %v2389_v8 = vpop.f32.mrb[25].mxu0  ;;  %v2421_v0 = vpop.f32.mrb[21].mxu1  ;;  %v1780_v47 = vadd.f32 %v3829_v33, %v1779_v16 }
 0x408   : > { %v1782_v54 = vpop.f32.mrb[26].mxu0  ;;  %v1910_v13 = vpop.f32.mrb[22].mxu1 }
 0x409   : > { %v2268_v57 = vmul.f32 -1.442695, %v1908_v2  ;;  %v1911_v22 = vadd.f32 %v3810_v23, %v1910_v13  ;;  %v2390_v7 = vpop.f32.mrb[27].mxu0  ;;  %v2422_v43 = vpop.f32.mrb[23].mxu1  ;;  %v1783_v2 = vadd.f32 %v3829_v33, %v1782_v54 }
 0x40b   : > { %2637 = vpow2.f32 %v2268_v57  ;;  %v2269_v46 = vmul.f32 -1.442695, %v1911_v22 }
 0x40d   : > { %2639 = vpow2.f32 %v2269_v46 }
 0x412   : > { %v3814_v49 = vpop.f32.mrb[28].mxu0  ;;  %v1915_v6 = vpop.f32.mrb[24].mxu1 }
 0x413   : > { %v1916_v29 = vadd.f32 %v3810_v23, %v1915_v6  ;;  %v2393_v18 = vpop.f32.mrb[29].mxu0  ;;  %v2425_v51 = vpop.f32.mrb[25].mxu1  ;;  %v2062_v6 = vrot.slane %v3427_v38, 5 }
 0x414   : > { %v3817_v41 = vpop.f32.mrb[30].mxu0  ;;  %v1918_v19 = vpop.f32.mrb[26].mxu1  ;;  %v2064_v18 = vrot.slane %v3432_v44, 5 }
 0x415   : > { %v2270_v61 = vmul.f32 -1.442695, %v1916_v29  ;;  %v1919_v60 = vadd.f32 %v3810_v23, %v1918_v19  ;;  %v2394_v4 = vpop.f32.mrb[31].mxu0  ;;  %v2426_v36 = vpop.f32.mrb[27].mxu1 }
 0x416   : > { %v2638_v62 = vpop.eup %2637  ;;  %v2065_v44 = vsel %vm661_vm10, %v2062_v6, %v2064_v18 }
 0x417   : > { %v1970_v9 = vadd.f32 1.0, %v2638_v62  ;;  %2641 = vpow2.f32 %v2270_v61  ;;  %v2271_v42 = vmul.f32 -1.442695, %v1919_v60  ;;  %v2640_v37 = vpop.eup %2639  ;;  %v2677_v62 = vld [vmem:[%s2776_s18 + $0x20] sm:$0xff] }
 0x418   : > { %v1971_v20 = vadd.f32 1.0, %v2640_v37 }
 0x419   : > { %2643 = vrcp.f32 %v1970_v9 }
 0x41a   : > { %2645 = vpow2.f32 %v2271_v42  ;;  %v3820_v39 = vpop.f32.mrb[32].mxu0  ;;  %v1923_v53 = vpop.f32.mrb[28].mxu1 }
 0x41b   : > { %2647 = vrcp.f32 %v1971_v20  ;;  %v1924_v55 = vadd.f32 %v3810_v23, %v1923_v53  ;;  %v2397_v10 = vpop.f32.mrb[33].mxu0  ;;  %v2429_v45 = vpop.f32.mrb[29].mxu1 }
 0x41c   : > { %v3823_v48 = vpop.f32.mrb[34].mxu0  ;;  %v1926_v32 = vpop.f32.mrb[30].mxu1  ;;  %v1788_v10 = vadd.f32 %v3829_v33, %v3814_v49 }
 0x41d   : > { %v2272_v59 = vmul.f32 -1.442695, %v1924_v55  ;;  %v1927_v56 = vadd.f32 %v3810_v23, %v1926_v32  ;;  %v2398_v26 = vpop.f32.mrb[35].mxu0  ;;  %v2430_v27 = vpop.f32.mrb[31].mxu1 }
 0x41f   : > { %2649 = vpow2.f32 %v2272_v59  ;;  %v2273_v58 = vmul.f32 -1.442695, %v1927_v56 }
 0x421   : > { %v2642_v5 = vpop.eup %2641  ;;  %2651 = vpow2.f32 %v2273_v58  ;;  %v1791_v58 = vadd.f32 %v3829_v33, %v3817_v41 }
 0x422   : > { %v1972_v15 = vadd.f32 1.0, %v2642_v5  ;;  %v3832_v25 = vpop.f32.mrb[36].mxu0  ;;  %v1931_v12 = vpop.f32.mrb[32].mxu1 }
 0x423   : > { %v2644_v30 = vpop.eup %2643  ;;  %v1932_v28 = vadd.f32 %v3810_v23, %v1931_v12  ;;  %v2401_v1 = vpop.f32.mrb[37].mxu0 }
 0x424   : > { %v2433_v40 = vpop.f32.mrb[33].mxu1  ;;  %v2646_v34 = vpop.eup %2645  ;;  %v3835_v11 = vmul.f32 %v2644_v30, %v1780_v47  ;;  %2653 = vrcp.f32 %v1972_v15  ;;  %v2066_v47 = vrot.slane %v3443_v50, 5  ;;  %v2068_v1 = vrot.slane %v3448_v21, 5 }
 0x425   : > { %v3838_v8 = vpop.f32.mrb[38].mxu0  ;;  %v1934_v0 = vpop.f32.mrb[34].mxu1  ;;  %v1973_v16 = vadd.f32 1.0, %v2646_v34  ;;  %v2274_v57 = vmul.f32 -1.442695, %v1932_v28  ;;  %v2678_v40 = vld [vmem:[%s2776_s18 + $0x28] sm:$0xff]  ;;  %v1796_v50 = vadd.f32 %v3829_v33, %v3820_v39 }
 0x426   : > { %v2648_v13 = vpop.eup %2647  ;;  %v1935_v22 = vadd.f32 %v3810_v23, %v1934_v0  ;;  %v2402_v7 = vpop.f32.mrb[39].mxu0  ;;  %v2021_v54 = vrot.slane %v3835_v11, 5  ;;  %v2067_v41 = vsel %vm661_vm10, %v2064_v18, %v2066_v47  ;;  %v2070_v18 = vrot.slane %v3462_v3, 5 }
 0x427   : > { %v2434_v43 = vpop.f32.mrb[35].mxu1  ;;  %v2001_v46 = vmul.f32 %v2648_v13, %v1783_v2  ;;  %2655 = vrcp.f32 %v1973_v16 }
 0x428   : > { %v2275_v29 = vmul.f32 -1.442695, %v1935_v22  ;;  %2657 = vpow2.f32 %v2274_v57  ;;  %v2679_v22 = vld [vmem:[%s2776_s18 + $0x30] sm:$0xff]  ;;  %v1799_v43 = vadd.f32 %v3829_v33, %v3823_v48  ;;  %v2071_v3 = vsel %vm661_vm10, %v2068_v1, %v2070_v18 }
 0x429   : > { %v2023_v51 = vrot.slane %v2001_v46, 5  ;;  %v2650_v19 = vpop.eup %2649 }
 0x42a   : > { %2659 = vpow2.f32 %v2275_v29  ;;  %v1974_v60 = vadd.f32 1.0, %v2650_v19  ;;  %v1899_v4 = vpop.f32.mrb[40].mxu0  ;;  %v2069_v29 = vsel %vm661_vm10, %v2066_v47, %v2068_v1 }
 0x42b   : > { %v2024_v61 = vsel %vm661_vm10, %v2021_v54, %v2023_v51  ;;  %v2652_v36 = vpop.eup %2651  ;;  %v1900_v42 = vadd.f32 %v3810_v23, %v1899_v4  ;;  %v2417_v37 = vpop.f32.mrb[41].mxu0 }
 0x42c   : > { %v2051_v9 = vadd.f32 %v2677_v62, %v2024_v61  ;;  %2661 = vrcp.f32 %v1974_v60  ;;  %v1975_v20 = vadd.f32 1.0, %v2652_v36  ;;  %v1902_v53 = vpop.f32.mrb[42].mxu0  ;;  %v2072_v36 = vrot.slane %v3469_v52, 5 }
 0x42d   : > { %v2266_v45 = vmul.f32 -1.442695, %v1900_v42  ;;  %v1903_v32 = vadd.f32 %v3810_v23, %v1902_v53  ;;  %v2418_v59 = vpop.f32.mrb[43].mxu0  ;;  %v2681_v53 = vld [vmem:[%s2776_s18 + $0x40] sm:$0xff]  ;;  %v1804_v52 = vadd.f32 %v3829_v33, %v3832_v25  ;;  %v2076_v25 = vrot.slane %v3505_v17, 5 }
 0x42e   : > { %v2092_v55 = vmul.f32 %v2065_v44, %v2051_v9  ;;  %v2654_v56 = vpop.eup %2653  ;;  %2663 = vrcp.f32 %v1975_v20  ;;  %v2680_v9 = vld [vmem:[%s2776_s18 + $0x38] sm:$0xff] }
 0x42f   : > { %v2002_v26 = vmul.f32 %v2654_v56, %v1788_v10  ;;  %2665 = vpow2.f32 %v2266_v45  ;;  %v2267_v27 = vmul.f32 -1.442695, %v1903_v32  ;;  %v2073_v45 = vsel %vm661_vm10, %v2070_v18, %v2072_v36  ;;  %v2686_v18 = vld [vmem:[%s2776_s18 + $0x10] sm:$0xff] }
 0x430   : > { %2106 = vst.msk [vmem:[%s2782_s21 + $0x20] sm:$0xff] %vm559_vm0, %v2092_v55  ;;  %v1807_v32 = vadd.f32 %v3829_v33, %v3838_v8  ;;  %v1772_v8 = vadd.f32 %v3829_v33, %v3803_v63  ;;  %v1775_v63 = vadd.f32 %v3829_v33, %v3805_v31  ;;  %v2060_v31 = vrot.slane %v3416_v14, 5 }
 0x431   : > { %v2656_v5 = vpop.eup %2655  ;;  %v2025_v15 = vrot.slane %v2002_v26, 5  ;;  %2667 = vpow2.f32 %v2267_v27  ;;  %v2059_v33 = vrot.slane %v3412_v24, 5 }
 0x432   : > { %v2658_v49 = vpop.eup %2657  ;;  %v2003_v12 = vmul.f32 %v2656_v5, %v1791_v58  ;;  %v2074_v58 = vrot.slane %v3495_v35, 5  ;;  %v2063_v24 = vsel %vm661_vm10, %v2060_v31, %v2062_v6 }
 0x433   : > { %v2026_v30 = vsel %vm661_vm10, %v2023_v51, %v2025_v15  ;;  %v1976_v28 = vadd.f32 1.0, %v2658_v49  ;;  %v2682_v49 = vld [vmem:[%s2776_s18 + $0x48] sm:$0xff]  ;;  %v2061_v14 = vsel %vm661_vm10, %v2059_v33, %v2060_v31 }
 0x434   : > { %v2660_v23 = vpop.eup %2659  ;;  %v2052_v34 = vadd.f32 %v2678_v40, %v2026_v30  ;;  %v2027_v2 = vrot.slane %v2003_v12, 5  ;;  %v2683_v30 = vld [vmem:[%s2776_s18 + $0x58] sm:$0xff]  ;;  %v2075_v17 = vsel %vm661_vm10, %v2072_v36, %v2074_v58  ;;  %v2077_v1 = vsel %vm661_vm10, %v2074_v58, %v2076_v25  ;;  %v2684_v40 = vld [vmem:[%s2776_s18 + $0x50] sm:$0xff] }
 0x435   : > { %v1977_v0 = vadd.f32 1.0, %v2660_v23  ;;  %2669 = vrcp.f32 %v1976_v28 }
 0x436   : > { %v2662_v13 = vpop.eup %2661  ;;  %v2093_v16 = vmul.f32 %v2067_v41, %v2052_v34  ;;  %v2028_v57 = vsel %vm661_vm10, %v2025_v15, %v2027_v2 }
 0x437   : > { %2671 = vrcp.f32 %v1977_v0  ;;  %v2053_v7 = vadd.f32 %v2679_v22, %v2028_v57  ;;  %v2004_v21 = vmul.f32 %v2662_v13, %v1796_v50 }
 0x438   : > { %v2664_v46 = vpop.eup %2663  ;;  %2107 = vst.msk [vmem:[%s2782_s21 + $0x28] sm:$0xff] %vm559_vm0, %v2093_v16 }
 0x439   : > { %v2666_v39 = vpop.eup %2665  ;;  %v2094_v51 = vmul.f32 %v2069_v29, %v2053_v7  ;;  %v2029_v19 = vrot.slane %v2004_v21, 5  ;;  %v2005_v61 = vmul.f32 %v2664_v46, %v1799_v43  ;;  %v2685_v7 = vld [vmem:[%s2776_s18 + $0x8] sm:$0xff] }
 0x43a   : > { %v1968_v60 = vadd.f32 1.0, %v2666_v39 }
 0x43b   : > { %v2668_v4 = vpop.eup %2667  ;;  %2108 = vst.msk [vmem:[%s2782_s21 + $0x30] sm:$0xff] %vm559_vm0, %v2094_v51  ;;  %v2030_v48 = vsel %vm661_vm10, %v2027_v2, %v2029_v19  ;;  %v2031_v62 = vrot.slane %v2005_v61, 5 }
 0x43c   : > { %v2054_v42 = vadd.f32 %v2680_v9, %v2030_v48  ;;  %2673 = vrcp.f32 %v1968_v60  ;;  %v1969_v37 = vadd.f32 1.0, %v2668_v4 }
 0x43d   : > { %v2032_v44 = vsel %vm661_vm10, %v2029_v19, %v2031_v62  ;;  %v2687_v19 = vld [vmem:[%s2776_s18 + $0x18] sm:$0xff] }
 0x43e   : > { %v2095_v20 = vmul.f32 %v2071_v3, %v2054_v42  ;;  %v2055_v55 = vadd.f32 %v2681_v53, %v2032_v44  ;;  %2675 = vrcp.f32 %v1969_v37 }
 0x43f   : > { %v2670_v10 = vpop.eup %2669 }
 0x440   : > { %2109 = vst.msk [vmem:[%s2782_s21 + $0x38] sm:$0xff] %vm559_vm0, %v2095_v20  ;;  %v2096_v56 = vmul.f32 %v2073_v45, %v2055_v55  ;;  %v2006_v26 = vmul.f32 %v2670_v10, %v1804_v52 }
 0x441   : > { %v2672_v59 = vpop.eup %2671 }
 0x442   : > { %v2007_v27 = vmul.f32 %v2672_v59, %v1807_v32  ;;  %2110 = vst.msk [vmem:[%s2782_s21 + $0x40] sm:$0xff] %vm559_vm0, %v2096_v56  ;;  %v2033_v5 = vrot.slane %v2006_v26, 5 }
 0x444   : > { %v2035_v47 = vrot.slane %v2007_v27, 5  ;;  %v2034_v15 = vsel %vm661_vm10, %v2031_v62, %v2033_v5 }
 0x445   : > { %v2056_v12 = vadd.f32 %v2682_v49, %v2034_v15 }
 0x446   : > { %v2036_v23 = vsel %vm661_vm10, %v2033_v5, %v2035_v47  ;;  %v2058_v28 = vadd.f32 %v2683_v30, %v2035_v47  ;;  %v2674_v35 = vpop.eup %2673 }
 0x447   : > { %v2057_v34 = vadd.f32 %v2684_v40, %v2036_v23  ;;  %v2097_v2 = vmul.f32 %v2075_v17, %v2056_v12  ;;  %v1998_v41 = vmul.f32 %v2674_v35, %v1772_v8 }
 0x448   : > { %v2099_v0 = vmul.f32 %v2076_v25, %v2058_v28  ;;  %v2676_v50 = vpop.eup %2675 }
 0x449   : > { %v2098_v13 = vmul.f32 %v2077_v1, %v2057_v34  ;;  %2111 = vst.msk [vmem:[%s2782_s21 + $0x48] sm:$0xff] %vm559_vm0, %v2097_v2  ;;  %v2018_v57 = vrot.slane %v1998_v41, 5  ;;  %v1999_v22 = vmul.f32 %v2676_v50, %v1775_v63 }
 0x44a   : > { %v2101_v16 = vsel %vm661_vm10, %v2099_v0, 0.0 }
 0x44b   : > { %2112 = vst.msk [vmem:[%s2782_s21 + $0x50] sm:$0xff] %vm559_vm0, %v2098_v13  ;;  %2113 = vst.msk [vmem:[%s2782_s21 + $0x58] sm:$0xff] %vm559_vm0, %v2101_v16  ;;  %v2048_v21 = vadd.f32 %v2685_v7, %v2018_v57  ;;  %v2019_v43 = vrot.slane %v1999_v22, 5 }
 0x44d   : > { %v2089_v46 = vmul.f32 %v2059_v33, %v2048_v21  ;;  %v2020_v29 = vsel %vm661_vm10, %v2018_v57, %v2019_v43  ;;  %v2022_v39 = vsel %vm661_vm10, %v2019_v43, %v2021_v54 }
 0x44e   : > { %v2049_v51 = vadd.f32 %v2686_v18, %v2020_v29  ;;  %v2050_v61 = vadd.f32 %v2687_v19, %v2022_v39 }
 0x44f   : > { %v2100_v60 = vsel %vm661_vm10, 0.0, %v2089_v46 }
 0x450   : > { %2103 = vst.msk [vmem:[%s2782_s21 + $0x8] sm:$0xff] %vm559_vm0, %v2100_v60  ;;  %v2090_v4 = vmul.f32 %v2061_v14, %v2049_v51  ;;  %v2091_v36 = vmul.f32 %v2063_v24, %v2050_v61 }
 0x452   : > { %2104 = vst.msk [vmem:[%s2782_s21 + $0x10] sm:$0xff] %vm559_vm0, %v2090_v4  ;;  %2105 = vst.msk [vmem:[%s2782_s21 + $0x18] sm:$0xff] %vm559_vm0, %v2091_v36 }
 0x453 PF: > { %s20_s13 = sadd.s32 1, %s2694_s13  }
 0x454   : > { %p17_p4 = scmp.ge.s32.totalorder %s20_s13, 4  }
 0x456   :  { %19 = sbr.rel (!%p17_p4) target bundleno = 1 (0x1), region = 93 }

// kernel: _forward.5
= control target key start
LH: loop header
LB: loop body
LE: loop exit
PB: predicated region body
PF: predicated region fallthrough
CT: control target
= control target key end

     0   :  { %s2988_s21 = smov 0   ;;  %s4227_s0 = inlined_call_operand.vmem [shape: f32[2,100,8], index: 0, kind: input, shape index: {}]   ;;  %s4228_s1 = inlined_call_operand.vmem [shape: f32[2,100,8], index: 1, kind: input, shape index: {}]   ;;  %s4229_s2 = inlined_call_operand.vmem [shape: f32[2,100,8], index: 2, kind: input, shape index: {}]   ;;  %s4230_s3 = inlined_call_operand.vmem [shape: f32[80,1], index: 3, kind: input, shape index: {}]   ;;  %s4231_s4 = inlined_call_operand.vmem [shape: bf16[64,8], index: 4, kind: input, shape index: {}]   ;;  %s4232_s5 = inlined_call_operand.vmem [shape: bf16[16,8], index: 5, kind: input, shape index: {}]   ;;  %s4233_s6 = inlined_call_operand.vmem [shape: bf16[16,8], index: 6, kind: input, shape index: {}]   ;;  %s4234_s7 = inlined_call_operand.vmem [shape: f32[1,8], index: 7, kind: input, shape index: {}]   ;;  %s4235_s8 = inlined_call_operand.vmem [shape: bf16[64,8], index: 8, kind: input, shape index: {}]   ;;  %s4236_s9 = inlined_call_operand.vmem [shape: bf16[64,8], index: 9, kind: input, shape index: {}]   ;;  %s4237_s10 = inlined_call_operand.vmem [shape: f32[1,8], index: 10, kind: input, shape index: {}]   ;;  %s4238_s11 = inlined_call_operand.vmem [shape: f32[1,8], index: 11, kind: input, shape index: {}]   ;;  %s4239_s12 = inlined_call_operand.vmem [shape: f32[2,100,8], index: 12, kind: output, shape index: {}]  }
   0x1 LB: > { %s2354_s22 = sadd.s32 4294967295, %s2914_s21   ;;  %p2358_p0 = scmp.ge.s32.totalorder %s2914_s21, 1  ;;  %s2914_s21 = sphi %s2988_s21, %s22_s21  }
   0x2   : > { %p382_p1 = scmp.lt.s32.totalorder %s2914_s21, 3 }
   0x4   : > { %p383_p2 = pnand %p2358_p0, %p382_p1 }
   0x5   : > { %p434_p3 = scmp.lt.s32.totalorder (!%p383_p2), %s2354_s22, 1  ;;  %v2916_v0 = vmov (!%p383_p2), 0.0   ;;  %vm633_vm0 = vcmask (!%p383_p2), 64512   ;;  %vm2273_vm1 = vcmask (!%p383_p2), 60416   ;;  %s2917_s15 = smov (!%p383_p2), 8  }
   0x6   : > { %386 = sbr.rel (%p383_p2) target bundleno = 1074 (0x432), region = 68  ;;  %2499 = vmatprep.subr.bf16.mxu0 (!%p383_p2), %v2916_v0  ;;  %2627 = vmatprep.subr.bf16.mxu1 (!%p383_p2), %v2916_v0  ;;  %s2921_s24 = smov (!%p383_p2), 48  }
   0xd   : > { %s4288_s22 = smov (!%p434_p3, %s2354_s22), 1 }
   0xe   : > { %s2998_s23 = smul.u32 104, %s4288_s22  ;;  %s2919_s22 = smov 32  }
  0x10   : > { %s3004_s26 = scalar_lea.vmem %s4227_s0, %s2998_s23  ;;  %s3010_s29 = scalar_lea.vmem %s4239_s12, %s2998_s23 }
  0x11   : > { %v3013_v1 = vld [vmem:[%s3004_s26] sm:$0xff]  ;;  %v3016_v2 = vld [vmem:[%s3004_s26 + $0x8] sm:$0xff]  ;;  %2261 = vst.msk [vmem:[%s3010_s29] sm:$0xff] %vm633_vm0, %v2916_v0  ;;  %v3034_v11 = vld [vmem:[%s3004_s26 + $0x10] sm:$0xff]  ;;  %s3068_s14 = scalar_lea.vmem %s4228_s1, %s2998_s23  ;;  %s3373_s20 = scalar_lea.vmem %s4229_s2, %s2998_s23 }
  0x12   : > { %2274 = vst.msk [vmem:[%s3010_s29 + $0x60] sm:$0xf] %vm2273_vm1, %v2916_v0  ;;  %v3024_v3 = vld [vmem:[%s3004_s26 + $0x20] sm:$0xff]  ;;  %v477_v4 = vand.u32 2147483647, %v3013_v1  ;;  %v3029_v6 = vld [vmem:[%s3004_s26 + $0x28] sm:$0xff] }
  0x13   : > { %v478_v5 = vand.u32 2147483647, %v3016_v2  ;;  %v481_v7 = vand.u32 2147483647, %v3024_v3  ;;  %v482_v10 = vand.u32 2147483647, %v3029_v6 }
  0x14   : > { %v489_v8 = vsub.f32 0.0, %v477_v4  ;;  %v3037_v13 = vld [vmem:[%s3004_s26 + $0x18] sm:$0xff]  ;;  %v479_v14 = vand.u32 2147483647, %v3034_v11  ;;  %v3042_v22 = vld [vmem:[%s3004_s26 + $0x30] sm:$0xff]  ;;  %v3049_v27 = vld [vmem:[%s3004_s26 + $0x40] sm:$0xff] }
  0x15   : > { %v490_v9 = vsub.f32 0.0, %v478_v5  ;;  %v493_v12 = vsub.f32 0.0, %v481_v7  ;;  %v494_v17 = vsub.f32 0.0, %v482_v10  ;;  %v480_v19 = vand.u32 2147483647, %v3037_v13  ;;  %v3045_v23 = vld [vmem:[%s3004_s26 + $0x38] sm:$0xff] }
  0x16   : > { %v501_v15 = vmul.f32 1.442695, %v489_v8  ;;  %v491_v20 = vsub.f32 0.0, %v479_v14  ;;  %v483_v26 = vand.u32 2147483647, %v3042_v22  ;;  %vm537_vm2 = vcmp.gt.f32.partialorder %v3013_v1, 0.0 }
  0x17   : > { %v503_v16 = vmul.f32 1.442695, %v490_v9  ;;  %v509_v18 = vmul.f32 1.442695, %v493_v12  ;;  %v511_v21 = vmul.f32 1.442695, %v494_v17 }
  0x18   : > { %2771 = vpow2.f32 %v501_v15  ;;  %v492_v24 = vsub.f32 0.0, %v480_v19  ;;  %v505_v25 = vmul.f32 1.442695, %v491_v20  ;;  %v561_v28 = vsub.f32 0.0, %v3013_v1  ;;  %v3055_v30 = vld [vmem:[%s3004_s26 + $0x48] sm:$0xff]  ;;  %v3062_v36 = vld [vmem:[%s3004_s26 + $0x50] sm:$0xff] }
  0x19   : > { %2773 = vpow2.f32 %v503_v16  ;;  %v484_v29 = vand.u32 2147483647, %v3045_v23  ;;  %vm538_vm3 = vcmp.gt.f32.partialorder %v3016_v2, 0.0  ;;  %v562_v31 = vsub.f32 0.0, %v3016_v2  ;;  %v3074_v40 = vld [vmem:[%s3004_s26 + $0x58] sm:$0xff]  ;;  %v3081_v46 = vld [vmem:[%s3068_s14 + $0xb] sm:$0xff] }
  0x1a   : > { %2775 = vpow2.f32 %v509_v18  ;;  %v507_v32 = vmul.f32 1.442695, %v492_v24  ;;  %v495_v33 = vsub.f32 0.0, %v483_v26  ;;  %vm541_vm4 = vcmp.gt.f32.partialorder %v3024_v3, 0.0  ;;  %v3088_v53 = vld [vmem:[%s3068_s14 + $0x13] sm:$0xff]  ;;  %s2920_s23 = smov 16  }
  0x1b   : > { %2777 = vpow2.f32 %v511_v21  ;;  %v496_v34 = vsub.f32 0.0, %v484_v29  ;;  %v485_v35 = vand.u32 2147483647, %v3049_v27  ;;  %vm542_vm5 = vcmp.gt.f32.partialorder %v3029_v6, 0.0 }
  0x1c   : > { %2779 = vpow2.f32 %v505_v25  ;;  %v565_v37 = vsub.f32 0.0, %v3024_v3  ;;  %v513_v38 = vmul.f32 1.442695, %v495_v33  ;;  %v486_v39 = vand.u32 2147483647, %v3055_v30  ;;  %v3137_v33 = vld [vmem:[%s3068_s14 + $0x43] sm:$0xff] }
  0x1d   : > { %2781 = vpow2.f32 %v507_v32  ;;  %v566_v41 = vsub.f32 0.0, %v3029_v6  ;;  %vm539_vm6 = vcmp.gt.f32.partialorder %v3034_v11, 0.0  ;;  %v515_v42 = vmul.f32 1.442695, %v496_v34  ;;  %v3134_v32 = vld [vmem:[%s3068_s14 + $0x3b] sm:$0xff] }
  0x1e   : > { %v497_v43 = vsub.f32 0.0, %v485_v35  ;;  %vm540_vm7 = vcmp.gt.f32.partialorder %v3037_v13, 0.0  ;;  %2783 = vpow2.f32 %v513_v38  ;;  %v498_v44 = vsub.f32 0.0, %v486_v39 }
  0x1f   : > { %v487_v45 = vand.u32 2147483647, %v3062_v36  ;;  %v563_v47 = vsub.f32 0.0, %v3034_v11  ;;  %2785 = vpow2.f32 %v515_v42  ;;  %v488_v49 = vand.u32 2147483647, %v3074_v40 }
  0x20   : > { %v517_v48 = vmul.f32 1.442695, %v497_v43  ;;  %v564_v50 = vsub.f32 0.0, %v3037_v13  ;;  %vm543_vm8 = vcmp.gt.f32.partialorder %v3042_v22, 0.0  ;;  %v519_v51 = vmul.f32 1.442695, %v498_v44 }
  0x21   : > { %v499_v52 = vsub.f32 0.0, %v487_v45  ;;  %vm544_vm9 = vcmp.gt.f32.partialorder %v3045_v23, 0.0  ;;  %v567_v55 = vsub.f32 0.0, %v3042_v22  ;;  %v500_v56 = vsub.f32 0.0, %v488_v49 }
  0x22   : > { %v2772_v54 = vpop.eup %2771  ;;  %2787 = vpow2.f32 %v517_v48  ;;  %v822_v57 = vand.u32 2147483647, %v3081_v46  ;;  %v568_v60 = vsub.f32 0.0, %v3045_v23  ;;  %vm545_vm10 = vcmp.gt.f32.partialorder %v3049_v27, 0.0  ;;  %v3155_v48 = vld [vmem:[%s3068_s14 + $0x1b] sm:$0xff] }
  0x23   : > { %v2774_v58 = vpop.eup %2773  ;;  %v2363_v59 = vadd.f32 -1.0, %v2772_v54  ;;  %2789 = vpow2.f32 %v519_v51  ;;  %v521_v61 = vmul.f32 1.442695, %v499_v52  ;;  %v523_v4 = vmul.f32 1.442695, %v500_v56 }
  0x24   : > { %v2776_v62 = vpop.eup %2775  ;;  %v2364_v63 = vadd.f32 -1.0, %v2774_v58  ;;  %v823_v5 = vand.u32 2147483647, %v3088_v53  ;;  %v832_v7 = vsub.f32 0.0, %v822_v57  ;;  %vm546_vm11 = vcmp.gt.f32.partialorder %v3055_v30, 0.0  ;;  %v3168_v58 = vld [vmem:[%s3068_s14 + $0x23] sm:$0xff] }
  0x25   : > { %v2778_v8 = vpop.eup %2777  ;;  %v573_v9 = vsel %vm537_vm2, %v2363_v59, %v561_v28  ;;  %v3101_v10 = vsel %vm537_vm2, %v3013_v1, %v2363_v59  ;;  %v2367_v12 = vadd.f32 -1.0, %v2776_v62  ;;  %2791 = vpow2.f32 %v521_v61 }
  0x26   : > { %v2780_v14 = vpop.eup %2779  ;;  %v3106_v15 = vsel %vm538_vm3, %v3016_v2, %v2364_v63  ;;  %v574_v16 = vsel %vm538_vm3, %v2364_v63, %v562_v31  ;;  %v2368_v17 = vadd.f32 -1.0, %v2778_v8  ;;  %2793 = vpow2.f32 %v523_v4 }
  0x27   : > { %v2782_v18 = vpop.eup %2781  ;;  %v2645_v19 = vpack.i.bf16 %v574_v16, %v573_v9  ;;  %v577_v1 = vsel %vm541_vm4, %v2367_v12, %v565_v37  ;;  %v3115_v20 = vsel %vm541_vm4, %v3024_v3, %v2367_v12  ;;  %v3117_v21 = vadd.f32 -1.0, %v2780_v14 }
  0x28   : > { %v3122_v2 = vsel %vm542_vm5, %v3029_v6, %v2368_v17  ;;  %v578_v24 = vsel %vm542_vm5, %v2368_v17, %v566_v41  ;;  %v3126_v25 = vadd.f32 -1.0, %v2782_v18  ;;  %v833_v26 = vsub.f32 0.0, %v823_v5  ;;  %v2784_v28 = vpop.eup %2783  ;;  %v3186_v17 = vld [vmem:[%s3068_s14 + $0x4b] sm:$0xff] }
  0x29   : > { %2646 = vrot.lane.b32.xlu0 %v2645_v19, %s2917_s15  ;;  %v2655_v29 = vpack.i.bf16 %v578_v24, %v577_v1  ;;  %v575_v3 = vsel %vm539_vm6, %v3117_v21, %v563_v47  ;;  %v842_v31 = vmul.f32 1.442695, %v832_v7  ;;  %v2786_v6 = vpop.eup %2785  ;;  %v3142_v35 = vadd.f32 -1.0, %v2784_v28  ;;  %v3192_v19 = vld [vmem:[%s3068_s14 + $0x53] sm:$0xff] }
  0x2a   : > { %v576_v34 = vsel %vm540_vm7, %v3126_v25, %v564_v50  ;;  %v569_v37 = vsub.f32 0.0, %v3049_v27  ;;  %v844_v38 = vmul.f32 1.442695, %v833_v26  ;;  %v3146_v41 = vadd.f32 -1.0, %v2786_v6 }
  0x2b   : > { %2656 = vrot.lane.b32.xlu1 %v2655_v29, %s2917_s15  ;;  %v2650_v39 = vpack.i.bf16 %v576_v34, %v575_v3  ;;  %v570_v42 = vsub.f32 0.0, %v3055_v30  ;;  %2795 = vpow2.f32 %v842_v31  ;;  %v579_v44 = vsel %vm543_vm8, %v3142_v35, %v567_v55 }
  0x2c   : > { %v2788_v43 = vpop.eup %2787  ;;  %2797 = vpow2.f32 %v844_v38  ;;  %v828_v45 = vand.u32 2147483647, %v3134_v32  ;;  %v829_v47 = vand.u32 2147483647, %v3137_v33  ;;  %v580_v50 = vsel %vm544_vm9, %v3146_v41, %v568_v60 }
  0x2d   : > { %v2790_v49 = vpop.eup %2789  ;;  %2651 = vrot.lane.b32.xlu0 %v2650_v39, %s2917_s15  ;;  %v3161_v51 = vadd.f32 -1.0, %v2788_v43  ;;  %vm547_vm12 = vcmp.gt.f32.partialorder %v3062_v36, 0.0  ;;  %v571_v52 = vsub.f32 0.0, %v3062_v36  ;;  %v2660_v54 = vpack.i.bf16 %v580_v50, %v579_v44  ;;  %v3208_v43 = vld [vmem:[%s3068_s14 + $0x2b] sm:$0xff]  ;;  %v3211_v44 = vld [vmem:[%s3068_s14 + $0x33] sm:$0xff] }
  0x2e   : > { %v3165_v55 = vadd.f32 -1.0, %v2790_v49  ;;  %v838_v56 = vsub.f32 0.0, %v828_v45  ;;  %v839_v57 = vsub.f32 0.0, %v829_v47  ;;  %vm548_vm13 = vcmp.gt.f32.partialorder %v3074_v40, 0.0 }
  0x2f   : > { %v2792_v59 = vpop.eup %2791  ;;  %v581_v61 = vsel %vm545_vm10, %v3161_v51, %v569_v37  ;;  %v572_v60 = vsub.f32 0.0, %v3074_v40  ;;  %v824_v62 = vand.u32 2147483647, %v3155_v48  ;;  %2661 = vrot.lane.b32.xlu1 %v2660_v54, %s2917_s15  ;;  %v825_v14 = vand.u32 2147483647, %v3168_v58 }
  0x30   : > { %v2794_v63 = vpop.eup %2793  ;;  %v582_v4 = vsel %vm546_vm11, %v3165_v55, %v570_v42  ;;  %v3180_v5 = vadd.f32 -1.0, %v2792_v59  ;;  %v854_v7 = vmul.f32 1.442695, %v838_v56  ;;  %v856_v8 = vmul.f32 1.442695, %v839_v57 }
  0x31   : > { %v2665_v9 = vpack.i.bf16 %v582_v4, %v581_v61  ;;  %v3182_v12 = vadd.f32 -1.0, %v2794_v63  ;;  %v834_v16 = vsub.f32 0.0, %v824_v62  ;;  %v835_v24 = vsub.f32 0.0, %v825_v14 }
  0x32   : > { %v583_v18 = vsel %vm547_vm12, %v3180_v5, %v571_v52  ;;  %2799 = vpow2.f32 %v854_v7  ;;  %vm872_vm14 = vcmp.gt.f32.partialorder %v3081_v46, 0.0  ;;  %v892_v29 = vsub.f32 0.0, %v3081_v46 }
  0x33   : > { %2666 = vrot.lane.b32.xlu0 %v2665_v9, %s2917_s15  ;;  %v584_v1 = vsel %vm548_vm13, %v3182_v12, %v572_v60  ;;  %2801 = vpow2.f32 %v856_v8  ;;  %v846_v26 = vmul.f32 1.442695, %v834_v16  ;;  %v830_v3 = vand.u32 2147483647, %v3186_v17 }
  0x34   : > { %v2670_v28 = vpack.i.bf16 %v584_v1, %v583_v18  ;;  %v893_v6 = vsub.f32 0.0, %v3088_v53  ;;  %v848_v34 = vmul.f32 1.442695, %v835_v24  ;;  %v831_v37 = vand.u32 2147483647, %v3192_v19 }
  0x35   : > { %v2796_v31 = vpop.eup %2795  ;;  %2803 = vpow2.f32 %v846_v26  ;;  %vm873_vm15 = vcmp.gt.f32.partialorder %v3088_v53, 0.0  ;;  %v840_v42 = vsub.f32 0.0, %v830_v3  ;;  %v3222_v52 = vsel %vm539_vm6, %v3034_v11, %v3117_v21 }
  0x36   : > { %v2798_v38 = vpop.eup %2797  ;;  %2671 = vrot.lane.b32.xlu1 %v2670_v28, %s2917_s15  ;;  %v3204_v39 = vadd.f32 -1.0, %v2796_v31  ;;  %2805 = vpow2.f32 %v848_v34  ;;  %v841_v47 = vsub.f32 0.0, %v831_v37  ;;  %v3228_v54 = vsel %vm540_vm7, %v3037_v13, %v3126_v25 }
  0x37   : > { %v3213_v45 = vadd.f32 -1.0, %v2798_v38  ;;  %v858_v50 = vmul.f32 1.442695, %v840_v42  ;;  %v826_v59 = vand.u32 2147483647, %v3208_v43  ;;  %v898_v11 = vsub.f32 0.0, %v3134_v32 }
  0x38   : > { %v902_v49 = vsel %vm872_vm14, %v3204_v39, %v892_v29  ;;  %v860_v57 = vmul.f32 1.442695, %v841_v47  ;;  %v827_v61 = vand.u32 2147483647, %v3211_v44  ;;  %vm878_vm1 = vcmp.gt.f32.partialorder %v3134_v32, 0.0 }
  0x39   : > { %v903_v56 = vsel %vm873_vm15, %v3213_v45, %v893_v6  ;;  %2807 = vpow2.f32 %v858_v50  ;;  %v836_v21 = vsub.f32 0.0, %v826_v59  ;;  %v899_v13 = vsub.f32 0.0, %v3137_v33 }
  0x3a   : > { %v2675_v60 = vpack.i.bf16 %v903_v56, %v902_v49  ;;  %2809 = vpow2.f32 %v860_v57  ;;  %v837_v62 = vsub.f32 0.0, %v827_v61  ;;  %v3243_v25 = vsel %vm543_vm8, %v3042_v22, %v3142_v35 }
  0x3b   : > { %v3249_v4 = vsel %vm544_vm9, %v3045_v23, %v3146_v41  ;;  %vm879_vm2 = vcmp.gt.f32.partialorder %v3137_v33, 0.0  ;;  %v850_v9 = vmul.f32 1.442695, %v836_v21  ;;  %v894_v18 = vsub.f32 0.0, %v3155_v48  ;;  %v2757_v21 = vld [vmem:[%s4232_s5] sm:$0xff]  }
  0x3c   : > { %v2800_v63 = vpop.eup %2799  ;;  %2676 = vrot.lane.b32.xlu0 %v2675_v60, %s2917_s15  ;;  %v852_v14 = vmul.f32 1.442695, %v837_v62  ;;  %vm874_vm3 = vcmp.gt.f32.partialorder %v3155_v48, 0.0  ;;  %v895_v41 = vsub.f32 0.0, %v3168_v58  ;;  %vm875_vm4 = vcmp.gt.f32.partialorder %v3168_v58, 0.0  ;;  %2500 = vmatpush3.bf16.msra.mxu0 %v2757_v21 }
  0x3d   : > { %v2802_v7 = vpop.eup %2801  ;;  %v2381_v8 = vadd.f32 -1.0, %v2800_v63  ;;  %2811 = vpow2.f32 %v850_v9  ;;  %v3266_v3 = vsel %vm545_vm10, %v3049_v27, %v3161_v51  ;;  %v900_v31 = vsub.f32 0.0, %v3186_v17  ;;  %2628 = vmatpush3.bf16.msra.mxu1 %v2757_v21  ;;  %2549 = vmatprep.subr.bf16.mxu0 %v2916_v0  ;;  %v3387_v9 = vld [vmem:[%s3373_s20 + $0x23] sm:$0xff] }
  0x3e   : > { %v2382_v16 = vadd.f32 -1.0, %v2802_v7  ;;  %2813 = vpow2.f32 %v852_v14  ;;  %v3274_v6 = vsel %vm546_vm11, %v3055_v30, %v3165_v55  ;;  %vm880_vm5 = vcmp.gt.f32.partialorder %v3186_v17, 0.0  ;;  %2521 = vmatprep.subr.bf16.mxu1 %v2916_v0  ;;  %v3384_v7 = vld [vmem:[%s3373_s20 + $0x1b] sm:$0xff] }
  0x3f   : > { %v2804_v1 = vpop.eup %2803  ;;  %v908_v22 = vsel %vm878_vm1, %v2381_v8, %v898_v11  ;;  %v901_v38 = vsub.f32 0.0, %v3192_v19  ;;  %vm881_vm6 = vcmp.gt.f32.partialorder %v3192_v19, 0.0  ;;  %v3288_v55 = vsel %vm547_vm12, %v3062_v36, %v3180_v5 }
  0x40   : > { %v909_v23 = vsel %vm879_vm2, %v2382_v16, %v899_v13  ;;  %v2377_v35 = vadd.f32 -1.0, %v2804_v1  ;;  %v2806_v24 = vpop.eup %2805  ;;  %v3294_v49 = vsel %vm548_vm13, %v3074_v40, %v3182_v12  ;;  %v896_v56 = vsub.f32 0.0, %v3208_v43 }
  0x41   : > { %v2680_v26 = vpack.i.bf16 %v909_v23, %v908_v22  ;;  %v2378_v28 = vadd.f32 -1.0, %v2806_v24  ;;  %vm876_vm7 = vcmp.gt.f32.partialorder %v3208_v43, 0.0  ;;  %v897_v61 = vsub.f32 0.0, %v3211_v44  ;;  %v3392_v22 = vld [vmem:[%s3373_s20 + $0x2b] sm:$0xff] }
  0x42   : > { %v904_v29 = vsel %vm874_vm3, %v2377_v35, %v894_v18  ;;  %vm877_vm8 = vcmp.gt.f32.partialorder %v3211_v44, 0.0  ;;  %v3317_v62 = vsel %vm872_vm14, %v3081_v46, %v3204_v39  ;;  %v3323_v63 = vsel %vm873_vm15, %v3088_v53, %v3213_v45 }
  0x43   : > { %2681 = vrot.lane.b32.xlu1 %v2680_v26, %s2917_s15  ;;  %v2808_v34 = vpop.eup %2807  ;;  %v905_v37 = vsel %vm875_vm4, %v2378_v28, %v895_v41  ;;  %vm2918_vm9 = vmmov 0   ;;  %v3330_v13 = vsel %vm878_vm1, %v3134_v32, %v2381_v8  ;;  %v3335_v46 = vsel %vm879_vm2, %v3137_v33, %v2382_v16 }
  0x44   : > { %v2810_v27 = vpop.eup %2809  ;;  %v2685_v51 = vpack.i.bf16 %v905_v37, %v904_v29  ;;  %v2383_v42 = vadd.f32 -1.0, %v2808_v34  ;;  %2501 = vmatprep.mubr.msk.bf16.mxu0 %vm2918_vm9, %v2916_v0  ;;  %2513 = vmatprep.mubr.msk.bf16.mxu1 %vm2918_vm9, %v2916_v0  ;;  %v3342_v53 = vsel %vm874_vm3, %v3155_v48, %v2377_v35  ;;  %v3347_v39 = vsel %vm875_vm4, %v3168_v58, %v2378_v28  ;;  %v3395_v35 = vld [vmem:[%s3373_s20 + $0x33] sm:$0xff]  ;;  %v3400_v29 = vld [vmem:[%s3373_s20 + $0x3b] sm:$0xff]  ;;  %v3403_v37 = vld [vmem:[%s3373_s20 + $0x43] sm:$0xff] }
  0x45   : > { %v2384_v47 = vadd.f32 -1.0, %v2810_v27  ;;  %v1183_v16 = vand.u32 2147483647, %v3384_v7  ;;  %v1184_v18 = vand.u32 2147483647, %v3387_v9  ;;  %vm4242_vm12 = vcmask 1042432  }
  0x46   : > { %2686 = vrot.lane.b32.xlu0 %v2685_v51, %s2917_s15  ;;  %v910_v30 = vsel %vm880_vm5, %v2383_v42, %v900_v31  ;;  %v3352_v32 = vsel %vm880_vm5, %v3186_v17, %v2383_v42  ;;  %v3376_v17 = vld [vmem:[%s3373_s20 + $0xb] sm:$0xff]  ;;  %v1185_v24 = vand.u32 2147483647, %v3392_v22  ;;  %v1186_v26 = vand.u32 2147483647, %v3395_v35 }
  0x47   : > { %v911_v50 = vsel %vm881_vm6, %v2384_v47, %v901_v38  ;;  %v2812_v57 = vpop.eup %2811  ;;  %v3357_v33 = vsel %vm881_vm6, %v3192_v19, %v2384_v47  ;;  %v3379_v19 = vld [vmem:[%s3373_s20 + $0x13] sm:$0xff]  ;;  %v1193_v23 = vsub.f32 0.0, %v1183_v16  ;;  %v1194_v41 = vsub.f32 0.0, %v1184_v18 }
  0x48   : > { %v2690_v59 = vpack.i.bf16 %v911_v50, %v910_v30  ;;  %v2814_v60 = vpop.eup %2813  ;;  %v2379_v36 = vadd.f32 -1.0, %v2812_v57  ;;  %v1195_v34 = vsub.f32 0.0, %v1185_v24  ;;  %v1196_v38 = vsub.f32 0.0, %v1186_v26  ;;  %v3432_v26 = vld [vmem:[%s3373_s20 + $0x53] sm:$0xff] }
  0x49   : > { %v2380_v5 = vadd.f32 -1.0, %v2814_v60  ;;  %v1205_v28 = vmul.f32 1.442695, %v1193_v23  ;;  %v1207_v31 = vmul.f32 1.442695, %v1194_v41  ;;  %vm1231_vm10 = vcmp.gt.f32.partialorder %v3376_v17, 0.0 }
  0x4a   : > { %2691 = vrot.lane.b32.xlu1 %v2690_v59, %s2917_s15  ;;  %v906_v40 = vsel %vm876_vm7, %v2379_v36, %v896_v56  ;;  %v3362_v48 = vsel %vm876_vm7, %v3208_v43, %v2379_v36  ;;  %v1181_v43 = vand.u32 2147483647, %v3376_v17  ;;  %v1187_v27 = vand.u32 2147483647, %v3400_v29 }
  0x4b   : > { %v907_v12 = vsel %vm877_vm8, %v2380_v5, %v897_v61  ;;  %v3367_v58 = vsel %vm877_vm8, %v3211_v44, %v2380_v5  ;;  %v1182_v44 = vand.u32 2147483647, %v3379_v19  ;;  %v1188_v51 = vand.u32 2147483647, %v3403_v37 }
  0x4c   : > { %v2695_v11 = vpack.i.bf16 %v907_v12, %v906_v40  ;;  %v1191_v45 = vsub.f32 0.0, %v1181_v43  ;;  %v1209_v47 = vmul.f32 1.442695, %v1195_v34  ;;  %v1211_v30 = vmul.f32 1.442695, %v1196_v38 }
  0x4d   : > { %v1192_v8 = vsub.f32 0.0, %v1182_v44  ;;  %v1197_v50 = vsub.f32 0.0, %v1187_v27  ;;  %vm1232_vm11 = vcmp.gt.f32.partialorder %v3379_v19, 0.0  ;;  %v1251_v61 = vsub.f32 0.0, %v3376_v17 }
  0x4e   : > { %2696 = vrot.lane.b32.xlu0 %v2695_v11, %s2917_s15  ;;  %v1201_v14 = vmul.f32 1.442695, %v1191_v45  ;;  %v1252_v60 = vsub.f32 0.0, %v3379_v19  ;;  %v1198_v36 = vsub.f32 0.0, %v1188_v51  ;;  %v1253_v12 = vsub.f32 0.0, %v3384_v7  ;;  %v3415_v11 = vld [vmem:[%s3373_s20 + $0x4b] sm:$0xff] }
  0x4f   : > { %v1203_v1 = vmul.f32 1.442695, %v1192_v8  ;;  %v1254_v44 = vsub.f32 0.0, %v3387_v9  ;;  %v1213_v45 = vmul.f32 1.442695, %v1197_v50  ;;  %vm1233_vm14 = vcmp.gt.f32.partialorder %v3384_v7, 0.0 }
  0x50   : > { %2815 = vpow2.f32 %v1201_v14  ;;  %vm4241_vm13 = vsmask.f32 7424  ;;  %v1215_v24 = vmul.f32 1.442695, %v1198_v36  ;;  %vm1234_vm15 = vcmp.gt.f32.partialorder %v3387_v9, 0.0 }
  0x51   : > { %2817 = vpow2.f32 %v1203_v1  ;;  %vm4240_vm1 = vsmask.f32 2304  ;;  %vm1235_vm2 = vcmp.gt.f32.partialorder %v3392_v22, 0.0  ;;  %vm1236_vm3 = vcmp.gt.f32.partialorder %v3395_v35, 0.0 }
  0x52   : > { %2819 = vpow2.f32 %v1205_v28  ;;  %v1189_v28 = vand.u32 2147483647, %v3415_v11  ;;  %vm1237_vm4 = vcmp.gt.f32.partialorder %v3400_v29, 0.0  ;;  %vm771_vm5 = vcmask 130048  }
  0x53   : > { %2821 = vpow2.f32 %v1207_v31  ;;  %vm1238_vm6 = vcmp.gt.f32.partialorder %v3403_v37, 0.0  ;;  %vm1239_vm7 = vcmp.gt.f32.partialorder %v3415_v11, 0.0  ;;  %vm1240_vm8 = vcmp.gt.f32.partialorder %v3432_v26, 0.0 }
  0x54   : > { %2823 = vpow2.f32 %v1209_v47  ;;  %v1199_v36 = vsub.f32 0.0, %v1189_v28 }
  0x55   : > { %2825 = vpow2.f32 %v1211_v30 }
  0x56   : > { %2827 = vpow2.f32 %v1213_v45 }
  0x57   : > { %2829 = vpow2.f32 %v1215_v24 }
  0x5a   : > { %v2816_v42 = vpop.eup %2815 }
  0x5b   : > { %v2818_v56 = vpop.eup %2817  ;;  %v3409_v59 = vadd.f32 -1.0, %v2816_v42 }
  0x5c   : > { %v3417_v43 = vadd.f32 -1.0, %v2818_v56  ;;  %v1190_v56 = vand.u32 2147483647, %v3432_v26 }
  0x5d   : > { %v3429_v41 = vsel %vm1231_vm10, %v3409_v59, %v1251_v61 }
  0x5e   : > { %v1262_v47 = vsel %vm1232_vm11, %v3417_v43, %v1252_v60 }
  0x9b   : > { %v2647_v57 = vpop.permute.xlu0 %2646 }
  0x9c   : > { %v2649_v5 = vunpack.i.h.bf16 %v2647_v57  ;;  %v2648_v40 = vunpack.i.l.bf16 %v2647_v57 }
  0x9d   : > { %v2657_v21 = vpop.permute.xlu1 %2656 }
  0x9e   : > { %v635_v8 = vsel %vm633_vm0, %v3106_v15, %v2649_v5  ;;  %v634_v14 = vsel %vm633_vm0, %v3101_v10, %v2648_v40  ;;  %v2659_v16 = vunpack.i.h.bf16 %v2657_v21  ;;  %v2658_v18 = vunpack.i.l.bf16 %v2657_v21  ;;  %v2820_v15 = vpop.eup %2819 }
  0x9f   : > { %v3424_v1 = vpack.c.bf16 %v635_v8, %v634_v14  ;;  %v2652_v23 = vpop.permute.xlu0 %2651  ;;  %v2822_v27 = vpop.eup %2821  ;;  %v2700_v40 = vpack.i.bf16 %v1262_v47, %v3429_v41  ;;  %v3456_v21 = vadd.f32 -1.0, %v2820_v15 }
  0xa0   : > { %v639_v10 = vsel %vm633_vm0, %v3122_v2, %v2659_v16  ;;  %v638_v31 = vsel %vm633_vm0, %v3115_v20, %v2658_v18  ;;  %v2654_v34 = vunpack.i.h.bf16 %v2652_v23  ;;  %v2653_v38 = vunpack.i.l.bf16 %v2652_v23  ;;  %v2824_v18 = vpop.eup %2823 }
  0xa1   : > { %v3439_v51 = vpack.c.bf16 %v639_v10, %v638_v31  ;;  %v656_v42 = vshll.u32 %v3424_v1, 16  ;;  %v2662_v30 = vpop.permute.xlu1 %2661  ;;  %v654_v50 = vshrl.u32 %v3424_v1, 16  ;;  %v714_v8 = vrot.slane %v3424_v1, 5  ;;  %v2826_v10 = vpop.eup %2825 }
  0xa2   : > { %v637_v2 = vsel %vm633_vm0, %v3228_v54, %v2654_v34  ;;  %v636_v20 = vsel %vm633_vm0, %v3222_v52, %v2653_v38  ;;  %v2664_v61 = vunpack.i.h.bf16 %v2662_v30  ;;  %v2663_v60 = vunpack.i.l.bf16 %v2662_v30 }
  0xa3   : > { %v3453_v57 = vpack.c.bf16 %v637_v2, %v636_v20  ;;  %v658_v5 = vrot.slane %v656_v42, 1  ;;  %v3458_v54 = vadd.f32 -1.0, %v2822_v27  ;;  %v736_v15 = vrot.slane %v654_v50, 5 }
  0xa4   : > { %v641_v52 = vsel %vm633_vm0, %v3249_v4, %v2664_v61  ;;  %v640_v45 = vsel %vm633_vm0, %v3243_v25, %v2663_v60  ;;  %v737_v4 = vrot.slane %v656_v42, 6  ;;  %v669_v60 = vshll.u32 %v3439_v51, 16 }
  0xa5   : > { %v715_v14 = vrot.slane %v3453_v57, 5  ;;  %v2667_v16 = vpop.permute.xlu0 %2666  ;;  %v3466_v23 = vpack.c.bf16 %v641_v52, %v640_v45  ;;  %v661_v41 = vshll.u32 %v3453_v57, 16  ;;  %v665_v28 = vshrl.u32 %v3453_v57, 16 }
  0xa6   : > { %v2669_v34 = vunpack.i.h.bf16 %v2667_v16  ;;  %v2668_v38 = vunpack.i.l.bf16 %v2667_v16  ;;  %v659_v25 = vor.u32 %v658_v5, %v654_v50  ;;  %v673_v50 = vshrl.u32 %v3439_v51, 16  ;;  %v3481_v5 = vpop.eup %2827 }
  0xa7   : > { %v716_v31 = vsel %vm4242_vm12, %v714_v8, %v715_v14  ;;  %v663_v27 = vrot.slane %v661_v41, 1  ;;  %v739_v47 = vrot.slane %v665_v28, 5  ;;  %v740_v2 = vrot.slane %v661_v41, 6 }
  0xa8   : > { %725 = vrot.lane.b32.xlu0 %v716_v31, %s2919_s22  ;;  %v2672_v20 = vpop.permute.xlu1 %2671  ;;  %v643_v30 = vsel %vm633_vm0, %v3274_v6, %v2669_v34  ;;  %v642_v61 = vsel %vm633_vm0, %v3266_v3, %v2668_v38  ;;  %v717_v6 = vrot.slane %v3439_v51, 5  ;;  %v1200_v3 = vsub.f32 0.0, %v1190_v56 }
  0xa9   : > { %v664_v42 = vsel %vm4241_vm13, %v659_v25, %v663_v27  ;;  %v741_v52 = vor.u32 %v740_v2, %v739_v47  ;;  %v3478_v45 = vpack.c.bf16 %v643_v30, %v642_v61  ;;  %v2674_v8 = vunpack.i.h.bf16 %v2672_v20 }
  0xaa   : > { %697 = vrot.lane.b32.xlu1 %v664_v42, %s2920_s23  ;;  %v2673_v16 = vunpack.i.l.bf16 %v2672_v20  ;;  %v738_v24 = vor.u32 %v737_v4, %v736_v15  ;;  %v1263_v41 = vsel %vm1233_vm14, %v3456_v21, %v1253_v12  ;;  %v1264_v31 = vsel %vm1234_vm15, %v3458_v54, %v1254_v44 }
  0xab   : > { %v1217_v34 = vmul.f32 1.442695, %v1199_v36  ;;  %v671_v38 = vrot.slane %v669_v60, 1  ;;  %v744_v25 = vrot.slane %v669_v60, 6  ;;  %v645_v56 = vsel %vm633_vm0, %v3294_v49, %v2674_v8 }
  0xac   : > { %2701 = vrot.lane.b32.xlu0 %v2700_v40, %s2917_s15  ;;  %v644_v40 = vsel %vm633_vm0, %v3288_v55, %v2673_v16  ;;  %v742_v15 = vsel %vm4240_vm1, %v738_v24, %v741_v52  ;;  %v667_v4 = vor.u32 %v665_v28, %v663_v27  ;;  %v743_v47 = vrot.slane %v673_v50, 5 }
  0xad   : > { %v3501_v12 = vpack.c.bf16 %v645_v56, %v644_v40  ;;  %v718_v44 = vsel %vm4242_vm12, %v715_v14, %v717_v6  ;;  %v1255_v36 = vsub.f32 0.0, %v3392_v22  ;;  %v1219_v2 = vmul.f32 1.442695, %v1200_v3 }
  0xae   : > { %761 = vrot.lane.b32.xlu1 %v742_v15, %s2921_s24  ;;  %v2705_v49 = vpack.i.bf16 %v1264_v31, %v1263_v41  ;;  %v3508_v55 = vadd.f32 -1.0, %v2824_v18  ;;  %v3510_v20 = vadd.f32 -1.0, %v2826_v10  ;;  %v1256_v28 = vsub.f32 0.0, %v3395_v35  ;;  %v2677_v27 = vpop.permute.xlu0 %2676  ;;  %v2830_v10 = vpop.eup %2829 }
  0xaf   : > { %v677_v30 = vshll.u32 %v3466_v23, 16  ;;  %v1257_v14 = vsub.f32 0.0, %v3400_v29  ;;  %v672_v61 = vsel %vm4241_vm13, %v667_v4, %v671_v38  ;;  %v3518_v60 = vor.u32 %v744_v25, %v743_v47 }
  0xb0   : > { %727 = vrot.lane.b32.xlu0 %v718_v44, %s2919_s22  ;;  %v681_v18 = vshrl.u32 %v3466_v23, 16  ;;  %2831 = vpow2.f32 %v1217_v34  ;;  %v719_v42 = vrot.slane %v3466_v23, 5  ;;  %v1258_v8 = vsub.f32 0.0, %v3403_v37 }
  0xb1   : > { %2833 = vpow2.f32 %v1219_v2  ;;  %v2679_v16 = vunpack.i.h.bf16 %v2677_v27  ;;  %v675_v3 = vor.u32 %v673_v50, %v671_v38  ;;  %v1265_v24 = vsel %vm1235_vm2, %v3508_v55, %v1255_v36 }
  0xb2   : > { %699 = vrot.lane.b32.xlu1 %v672_v61, %s2920_s23  ;;  %v1266_v41 = vsel %vm1236_vm3, %v3510_v20, %v1256_v28  ;;  %v679_v31 = vrot.slane %v677_v30, 1  ;;  %v748_v34 = vrot.slane %v677_v30, 6  ;;  %v2678_v56 = vunpack.i.l.bf16 %v2677_v27  ;;  %v2759_v61 = vld [vmem:[%s4231_s4] sm:$0xff]  }
  0xb3   : > { %v953_v25 = vsel %vm633_vm0, %v3323_v63, %v2679_v16  ;;  %v746_v15 = vsel %vm4240_vm1, %v741_v52, %v3518_v60  ;;  %v747_v50 = vrot.slane %v681_v18, 5  ;;  %v720_v47 = vsel %vm4242_vm12, %v717_v6, %v719_v42  ;;  %v2758_v52 = vld [vmem:[%s4233_s6] sm:$0xff]  }
  0xb4   : > { %2706 = vrot.lane.b32.xlu0 %v2705_v49, %s2917_s15  ;;  %v2710_v44 = vpack.i.bf16 %v1266_v41, %v1265_v24  ;;  %v3540_v36 = vadd.f32 -1.0, %v3481_v5  ;;  %v952_v63 = vsel %vm633_vm0, %v3317_v62, %v2678_v56  ;;  %v3548_v2 = vadd.f32 -1.0, %v2830_v10 }
  0xb5   : > { %v2682_v40 = vpop.permute.xlu1 %2681  ;;  %v962_v49 = vpack.c.bf16 %v953_v25, %v952_v63  ;;  %v685_v5 = vshll.u32 %v3478_v45, 16  ;;  %v689_v62 = vshrl.u32 %v3478_v45, 16  ;;  %v680_v10 = vsel %vm4241_vm13, %v675_v3, %v679_v31 }
  0xb6   : > { %v2684_v38 = vunpack.i.h.bf16 %v2682_v40  ;;  %v2683_v4 = vunpack.i.l.bf16 %v2682_v40  ;;  %763 = vrot.lane.b32.xlu1 %v746_v15, %s2921_s24  ;;  %v3561_v16 = vor.u32 %v748_v34, %v747_v50  ;;  %v721_v24 = vrot.slane %v3478_v45, 5 }
  0xb7   : > { %2502 = vmatmul.mubr.msk.bf16.vlgmr.msra.gmra.mrb[0].mxu0 %vm771_vm5, %v962_v49  ;;  %v1267_v41 = vsel %vm1237_vm4, %v3540_v36, %v1257_v14  ;;  %v1268_v3 = vsel %vm1238_vm6, %v3548_v2, %v1258_v8  ;;  %v683_v15 = vor.u32 %v681_v18, %v679_v31  ;;  %v687_v50 = vrot.slane %v685_v5, 1 }
  0xb8   : > { %729 = vrot.lane.b32.xlu0 %v720_v47, %s2919_s22  ;;  %v959_v28 = vsel %vm633_vm0, %v3335_v46, %v2684_v38  ;;  %v958_v6 = vsel %vm633_vm0, %v3330_v13, %v2683_v4  ;;  %v2687_v30 = vpop.permute.xlu0 %2686  ;;  %2550 = vmatpush3.bf16.msra.mxu0 %v2758_v52  ;;  %v751_v14 = vrot.slane %v689_v62, 5  ;;  %v752_v8 = vrot.slane %v685_v5, 6 }
  0xb9   : > { %v965_v27 = vpack.c.bf16 %v959_v28, %v958_v6  ;;  %v2689_v46 = vunpack.i.h.bf16 %v2687_v30  ;;  %v2688_v13 = vunpack.i.l.bf16 %v2687_v30  ;;  %2505 = vmatprep.mubr.msk.bf16.mxu0 %vm2918_vm9, %v2916_v0  ;;  %v722_v47 = vsel %vm4242_vm12, %v719_v42, %v721_v24  ;;  %2599 = vmatprep.subr.bf16.mxu0 %v2916_v0 }
  0xba   : > { %701 = vrot.lane.b32.xlu1 %v680_v10, %s2920_s23  ;;  %v2832_v25 = vpop.eup %2831  ;;  %v1259_v63 = vsub.f32 0.0, %v3415_v11  ;;  %v693_v42 = vshll.u32 %v3501_v12, 16  ;;  %v688_v30 = vsel %vm4241_vm13, %v683_v15, %v687_v50  ;;  %v723_v10 = vrot.slane %v3501_v12, 5 }
  0xbb   : > { %v955_v34 = vsel %vm633_vm0, %v3347_v39, %v2689_v46  ;;  %v954_v56 = vsel %vm633_vm0, %v3342_v53, %v2688_v13  ;;  %2514 = vmatmul.mubr.msk.bf16.vlgmr.msra.gmra.mrb[0].mxu1 %vm771_vm5, %v965_v27  ;;  %v2834_v40 = vpop.eup %2833  ;;  %v2760_v39 = vld [vmem:[%s4231_s4 + $0x8] sm:$0xff]   ;;  %v750_v53 = vsel %vm4240_vm1, %v3518_v60, %v3561_v16  ;;  %v1260_v60 = vsub.f32 0.0, %v3432_v26  ;;  %v2761_v27 = vld [vmem:[%s4231_s4 + $0x10] sm:$0xff]  }
  0xbc   : > { %2711 = vrot.lane.b32.xlu0 %v2710_v44, %s2917_s15  ;;  %v963_v38 = vpack.c.bf16 %v955_v34, %v954_v56  ;;  %v2692_v4 = vpop.permute.xlu1 %2691  ;;  %2522 = vmatpush3.bf16.msra.mxu1 %v2759_v61  ;;  %v2715_v44 = vpack.i.bf16 %v1268_v3, %v1267_v41  ;;  %v3601_v52 = vadd.f32 -1.0, %v2832_v25  ;;  %v3603_v49 = vadd.f32 -1.0, %v2834_v40  ;;  %v2762_v40 = vld [vmem:[%s4231_s4 + $0x18] sm:$0xff]  }
  0xbd   : > { %v2694_v18 = vunpack.i.h.bf16 %v2692_v4  ;;  %v2693_v31 = vunpack.i.l.bf16 %v2692_v4  ;;  %2523 = vmatprep.subr.bf16.mxu1 %v2916_v0  ;;  %2517 = vmatprep.mubr.msk.bf16.mxu1 %vm2918_vm9, %v2916_v0  ;;  %v753_v61 = vor.u32 %v752_v8, %v751_v14  ;;  %v695_v3 = vrot.slane %v693_v42, 1  ;;  %v471_v8 = vld [vmem:[%s4230_s3 + $0x20] sm:$0xff] }
  0xbe   : > { %765 = vrot.lane.b32.xlu1 %v750_v53, %s2921_s24  ;;  %v1269_v41 = vsel %vm1239_vm7, %v3601_v52, %v1259_v63  ;;  %v1270_v25 = vsel %vm1240_vm8, %v3603_v49, %v1260_v60  ;;  %v467_v53 = vld [vmem:[%s4230_s3] sm:$0xff]  ;;  %v472_v63 = vld [vmem:[%s4230_s3 + $0x28] sm:$0xff]  ;;  %v474_v60 = vld [vmem:[%s4230_s3 + $0x38] sm:$0xff] }
  0xbf   : > { %v961_v28 = vsel %vm633_vm0, %v3357_v33, %v2694_v18  ;;  %v960_v6 = vsel %vm633_vm0, %v3352_v32, %v2693_v31  ;;  %v755_v33 = vshrl.u32 %v3501_v12, 16  ;;  %2506 = vmatmul.mubr.msk.bf16.gmra.mrb[4].mxu0 %vm771_vm5, %v963_v38  ;;  %v691_v12 = vor.u32 %v689_v62, %v687_v50  ;;  %v469_v18 = vld [vmem:[%s4230_s3 + $0x10] sm:$0xff] }
  0xc0   : > { %731 = vrot.lane.b32.xlu0 %v722_v47, %s2919_s22  ;;  %v966_v5 = vpack.c.bf16 %v961_v28, %v960_v6  ;;  %2524 = vmatpush3.bf16.msra.mxu1 %v2760_v39  ;;  %v2697_v32 = vpop.permute.xlu0 %2696  ;;  %v754_v15 = vsel %vm4240_vm1, %v3561_v16, %v753_v61  ;;  %v758_v62 = vrot.slane %v693_v42, 6  ;;  %v2720_v38 = vpack.i.bf16 %v1270_v25, %v1269_v41  ;;  %v473_v31 = vld [vmem:[%s4230_s3 + $0x30] sm:$0xff]  ;;  %v470_v47 = vld [vmem:[%s4230_s3 + $0x18] sm:$0xff]  ;;  %v476_v28 = vld [vmem:[%s4230_s3 + $0x48] sm:$0xff] }
  0xc1   : > { %2525 = vmatprep.subr.bf16.mxu1 %v2916_v0  ;;  %v2699_v46 = vunpack.i.h.bf16 %v2697_v32  ;;  %v2698_v13 = vunpack.i.l.bf16 %v2697_v32  ;;  %2509 = vmatprep.mubr.msk.bf16.mxu0 %vm2918_vm9, %v2916_v0  ;;  %v757_v14 = vrot.slane %v755_v33, 5  ;;  %v696_v16 = vsel %vm4241_vm13, %v691_v12, %v695_v3 }
  0xc2   : > { %703 = vrot.lane.b32.xlu1 %v688_v30, %s2920_s23  ;;  %v1242_v30 = vsel %vm1232_vm11, %v3379_v19, %v3417_v43  ;;  %vm793_vm13 = vcmask 392192   ;;  %v1243_v25 = vsel %vm1233_vm14, %v3384_v7, %v3456_v21  ;;  %v1244_v12 = vsel %vm1234_vm15, %v3387_v9, %v3458_v54 }
  0xc3   : > { %2518 = vmatmul.mubr.msk.bf16.gmra.mrb[4].mxu1 %vm771_vm5, %v966_v5  ;;  %v957_v34 = vsel %vm633_vm0, %v3367_v58, %v2699_v46  ;;  %v956_v56 = vsel %vm633_vm0, %v3362_v48, %v2698_v13  ;;  %v2922_v58 = vmov 0   ;;  %v724_v48 = vsel %vm4242_vm12, %v721_v24, %v723_v10  ;;  %v468_v24 = vld [vmem:[%s4230_s3 + $0x8] sm:$0xff] }
  0xc4   : > { %2716 = vrot.lane.b32.xlu0 %v2715_v44, %s2917_s15  ;;  %2526 = vmatpush3.bf16.msra.mxu1 %v2761_v27  ;;  %v964_v50 = vpack.c.bf16 %v957_v34, %v956_v56  ;;  %v759_v4 = vor.u32 %v758_v62, %v757_v14  ;;  %v475_v44 = vld [vmem:[%s4230_s3 + $0x40] sm:$0xff]  ;;  %v1241_v27 = vsel %vm1231_vm10, %v3376_v17, %v3409_v59  ;;  %vm1087_vm12 = vcmask 523264  }
  0xc5   : > { %2529 = vmatprep.mubr.msk.bf16.mxu1 %vm2918_vm9, %v2916_v0  ;;  %2527 = vmatprep.subr.bf16.mxu1 %v2916_v0  ;;  %v1245_v21 = vsel %vm1235_vm2, %v3392_v22, %v3508_v55  ;;  %v1246_v54 = vsel %vm1236_vm3, %v3395_v35, %v3510_v20  ;;  %v1247_v55 = vsel %vm1237_vm4, %v3400_v29, %v3540_v36  ;;  %vm4243_vm10 = vcmask 1042432  }
  0xc6   : > { %2725 = vset.pattern.permute.xlu1 %v2922_v58  ;;  %2726 = vset.pattern.permute.xlu0 %v2922_v58  ;;  %v760_v39 = vsel %vm4240_vm1, %v753_v61, %v759_v4  ;;  %vm782_vm1 = vcmask 261120   ;;  %v1248_v20 = vsel %vm1238_vm6, %v3403_v37, %v3548_v2  ;;  %v1249_v36 = vsel %vm1239_vm7, %v3415_v11, %v3601_v52  ;;  %vm4244_vm11 = vmmov %vm4243_vm10 }
  0xc7   : > { %767 = vrot.lane.b32.xlu1 %v754_v15, %s2921_s24  ;;  %2510 = vmatmul.mubr.msk.bf16.gmra.mrb[8].mxu0 %vm771_vm5, %v964_v50  ;;  %v1250_v2 = vsel %vm1240_vm8, %v3432_v26, %v3603_v49  ;;  %vm4245_vm14 = vmmov %vm4243_vm10 }
  0xc8   : > { %733 = vrot.lane.b32.xlu0 %v724_v48, %s2919_s22  ;;  %2528 = vmatpush3.bf16.msra.mxu1 %v2762_v40  ;;  %vm4246_vm15 = vmmov %vm4243_vm10 }
  0xc9   : > { %2571 = vmatprep.subr.bf16.mxu1 %v2916_v0  ;;  %2551 = vmatprep.mubr.msk.bf16.mxu0 %vm2918_vm9, %v2916_v0  ;;  %vm4247_vm2 = vmmov %vm4243_vm10 }
  0xca   : > { %vm4248_vm3 = vmmov %vm4247_vm2 }
  0xcb   : > { %705 = vrot.lane.b32.xlu1 %v696_v16, %s2920_s23  ;;  %vm4249_vm7 = vmmov %vm4247_vm2 }
  0xcc   : > { %2721 = vrot.lane.b32.xlu0 %v2720_v38, %s2917_s15 }
  0xcf   : > { %769 = vrot.lane.b32.xlu1 %v760_v39, %s2921_s24 }
  0xd0   : > { %1456 = vperm.xlu0 %2726, %v468_v24  }
  0xd3   : > { %1451 = vperm.xlu1 %2725, %v467_v53  }
  0xd4   : > { %1471 = vperm.xlu0 %2726, %v471_v8  }
  0xd7   : > { %1461 = vperm.xlu1 %2725, %v469_v18  }
  0xd8   : > { %1481 = vperm.xlu0 %2726, %v473_v31  }
  0xdb   : > { %1466 = vperm.xlu1 %2725, %v470_v47  }
  0xdc   : > { %1491 = vperm.xlu0 %2726, %v475_v44  }
  0xdf   : > { %1476 = vperm.xlu1 %2725, %v472_v63  }
  0xe3   : > { %1486 = vperm.xlu1 %2725, %v474_v60  }
  0xe7   : > { %1496 = vperm.xlu1 %2725, %v476_v28  }
 0x11a   : > { %v726_v6 = vpop.permute.xlu0 %725 }
 0x11c   : > { %v698_v42 = vpop.permute.xlu1 %697 }
 0x11d   : > { %v773_v5 = vsel %vm771_vm5, %v3424_v1, %v698_v42 }
 0x11e   : > { %v2702_v61 = vpop.permute.xlu0 %2701  ;;  %v784_v46 = vsel %vm782_vm1, %v773_v5, %v726_v6 }
 0x11f   : > { %v2704_v33 = vunpack.i.h.bf16 %v2702_v61  ;;  %v2703_v32 = vunpack.i.l.bf16 %v2702_v61 }
 0x120   : > { %v762_v13 = vpop.permute.xlu1 %761 }
 0x121   : > { %v1312_v10 = vsel %vm633_vm0, %v1242_v30, %v2704_v33  ;;  %v1311_v1 = vsel %vm633_vm0, %v1241_v27, %v2703_v32  ;;  %v795_v17 = vsel %vm793_vm13, %v784_v46, %v762_v13 }
 0x122   : > { %v1321_v41 = vpack.c.bf16 %v1312_v10, %v1311_v1  ;;  %v728_v59 = vpop.permute.xlu0 %727  ;;  %2530 = vmatmul.mubr.msk.bf16.vlgmr.msra.gmra.mrb[8].mxu1 %vm1087_vm12, %v795_v17 }
 0x123   : > { %2533 = vmatprep.mubr.msk.bf16.mxu1 %vm2918_vm9, %v2916_v0 }
 0x124   : > { %2552 = vmatmul.mubr.msk.bf16.vlgmr.msra.gmra.mrb[12].mxu0 %vm771_vm5, %v1321_v41  ;;  %v700_v19 = vpop.permute.xlu1 %699 }
 0x125   : > { %2555 = vmatprep.mubr.msk.bf16.mxu0 %vm2918_vm9, %v2916_v0  ;;  %v775_v43 = vsel %vm771_vm5, %v3453_v57, %v700_v19 }
 0x126   : > { %v2707_v3 = vpop.permute.xlu0 %2706  ;;  %v786_v14 = vsel %vm782_vm1, %v775_v43, %v728_v59 }
 0x127   : > { %v2709_v34 = vunpack.i.h.bf16 %v2707_v3  ;;  %v2708_v56 = vunpack.i.l.bf16 %v2707_v3 }
 0x128   : > { %v764_v57 = vpop.permute.xlu1 %763 }
 0x129   : > { %v1314_v40 = vsel %vm633_vm0, %v1244_v12, %v2709_v34  ;;  %v1313_v15 = vsel %vm633_vm0, %v1243_v25, %v2708_v56  ;;  %v797_v50 = vsel %vm793_vm13, %v786_v14, %v764_v57 }
 0x12a   : > { %v1322_v62 = vpack.c.bf16 %v1314_v40, %v1313_v15  ;;  %v730_v58 = vpop.permute.xlu0 %729  ;;  %2534 = vmatmul.mubr.msk.bf16.gmra.mrb[12].mxu1 %vm1087_vm12, %v797_v50 }
 0x12b   : > { %2537 = vmatprep.mubr.msk.bf16.mxu1 %vm2918_vm9, %v2916_v0 }
 0x12c   : > { %2556 = vmatmul.mubr.msk.bf16.gmra.mrb[16].mxu0 %vm771_vm5, %v1322_v62  ;;  %v702_v7 = vpop.permute.xlu1 %701 }
 0x12d   : > { %2559 = vmatprep.mubr.msk.bf16.mxu0 %vm2918_vm9, %v2916_v0  ;;  %v777_v9 = vsel %vm771_vm5, %v3439_v51, %v702_v7 }
 0x12e   : > { %v2712_v48 = vpop.permute.xlu0 %2711  ;;  %v788_v39 = vsel %vm782_vm1, %v777_v9, %v730_v58 }
 0x12f   : > { %v2714_v38 = vunpack.i.h.bf16 %v2712_v48  ;;  %v2713_v16 = vunpack.i.l.bf16 %v2712_v48  ;;  %v3802_v48 = vld [vmem:[%s4234_s7] ss:$0 sm:$0xff] }
 0x130   : > { %v766_v51 = vpop.permute.xlu1 %765 }
 0x131   : > { %v1316_v4 = vsel %vm633_vm0, %v1246_v54, %v2714_v38  ;;  %v1315_v24 = vsel %vm633_vm0, %v1245_v21, %v2713_v16  ;;  %v799_v8 = vsel %vm793_vm13, %v788_v39, %v766_v51 }
 0x132   : > { %v1323_v53 = vpack.c.bf16 %v1316_v4, %v1315_v24  ;;  %v732_v18 = vpop.permute.xlu0 %731  ;;  %2538 = vmatmul.mubr.msk.bf16.gmra.mrb[16].mxu1 %vm1087_vm12, %v799_v8 }
 0x133   : > { %2541 = vmatprep.mubr.msk.bf16.mxu1 %vm2918_vm9, %v2916_v0 }
 0x134   : > { %2560 = vmatmul.mubr.msk.bf16.gmra.mrb[20].mxu0 %vm771_vm5, %v1323_v53  ;;  %v704_v22 = vpop.permute.xlu1 %703 }
 0x135   : > { %2563 = vmatprep.mubr.msk.bf16.mxu0 %vm2918_vm9, %v2916_v0  ;;  %v779_v35 = vsel %vm771_vm5, %v3466_v23, %v704_v22 }
 0x136   : > { %v2717_v31 = vpop.permute.xlu0 %2716  ;;  %v790_v28 = vsel %vm782_vm1, %v779_v35, %v732_v18 }
 0x137   : > { %v2719_v47 = vunpack.i.h.bf16 %v2717_v31  ;;  %v2718_v44 = vunpack.i.l.bf16 %v2717_v31 }
 0x139   : > { %v1318_v63 = vsel %vm633_vm0, %v1248_v20, %v2719_v47  ;;  %v1317_v60 = vsel %vm633_vm0, %v1247_v55, %v2718_v44  ;;  %v768_v23 = vpop.permute.xlu1 %767 }
 0x13a   : > { %v1324_v6 = vpack.c.bf16 %v1318_v63, %v1317_v60  ;;  %v801_v42 = vsel %vm793_vm13, %v790_v28, %v768_v23  ;;  %v734_v5 = vpop.permute.xlu0 %733 }
 0x13b   : > { %2542 = vmatmul.mubr.msk.bf16.gmra.mrb[20].mxu1 %vm1087_vm12, %v801_v42 }
 0x13c   : > { %2564 = vmatmul.mubr.msk.bf16.gmra.mrb[24].mxu0 %vm771_vm5, %v1324_v6  ;;  %2545 = vmatprep.mubr.msk.bf16.mxu1 %vm2918_vm9, %v2916_v0 }
 0x13d   : > { %v706_v29 = vpop.permute.xlu1 %705  ;;  %2567 = vmatprep.mubr.msk.bf16.mxu0 %vm2918_vm9, %v2916_v0 }
 0x13e   : > { %v781_v37 = vsel %vm771_vm5, %v3478_v45, %v706_v29  ;;  %v2722_v27 = vpop.permute.xlu0 %2721 }
 0x13f   : > { %v2724_v30 = vunpack.i.h.bf16 %v2722_v27  ;;  %v2723_v61 = vunpack.i.l.bf16 %v2722_v27  ;;  %v792_v10 = vsel %vm782_vm1, %v781_v37, %v734_v5 }
 0x141   : > { %v1320_v33 = vsel %vm633_vm0, %v1250_v2, %v2724_v30  ;;  %v1319_v32 = vsel %vm633_vm0, %v1249_v36, %v2723_v61  ;;  %v770_v45 = vpop.permute.xlu1 %769 }
 0x142   : > { %v1325_v1 = vpack.c.bf16 %v1320_v33, %v1319_v32  ;;  %v803_v46 = vsel %vm793_vm13, %v792_v10, %v770_v45 }
 0x143   : > { %2546 = vmatmul.mubr.msk.bf16.gmra.mrb[24].mxu1 %vm1087_vm12, %v803_v46 }
 0x144   : > { %2568 = vmatmul.mubr.msk.bf16.gmra.mrb[28].mxu0 %vm771_vm5, %v1325_v1  ;;  %2579 = vmatprep.mubr.msk.bf16.mxu1 %vm2918_vm9, %v2916_v0 }
 0x145   : > { %2607 = vmatprep.mubr.msk.bf16.mxu0 %vm2918_vm9, %v2916_v0 }
 0x14f   : > { %v3805_v18 = vpop.permute.xlu0 %1456 }
 0x152   : > { %v3797_v50 = vpop.permute.xlu1 %1451 }
 0x156   : > { %v3809_v55 = vpop.permute.xlu1 %1461 }
 0x15a   : > { %v3823_v46 = vpop.permute.xlu1 %1466 }
 0x18a   : > { %v1024_v11 = vpop.f32.mrb[0].mxu0 }
 0x18b   : > { %v2503_v26 = vpop.f32.mrb[1].mxu0 }
 0x18c   : > { %v1027_v52 = vpop.f32.mrb[2].mxu0 }
 0x18d   : > { %v2504_v13 = vpop.f32.mrb[3].mxu0 }
 0x18e   : > { %v3789_v49 = vpop.f32.mrb[0].mxu1 }
 0x18f   : > { %v2515_v41 = vpop.f32.mrb[1].mxu1 }
 0x190   : > { %v3791_v17 = vpop.f32.mrb[2].mxu1 }
 0x191   : > { %v2516_v59 = vpop.f32.mrb[3].mxu1 }
 0x192   : > { %v1032_v19 = vpop.f32.mrb[4].mxu0 }
 0x193   : > { %v2507_v43 = vpop.f32.mrb[5].mxu0 }
 0x194   : > { %v1035_v25 = vpop.f32.mrb[6].mxu0 }
 0x195   : > { %v2508_v3 = vpop.f32.mrb[7].mxu0 }
 0x196   : > { %v3793_v12 = vpop.f32.mrb[4].mxu1 }
 0x197   : > { %v2519_v34 = vpop.f32.mrb[5].mxu1 }
 0x198   : > { %v3795_v56 = vpop.f32.mrb[6].mxu1 }
 0x199   : > { %v2520_v40 = vpop.f32.mrb[7].mxu1 }
 0x19a   : > { %v1040_v15 = vpop.f32.mrb[8].mxu0 }
 0x19b   : > { %v2511_v14 = vpop.f32.mrb[9].mxu0 }
 0x19c   : > { %v1043_v57 = vpop.f32.mrb[10].mxu0 }
 0x19d   : > { %v2512_v62 = vpop.f32.mrb[11].mxu0 }
 0x1f5   : > { %v1132_v58 = vpop.f32.mrb[8].mxu1 }
 0x1f6   : > { %v1133_v7 = vadd.f32 %v1132_v58, %v1024_v11  ;;  %v2531_v9 = vpop.f32.mrb[9].mxu1 }
 0x1f7   : > { %v1383_v21 = vpop.f32.mrb[12].mxu0  ;;  %v1135_v54 = vpop.f32.mrb[10].mxu1 }
 0x1f8   : > { %v2553_v38 = vpop.f32.mrb[13].mxu0  ;;  %v1136_v16 = vadd.f32 %v1135_v54, %v1027_v52  ;;  %v1422_v4 = vadd.f32 %v1383_v21, %v1133_v7  ;;  %v2532_v24 = vpop.f32.mrb[11].mxu1 }
 0x1f9   : > { %v1386_v39 = vpop.f32.mrb[14].mxu0 }
 0x1fa   : > { %v2554_v51 = vpop.f32.mrb[15].mxu0  ;;  %v1439_v53 = vadd.f32 %v3802_v48, %v1422_v4  ;;  %v1423_v8 = vadd.f32 %v1386_v39, %v1136_v16  ;;  %v3834_v4 = vpop.permute.xlu0 %1471 }
 0x1fc   : > { %v1499_v22 = vmul.f32 %v3797_v50, %v1439_v53  ;;  %v1440_v35 = vadd.f32 %v3802_v48, %v1423_v8  ;;  %v3839_v53 = vpop.permute.xlu1 %1476 }
 0x1fd   : > { %v1140_v20 = vpop.f32.mrb[12].mxu1 }
 0x1fe   : > { %v1520_v31 = vrot.slane %v1499_v22, 5  ;;  %v1500_v47 = vmul.f32 %v3805_v18, %v1440_v35  ;;  %v1141_v44 = vadd.f32 %v1140_v20, %v1032_v19  ;;  %v2535_v63 = vpop.f32.mrb[13].mxu1 }
 0x1ff   : > { %v1391_v60 = vpop.f32.mrb[16].mxu0  ;;  %v1143_v28 = vpop.f32.mrb[14].mxu1 }
 0x200   : > { %v2557_v23 = vpop.f32.mrb[17].mxu0  ;;  %v3813_v6 = vsel %vm4243_vm10, 0.0, %v1520_v31  ;;  %v1521_v42 = vrot.slane %v1500_v47, 5  ;;  %v1144_v5 = vadd.f32 %v1143_v28, %v1035_v25  ;;  %v1424_v29 = vadd.f32 %v1391_v60, %v1141_v44  ;;  %v2536_v37 = vpop.f32.mrb[15].mxu1  ;;  %vm4250_vm10 = vmmov %vm4247_vm2 }
 0x201   : > { %v1394_v36 = vpop.f32.mrb[18].mxu0  ;;  %v1552_v2 = vand.u32 2147483647, %v3813_v6  ;;  %vm1607_vm4 = vcmp.gt.f32.partialorder %v3813_v6, 0.0 }
 0x202   : > { %v2558_v27 = vpop.f32.mrb[19].mxu0  ;;  %v3817_v30 = vsel %vm4244_vm11, %v1520_v31, %v1521_v42  ;;  %v1441_v61 = vadd.f32 %v3802_v48, %v1424_v29  ;;  %v1425_v33 = vadd.f32 %v1394_v36, %v1144_v5 }
 0x203   : > { %v1563_v32 = vsub.f32 0.0, %v1552_v2  ;;  %v1553_v10 = vand.u32 2147483647, %v3817_v30  ;;  %vm1608_vm6 = vcmp.gt.f32.partialorder %v3817_v30, 0.0 }
 0x204   : > { %v1501_v45 = vmul.f32 %v3809_v55, %v1441_v61  ;;  %v1442_v1 = vadd.f32 %v3802_v48, %v1425_v33 }
 0x205   : > { %v1574_v11 = vmul.f32 1.442695, %v1563_v32  ;;  %v1148_v26 = vpop.f32.mrb[16].mxu1  ;;  %v1564_v52 = vsub.f32 0.0, %v1553_v10 }
 0x206   : > { %v1523_v13 = vrot.slane %v1501_v45, 5  ;;  %v1502_v41 = vmul.f32 %v3823_v46, %v1442_v1  ;;  %v1149_v59 = vadd.f32 %v1148_v26, %v1040_v15  ;;  %v2539_v19 = vpop.f32.mrb[17].mxu1  ;;  %v3853_v26 = vpop.permute.xlu0 %1481 }
 0x207   : > { %v1399_v43 = vpop.f32.mrb[20].mxu0  ;;  %v1151_v25 = vpop.f32.mrb[18].mxu1  ;;  %2835 = vpow2.f32 %v1574_v11  ;;  %v1576_v34 = vmul.f32 1.442695, %v1564_v52 }
 0x208   : > { %v2561_v3 = vpop.f32.mrb[21].mxu0  ;;  %v3827_v40 = vsel %vm4245_vm14, %v1521_v42, %v1523_v13  ;;  %v1525_v14 = vrot.slane %v1502_v41, 5  ;;  %v1152_v62 = vadd.f32 %v1151_v25, %v1043_v57  ;;  %v1426_v58 = vadd.f32 %v1399_v43, %v1149_v59  ;;  %v2540_v7 = vpop.f32.mrb[19].mxu1  ;;  %vm4251_vm14 = vmmov %vm4247_vm2 }
 0x209   : > { %v1402_v9 = vpop.f32.mrb[22].mxu0  ;;  %v1554_v21 = vand.u32 2147483647, %v3827_v40  ;;  %2837 = vpow2.f32 %v1576_v34  ;;  %v3859_v43 = vpop.permute.xlu1 %1486  ;;  %vm1609_vm8 = vcmp.gt.f32.partialorder %v3827_v40, 0.0 }
 0x20a   : > { %v2562_v54 = vpop.f32.mrb[23].mxu0  ;;  %v3831_v15 = vsel %vm4246_vm15, %v1523_v13, %v1525_v14  ;;  %v1443_v38 = vadd.f32 %v3802_v48, %v1426_v58  ;;  %v1427_v16 = vadd.f32 %v1402_v9, %v1152_v62  ;;  %vm4252_vm15 = vmmov %vm4247_vm2 }
 0x20b   : > { %v1555_v24 = vand.u32 2147483647, %v3831_v15  ;;  %v1565_v39 = vsub.f32 0.0, %v1554_v21  ;;  %vm1610_vm11 = vcmp.gt.f32.partialorder %v3831_v15, 0.0 }
 0x20c   : > { %v1503_v57 = vmul.f32 %v3834_v4, %v1443_v38  ;;  %v1444_v51 = vadd.f32 %v3802_v48, %v1427_v16 }
 0x20d   : > { %v1578_v22 = vmul.f32 1.442695, %v1565_v39  ;;  %v1566_v35 = vsub.f32 0.0, %v1555_v24  ;;  %v1630_v24 = vsub.f32 0.0, %v3817_v30 }
 0x20e   : > { %v1156_v8 = vpop.f32.mrb[20].mxu1  ;;  %v1527_v20 = vrot.slane %v1503_v57, 5  ;;  %v1504_v31 = vmul.f32 %v3839_v53, %v1444_v51 }
 0x20f   : > { %v1157_v47 = vadd.f32 %v1156_v8, %v3789_v49  ;;  %v2543_v44 = vpop.f32.mrb[21].mxu1  ;;  %v1407_v63 = vpop.f32.mrb[24].mxu0  ;;  %2839 = vpow2.f32 %v1578_v22  ;;  %v1580_v23 = vmul.f32 1.442695, %v1566_v35  ;;  %v1629_v49 = vsub.f32 0.0, %v3813_v6 }
 0x210   : > { %v1159_v60 = vpop.f32.mrb[22].mxu1  ;;  %v2565_v28 = vpop.f32.mrb[25].mxu0  ;;  %v3844_v42 = vsel %vm4247_vm2, %v1525_v14, %v1527_v20  ;;  %v1529_v5 = vrot.slane %v1504_v31, 5  ;;  %v1631_v44 = vsub.f32 0.0, %v3827_v40 }
 0x211   : > { %v1160_v29 = vadd.f32 %v1159_v60, %v3791_v17  ;;  %v1428_v37 = vadd.f32 %v1407_v63, %v1157_v47  ;;  %v2544_v36 = vpop.f32.mrb[23].mxu1  ;;  %v1410_v2 = vpop.f32.mrb[26].mxu0  ;;  %v1556_v61 = vand.u32 2147483647, %v3844_v42  ;;  %2841 = vpow2.f32 %v1580_v23 }
 0x212   : > { %v2836_v27 = vpop.eup %2835  ;;  %v2566_v33 = vpop.f32.mrb[27].mxu0  ;;  %v3850_v32 = vsel %vm4248_vm3, %v1527_v20, %v1529_v5  ;;  %vm1611_vm3 = vcmp.gt.f32.partialorder %v3844_v42, 0.0 }
 0x213   : > { %v1445_v10 = vadd.f32 %v3802_v48, %v1428_v37  ;;  %v1429_v45 = vadd.f32 %v1410_v2, %v1160_v29  ;;  %v2417_v1 = vadd.f32 -1.0, %v2836_v27  ;;  %v2838_v11 = vpop.eup %2837  ;;  %v1557_v17 = vand.u32 2147483647, %v3850_v32 }
 0x214   : > { %v1567_v52 = vsub.f32 0.0, %v1556_v61  ;;  %v2418_v19 = vadd.f32 -1.0, %v2838_v11 }
 0x215   : > { %v1505_v13 = vmul.f32 %v3853_v26, %v1445_v10  ;;  %v1446_v41 = vadd.f32 %v3802_v48, %v1429_v45  ;;  %v1640_v59 = vsel %vm1607_vm4, %v2417_v1, %v1629_v49  ;;  %v1568_v14 = vsub.f32 0.0, %v1557_v17  ;;  %v3896_v49 = vpop.permute.xlu1 %1496 }
 0x216   : > { %v1164_v25 = vpop.f32.mrb[24].mxu1  ;;  %v2727_v3 = vpack.i.bf16 %v1640_v59, %v2916_v0  ;;  %v1582_v34 = vmul.f32 1.442695, %v1567_v52  ;;  %v3863_v62 = vsel %vm1607_vm4, %v3813_v6, %v2417_v1  ;;  %v3873_v6 = vsel %vm1608_vm6, %v3817_v30, %v2418_v19 }
 0x217   : > { %v1531_v58 = vrot.slane %v1505_v13, 5  ;;  %v1506_v7 = vmul.f32 %v3859_v43, %v1446_v41  ;;  %v1165_v9 = vadd.f32 %v1164_v25, %v3793_v12  ;;  %v2547_v21 = vpop.f32.mrb[25].mxu1  ;;  %v1415_v54 = vpop.f32.mrb[28].mxu0  ;;  %v1584_v39 = vmul.f32 1.442695, %v1568_v14 }
 0x218   : > { %v1167_v38 = vpop.f32.mrb[26].mxu1  ;;  %2728 = vrot.lane.b32.xlu0 %v2727_v3, %s2917_s15  ;;  %v2569_v16 = vpop.f32.mrb[29].mxu0  ;;  %2843 = vpow2.f32 %v1582_v34  ;;  %v1641_v37 = vsel %vm1608_vm6, %v2418_v19, %v1630_v24  ;;  %v1633_v14 = vsub.f32 0.0, %v3844_v42  ;;  %vm1612_vm4 = vcmp.gt.f32.partialorder %v3850_v32, 0.0 }
 0x219   : > { %v3876_v57 = vsel %vm4249_vm7, %v1529_v5, %v1531_v58  ;;  %v1533_v12 = vrot.slane %v1506_v7, 5  ;;  %v1168_v51 = vadd.f32 %v1167_v38, %v3795_v56  ;;  %v1430_v8 = vadd.f32 %v1415_v54, %v1165_v9  ;;  %v2548_v22 = vpop.f32.mrb[27].mxu1  ;;  %v1418_v35 = vpop.f32.mrb[30].mxu0 }
 0x21a   : > { %v2840_v20 = vpop.eup %2839  ;;  %v1558_v31 = vand.u32 2147483647, %v3876_v57  ;;  %v2570_v47 = vpop.f32.mrb[31].mxu0  ;;  %2845 = vpow2.f32 %v1584_v39  ;;  %vm1613_vm6 = vcmp.gt.f32.partialorder %v3876_v57, 0.0 }
 0x21b   : > { %v3883_v63 = vsel %vm4250_vm10, %v1531_v58, %v1533_v12  ;;  %v1447_v60 = vadd.f32 %v3802_v48, %v1430_v8  ;;  %v1431_v28 = vadd.f32 %v1418_v35, %v1168_v51  ;;  %v2419_v23 = vadd.f32 -1.0, %v2840_v20  ;;  %v2842_v56 = vpop.eup %2841  ;;  %v3886_v5 = vpop.permute.xlu0 %1491 }
 0x21c   : > { %v1559_v29 = vand.u32 2147483647, %v3883_v63  ;;  %v1569_v36 = vsub.f32 0.0, %v1558_v31  ;;  %v2420_v33 = vadd.f32 -1.0, %v2842_v56  ;;  %v1634_v47 = vsub.f32 0.0, %v3850_v32 }
 0x21d   : > { %v1507_v2 = vmul.f32 %v3886_v5, %v1447_v60  ;;  %v1448_v27 = vadd.f32 %v3802_v48, %v1431_v28  ;;  %v1642_v61 = vsel %vm1609_vm8, %v2419_v23, %v1631_v44  ;;  %v3901_v30 = vsel %vm1609_vm8, %v3827_v40, %v2419_v23 }
 0x21e   : > { %v2732_v10 = vpack.i.bf16 %v1642_v61, %v1641_v37  ;;  %v1586_v45 = vmul.f32 1.442695, %v1569_v36  ;;  %v1570_v1 = vsub.f32 0.0, %v1559_v29  ;;  %v3907_v48 = vsel %vm1610_vm11, %v3831_v15, %v2420_v33 }
 0x21f   : > { %v1535_v11 = vrot.slane %v1507_v2, 5  ;;  %v1508_v17 = vmul.f32 %v3896_v49, %v1448_v27  ;;  %v1632_v40 = vsub.f32 0.0, %v3831_v15  ;;  %v1635_v44 = vsub.f32 0.0, %v3876_v57 }
 0x220   : > { %2733 = vrot.lane.b32.xlu1 %v2732_v10, %s2917_s15  ;;  %2847 = vpow2.f32 %v1586_v45  ;;  %v1588_v52 = vmul.f32 1.442695, %v1570_v1  ;;  %vm1614_vm7 = vcmp.gt.f32.partialorder %v3883_v63, 0.0  ;;  %v1636_v27 = vsub.f32 0.0, %v3883_v63 }
 0x221   : > { %v1536_v13 = vsel %vm4251_vm14, %v1533_v12, %v1535_v11  ;;  %v1537_v41 = vrot.slane %v1508_v17, 5  ;;  %v1643_v54 = vsel %vm1610_vm11, %v2420_v33, %v1632_v40  ;;  %vm4253_vm14 = vmmov %vm4247_vm2 }
 0x222   : > { %v2844_v59 = vpop.eup %2843  ;;  %v1560_v19 = vand.u32 2147483647, %v1536_v13  ;;  %2849 = vpow2.f32 %v1588_v52  ;;  %v1637_v61 = vsub.f32 0.0, %v1536_v13  ;;  %vm1615_vm8 = vcmp.gt.f32.partialorder %v1536_v13, 0.0 }
 0x223   : > { %v1538_v25 = vsel %vm4252_vm15, %v1535_v11, %v1537_v41  ;;  %v1551_v3 = vsel %vm4247_vm2, %v1537_v41, 0.0  ;;  %v2421_v34 = vadd.f32 -1.0, %v2844_v59  ;;  %vm4254_vm15 = vsmask.f32 7424 }
 0x224   : > { %v2846_v58 = vpop.eup %2845  ;;  %v1561_v7 = vand.u32 2147483647, %v1538_v25  ;;  %v1562_v9 = vand.u32 2147483647, %v1551_v3  ;;  %v1571_v21 = vsub.f32 0.0, %v1560_v19  ;;  %v1638_v33 = vsub.f32 0.0, %v1538_v25 }
 0x225   : > { %v1644_v38 = vsel %vm1611_vm3, %v2421_v34, %v1633_v14  ;;  %v2422_v16 = vadd.f32 -1.0, %v2846_v58  ;;  %v3920_v8 = vsel %vm1611_vm3, %v3844_v42, %v2421_v34  ;;  %vm1616_vm10 = vcmp.gt.f32.partialorder %v1538_v25, 0.0  ;;  %v2766_v14 = vld [vmem:[%s4235_s8] sm:$0xff]   ;;  %v2765_v58 = vld [vmem:[%s4236_s9 + $0x10] sm:$0xff]   ;;  %vm4256_vm3 = vmmov %vm4254_vm15 }
 0x226   : > { %v1573_v24 = vsub.f32 0.0, %v1562_v9  ;;  %v2737_v39 = vpack.i.bf16 %v1644_v38, %v1643_v54  ;;  %v1590_v12 = vmul.f32 1.442695, %v1571_v21  ;;  %v1572_v51 = vsub.f32 0.0, %v1561_v7  ;;  %2572 = vmatpush3.bf16.msra.mxu1 %v2766_v14  ;;  %v2768_v7 = vld [vmem:[%s4236_s9 + $0x18] sm:$0xff]  }
 0x227   : > { %v3925_v22 = vsel %vm1612_vm4, %v3850_v32, %v2422_v16  ;;  %v1645_v60 = vsel %vm1612_vm4, %v2422_v16, %v1634_v47  ;;  %v1639_v41 = vsub.f32 0.0, %v1551_v3  ;;  %vm1617_vm11 = vcmp.gt.f32.partialorder %v1551_v3, 0.0  ;;  %2573 = vmatprep.subr.bf16.mxu1 %v2916_v0  ;;  %vm4257_vm4 = vmmov %vm4253_vm14 }
 0x228   : > { %v1594_v35 = vmul.f32 1.442695, %v1573_v24  ;;  %2738 = vrot.lane.b32.xlu0 %v2737_v39, %s2917_s15  ;;  %2851 = vpow2.f32 %v1590_v12  ;;  %v1592_v15 = vmul.f32 1.442695, %v1572_v51  ;;  %v2769_v24 = vld [vmem:[%s4235_s8 + $0x10] sm:$0xff]   ;;  %v2770_v12 = vld [vmem:[%s4235_s8 + $0x18] sm:$0xff]  }
 0x229   : > { %vm4255_vm2 = vsmask.f32 2304 }
 0x22a   : > { %v2848_v20 = vpop.eup %2847  ;;  %2853 = vpow2.f32 %v1592_v15 }
 0x22b   : > { %v2423_v31 = vadd.f32 -1.0, %v2848_v20  ;;  %2855 = vpow2.f32 %v1594_v35 }
 0x22c   : > { %v2850_v42 = vpop.eup %2849 }
 0x22d   : > { %v1646_v28 = vsel %vm1613_vm6, %v2423_v31, %v1635_v44  ;;  %v2424_v23 = vadd.f32 -1.0, %v2850_v42  ;;  %v3934_v56 = vsel %vm1613_vm6, %v3876_v57, %v2423_v31  ;;  %vm4258_vm6 = vmmov %vm4255_vm2 }
 0x22e   : > { %v2742_v29 = vpack.i.bf16 %v1646_v28, %v1645_v60 }
 0x22f   : > { %v3938_v37 = vsel %vm1614_vm7, %v3883_v63, %v2424_v23  ;;  %v1647_v45 = vsel %vm1614_vm7, %v2424_v23, %v1636_v27  ;;  %vm4259_vm7 = vmmov %vm4257_vm4 }
 0x230   : > { %2743 = vrot.lane.b32.xlu1 %v2742_v29, %s2917_s15 }
 0x232   : > { %v2852_v36 = vpop.eup %2851 }
 0x233   : > { %v2425_v2 = vadd.f32 -1.0, %v2852_v36 }
 0x234   : > { %v2854_v32 = vpop.eup %2853 }
 0x235   : > { %v2856_v10 = vpop.eup %2855  ;;  %v1648_v57 = vsel %vm1615_vm8, %v2425_v2, %v1637_v61  ;;  %v2426_v1 = vadd.f32 -1.0, %v2854_v32  ;;  %v3942_v11 = vsel %vm1615_vm8, %v1536_v13, %v2425_v2  ;;  %v2763_v13 = vld [vmem:[%s4236_s9] sm:$0xff]   ;;  %vm4260_vm8 = vmmov %vm4256_vm3 }
 0x236   : > { %v2747_v17 = vpack.i.bf16 %v1648_v57, %v1647_v45  ;;  %v2427_v52 = vadd.f32 -1.0, %v2856_v10  ;;  %2600 = vmatpush3.bf16.msra.mxu0 %v2763_v13 }
 0x237   : > { %v1649_v59 = vsel %vm1616_vm10, %v2426_v1, %v1638_v33  ;;  %v3944_v19 = vsel %vm1616_vm10, %v1538_v25, %v2426_v1  ;;  %v2764_v25 = vld [vmem:[%s4236_s9 + $0x8] sm:$0xff]   ;;  %2601 = vmatprep.subr.bf16.mxu0 %v2916_v0  ;;  %vm4261_vm10 = vmmov %vm4255_vm2 }
 0x238   : > { %2748 = vrot.lane.b32.xlu0 %v2747_v17, %s2917_s15  ;;  %v1650_v63 = vsel %vm1617_vm11, %v2427_v52, %v1639_v41  ;;  %v3947_v40 = vsel %vm1617_vm11, %v1551_v3, %v2427_v52  ;;  %v2767_v3 = vld [vmem:[%s4235_s8 + $0x8] sm:$0xff]   ;;  %vm4262_vm11 = vmmov %vm4256_vm3 }
 0x239   : > { %v2752_v34 = vpack.i.bf16 %v1650_v63, %v1649_v59  ;;  %2574 = vmatpush3.bf16.msra.mxu1 %v2767_v3 }
 0x23a   : > { %2602 = vmatpush3.bf16.msra.mxu0 %v2764_v25  ;;  %2575 = vmatprep.subr.bf16.mxu1 %v2916_v0 }
 0x23b   : > { %2753 = vrot.lane.b32.xlu1 %v2752_v34, %s2917_s15  ;;  %2603 = vmatprep.subr.bf16.mxu0 %v2916_v0 }
 0x23d   : > { %2576 = vmatpush3.bf16.msra.mxu1 %v2769_v24 }
 0x23e   : > { %2604 = vmatpush3.bf16.msra.mxu0 %v2765_v58  ;;  %2577 = vmatprep.subr.bf16.mxu1 %v2916_v0 }
 0x23f   : > { %2605 = vmatprep.subr.bf16.mxu0 %v2916_v0 }
 0x241   : > { %2578 = vmatpush3.bf16.msra.mxu1 %v2770_v12 }
 0x242   : > { %2606 = vmatpush3.bf16.msra.mxu0 %v2768_v7 }
 0x28a   : > { %v2729_v9 = vpop.permute.xlu0 %2728 }
 0x28b   : > { %v2731_v21 = vunpack.i.h.bf16 %v2729_v9  ;;  %v2730_v54 = vunpack.i.l.bf16 %v2729_v9 }
 0x28d   : > { %v1699_v38 = vsel %vm633_vm0, 0.0, %v2730_v54  ;;  %v1700_v16 = vsel %vm633_vm0, %v3863_v62, %v2731_v21 }
 0x28e   : > { %v3979_v39 = vpack.c.bf16 %v1700_v16, %v1699_v38 }
 0x290   : > { %v1720_v51 = vshll.u32 %v3979_v39, 16  ;;  %v1718_v47 = vshrl.u32 %v3979_v39, 16  ;;  %v1777_v60 = vrot.slane %v3979_v39, 5 }
 0x292   : > { %v2734_v35 = vpop.permute.xlu1 %2733  ;;  %v1722_v44 = vrot.slane %v1720_v51, 1  ;;  %v1798_v2 = vrot.slane %v1718_v47, 5  ;;  %v1799_v27 = vrot.slane %v1720_v51, 6 }
 0x293   : > { %v2736_v15 = vunpack.i.h.bf16 %v2734_v35  ;;  %v2735_v20 = vunpack.i.l.bf16 %v2734_v35 }
 0x294   : > { %v1723_v36 = vor.u32 %v1722_v44, %v1718_v47  ;;  %v1800_v59 = vor.u32 %v1799_v27, %v1798_v2 }
 0x295   : > { %v1702_v62 = vsel %vm633_vm0, %v3901_v30, %v2736_v15  ;;  %v1701_v31 = vsel %vm633_vm0, %v3873_v6, %v2735_v20 }
 0x296   : > { %v3991_v42 = vpack.c.bf16 %v1702_v62, %v1701_v31 }
 0x298   : > { %v1778_v28 = vrot.slane %v3991_v42, 5  ;;  %v1725_v23 = vshll.u32 %v3991_v42, 16  ;;  %v1729_v29 = vshrl.u32 %v3991_v42, 16 }
 0x29a   : > { %v2739_v30 = vpop.permute.xlu0 %2738  ;;  %v1779_v61 = vsel %vm4253_vm14, %v1777_v60, %v1778_v28  ;;  %v1727_v6 = vrot.slane %v1725_v23, 1  ;;  %v1801_v32 = vrot.slane %v1729_v29, 5  ;;  %v1802_v33 = vrot.slane %v1725_v23, 6  ;;  %vm4263_vm14 = vmmov %vm4257_vm4 }
 0x29b   : > { %v2741_v10 = vunpack.i.h.bf16 %v2739_v30  ;;  %v2740_v45 = vunpack.i.l.bf16 %v2739_v30  ;;  %1788 = vrot.lane.b32.xlu1 %v1779_v61, %s2919_s22 }
 0x29c   : > { %v1728_v57 = vsel %vm4254_vm15, %v1723_v36, %v1727_v6  ;;  %v1803_v1 = vor.u32 %v1802_v33, %v1801_v32  ;;  %vm4264_vm15 = vmmov %vm4255_vm2 }
 0x29d   : > { %v1704_v17 = vsel %vm633_vm0, %v3920_v8, %v2741_v10  ;;  %v1703_v52 = vsel %vm633_vm0, %v3907_v48, %v2740_v45  ;;  %1761 = vrot.lane.b32.xlu0 %v1728_v57, %s2920_s23  ;;  %v1731_v8 = vor.u32 %v1729_v29, %v1727_v6 }
 0x29e   : > { %v4005_v41 = vpack.c.bf16 %v1704_v17, %v1703_v52  ;;  %v1804_v63 = vsel %vm4255_vm2, %v1800_v59, %v1803_v1  ;;  %vm4265_vm2 = vmmov %vm4256_vm3 }
 0x2a0   : > { %v1733_v34 = vshll.u32 %v4005_v41, 16  ;;  %v1780_v13 = vrot.slane %v4005_v41, 5  ;;  %v1737_v14 = vshrl.u32 %v4005_v41, 16 }
 0x2a1   : > { %1823 = vrot.lane.b32.xlu0 %v1804_v63, %s2921_s24 }
 0x2a2   : > { %v2744_v25 = vpop.permute.xlu1 %2743  ;;  %v1735_v3 = vrot.slane %v1733_v34, 1  ;;  %v1805_v58 = vrot.slane %v1737_v14, 5  ;;  %v1806_v48 = vrot.slane %v1733_v34, 6  ;;  %v1781_v54 = vsel %vm4257_vm4, %v1778_v28, %v1780_v13 }
 0x2a3   : > { %v2746_v7 = vunpack.i.h.bf16 %v2744_v25  ;;  %v2745_v9 = vunpack.i.l.bf16 %v2744_v25 }
 0x2a4   : > { %v1736_v21 = vsel %vm4256_vm3, %v1731_v8, %v1735_v3  ;;  %v1807_v38 = vor.u32 %v1806_v48, %v1805_v58  ;;  %v1739_v62 = vor.u32 %v1737_v14, %v1735_v3  ;;  %vm4266_vm3 = vmmov %vm4257_vm4 }
 0x2a5   : > { %v1706_v16 = vsel %vm633_vm0, %v3934_v56, %v2746_v7  ;;  %v1705_v24 = vsel %vm633_vm0, %v3925_v22, %v2745_v9  ;;  %1763 = vrot.lane.b32.xlu1 %v1736_v21, %s2920_s23  ;;  %1790 = vrot.lane.b32.xlu0 %v1781_v54, %s2919_s22  ;;  %vm4267_vm4 = vmmov %vm4258_vm6 }
 0x2a6   : > { %v4020_v12 = vpack.c.bf16 %v1706_v16, %v1705_v24  ;;  %v1808_v51 = vsel %vm4258_vm6, %v1803_v1, %v1807_v38 }
 0x2a8   : > { %v1782_v35 = vrot.slane %v4020_v12, 5  ;;  %v1741_v15 = vshll.u32 %v4020_v12, 16  ;;  %v1745_v20 = vshrl.u32 %v4020_v12, 16 }
 0x2a9   : > { %1825 = vrot.lane.b32.xlu1 %v1808_v51, %s2921_s24 }
 0x2aa   : > { %v2749_v56 = vpop.permute.xlu0 %2748  ;;  %v1743_v31 = vrot.slane %v1741_v15, 1  ;;  %v1809_v22 = vrot.slane %v1745_v20, 5  ;;  %v1810_v47 = vrot.slane %v1741_v15, 6  ;;  %v1783_v28 = vsel %vm4259_vm7, %v1780_v13, %v1782_v35 }
 0x2ab   : > { %v2751_v44 = vunpack.i.h.bf16 %v2749_v56  ;;  %v2750_v60 = vunpack.i.l.bf16 %v2749_v56 }
 0x2ac   : > { %v1744_v23 = vsel %vm4260_vm8, %v1739_v62, %v1743_v31  ;;  %v1811_v29 = vor.u32 %v1810_v47, %v1809_v22  ;;  %v1747_v1 = vor.u32 %v1745_v20, %v1743_v31 }
 0x2ad   : > { %v1708_v36 = vsel %vm633_vm0, %v3942_v11, %v2751_v44  ;;  %v1707_v2 = vsel %vm633_vm0, %v3938_v37, %v2750_v60  ;;  %v2754_v27 = vpop.permute.xlu1 %2753  ;;  %1792 = vrot.lane.b32.xlu1 %v1783_v28, %s2919_s22  ;;  %1765 = vrot.lane.b32.xlu0 %v1744_v23, %s2920_s23 }
 0x2ae   : > { %v4035_v30 = vpack.c.bf16 %v1708_v36, %v1707_v2  ;;  %v2756_v61 = vunpack.i.h.bf16 %v2754_v27  ;;  %v2755_v6 = vunpack.i.l.bf16 %v2754_v27  ;;  %v1812_v32 = vsel %vm4261_vm10, %v1807_v38, %v1811_v29 }
 0x2b0   : > { %v1710_v33 = vsel %vm633_vm0, %v3947_v40, %v2756_v61  ;;  %v1709_v11 = vsel %vm633_vm0, %v3944_v19, %v2755_v6  ;;  %v1749_v10 = vshll.u32 %v4035_v30, 16  ;;  %v1784_v37 = vrot.slane %v4035_v30, 5 }
 0x2b1   : > { %v1716_v45 = vpack.c.bf16 %v1710_v33, %v1709_v11  ;;  %1827 = vrot.lane.b32.xlu0 %v1812_v32, %s2921_s24  ;;  %v1753_v57 = vshrl.u32 %v4035_v30, 16 }
 0x2b2   : > { %v1751_v17 = vrot.slane %v1749_v10, 1  ;;  %v1814_v52 = vrot.slane %v1749_v10, 6  ;;  %v1785_v13 = vsel %vm4263_vm14, %v1782_v35, %v1784_v37 }
 0x2b3   : > { %v1813_v59 = vrot.slane %v1753_v57, 5  ;;  %v1757_v63 = vshll.u32 %v1716_v45, 16  ;;  %v1817_v34 = vshrl.u32 %v1716_v45, 16  ;;  %v1786_v7 = vrot.slane %v1716_v45, 5 }
 0x2b4   : > { %v1752_v40 = vsel %vm4262_vm11, %v1747_v1, %v1751_v17  ;;  %v1755_v19 = vor.u32 %v1753_v57, %v1751_v17 }
 0x2b5   : > { %1767 = vrot.lane.b32.xlu1 %v1752_v40, %s2920_s23  ;;  %1794 = vrot.lane.b32.xlu0 %v1785_v13, %s2919_s22  ;;  %v1815_v14 = vor.u32 %v1814_v52, %v1813_v59  ;;  %v1759_v25 = vrot.slane %v1757_v63, 1  ;;  %v1819_v8 = vrot.slane %v1817_v34, 5  ;;  %v1820_v3 = vrot.slane %v1757_v63, 6 }
 0x2b6   : > { %v1787_v21 = vsel %vm4266_vm3, %v1784_v37, %v1786_v7  ;;  %v4107_v37 = vld [vmem:[%s4238_s11] ss:$0 sm:$0xff] }
 0x2b7   : > { %v1816_v58 = vsel %vm4264_vm15, %v1811_v29, %v1815_v14  ;;  %v1760_v48 = vsel %vm4265_vm2, %v1755_v19, %v1759_v25  ;;  %v1821_v9 = vor.u32 %v1820_v3, %v1819_v8 }
 0x2b9   : > { %1829 = vrot.lane.b32.xlu1 %v1816_v58, %s2921_s24  ;;  %1769 = vrot.lane.b32.xlu0 %v1760_v48, %s2920_s23  ;;  %v1822_v54 = vsel %vm4267_vm4, %v1815_v14, %v1821_v9 }
 0x2bd   : > { %1796 = vrot.lane.b32.xlu1 %v1787_v21, %s2919_s22  ;;  %1831 = vrot.lane.b32.xlu0 %v1822_v54, %s2921_s24 }
 0x30d   : > { %v1789_v24 = vpop.permute.xlu1 %1788 }
 0x30f   : > { %v1762_v38 = vpop.permute.xlu0 %1761 }
 0x310   : > { %v1834_v16 = vsel %vm771_vm5, %v3979_v39, %v1762_v38 }
 0x311   : > { %v1844_v51 = vsel %vm782_vm1, %v1834_v16, %v1789_v24 }
 0x313   : > { %v1824_v35 = vpop.permute.xlu0 %1823 }
 0x314   : > { %v1854_v15 = vsel %vm793_vm13, %v1844_v51, %v1824_v35 }
 0x315   : > { %2580 = vmatmul.mubr.msk.bf16.vlgmr.msra.gmra.mrb[28].mxu1 %vm1087_vm12, %v1854_v15  ;;  %2608 = vmatmul.mubr.msk.bf16.vlgmr.msra.gmra.mrb[32].mxu0 %vm1087_vm12, %v1854_v15 }
 0x316   : > { %2583 = vmatprep.mubr.msk.bf16.mxu1 %vm2918_vm9, %v2916_v0  ;;  %2611 = vmatprep.mubr.msk.bf16.mxu0 %vm2918_vm9, %v2916_v0 }
 0x317   : > { %v1764_v20 = vpop.permute.xlu1 %1763  ;;  %v1791_v56 = vpop.permute.xlu0 %1790 }
 0x318   : > { %v1836_v39 = vsel %vm771_vm5, %v3991_v42, %v1764_v20 }
 0x319   : > { %v1846_v62 = vsel %vm782_vm1, %v1836_v39, %v1791_v56 }
 0x31b   : > { %v1826_v31 = vpop.permute.xlu1 %1825 }
 0x31c   : > { %v1856_v22 = vsel %vm793_vm13, %v1846_v62, %v1826_v31 }
 0x31d   : > { %2584 = vmatmul.mubr.msk.bf16.gmra.mrb[32].mxu1 %vm1087_vm12, %v1856_v22  ;;  %2612 = vmatmul.mubr.msk.bf16.gmra.mrb[36].mxu0 %vm1087_vm12, %v1856_v22 }
 0x31e   : > { %2587 = vmatprep.mubr.msk.bf16.mxu1 %vm2918_vm9, %v2916_v0  ;;  %2615 = vmatprep.mubr.msk.bf16.mxu0 %vm2918_vm9, %v2916_v0 }
 0x31f   : > { %v1766_v47 = vpop.permute.xlu0 %1765  ;;  %v1793_v44 = vpop.permute.xlu1 %1792 }
 0x320   : > { %v1838_v42 = vsel %vm771_vm5, %v4005_v41, %v1766_v47 }
 0x321   : > { %v1848_v60 = vsel %vm782_vm1, %v1838_v42, %v1793_v44 }
 0x323   : > { %v1828_v28 = vpop.permute.xlu0 %1827 }
 0x324   : > { %v1858_v23 = vsel %vm793_vm13, %v1848_v60, %v1828_v28 }
 0x325   : > { %2588 = vmatmul.mubr.msk.bf16.gmra.mrb[36].mxu1 %vm1087_vm12, %v1858_v23  ;;  %2616 = vmatmul.mubr.msk.bf16.gmra.mrb[40].mxu0 %vm1087_vm12, %v1858_v23 }
 0x326   : > { %2591 = vmatprep.mubr.msk.bf16.mxu1 %vm2918_vm9, %v2916_v0  ;;  %2619 = vmatprep.mubr.msk.bf16.mxu0 %vm2918_vm9, %v2916_v0 }
 0x327   : > { %v1768_v29 = vpop.permute.xlu1 %1767  ;;  %v1795_v36 = vpop.permute.xlu0 %1794 }
 0x328   : > { %v1840_v41 = vsel %vm771_vm5, %v4020_v12, %v1768_v29  ;;  %v4128_v29 = vld [vmem:[%s4237_s10] ss:$0 sm:$0xff] }
 0x329   : > { %v1850_v2 = vsel %vm782_vm1, %v1840_v41, %v1795_v36 }
 0x32b   : > { %v1830_v27 = vpop.permute.xlu1 %1829  ;;  %v1770_v61 = vpop.permute.xlu0 %1769 }
 0x32c   : > { %v1860_v6 = vsel %vm793_vm13, %v1850_v2, %v1830_v27  ;;  %v1842_v12 = vsel %vm771_vm5, %v4035_v30, %v1770_v61 }
 0x32d   : > { %2592 = vmatmul.mubr.msk.bf16.gmra.mrb[40].mxu1 %vm1087_vm12, %v1860_v6  ;;  %2620 = vmatmul.mubr.msk.bf16.gmra.mrb[44].mxu0 %vm1087_vm12, %v1860_v6 }
 0x32e   : > { %2595 = vmatprep.mubr.msk.bf16.mxu1 %vm2918_vm9, %v2916_v0  ;;  %2623 = vmatprep.mubr.msk.bf16.mxu0 %vm2918_vm9, %v2916_v0  ;;  %vm4268_vm9 = vmmov %vm4266_vm3 }
 0x32f   : > { %v1797_v32 = vpop.permute.xlu1 %1796  ;;  %v1832_v11 = vpop.permute.xlu0 %1831 }
 0x330   : > { %v1852_v33 = vsel %vm782_vm1, %v1842_v12, %v1797_v32  ;;  %vm4271_vm1 = vmmov %vm4266_vm3 }
 0x331   : > { %v1862_v10 = vsel %vm793_vm13, %v1852_v33, %v1832_v11  ;;  %vm4270_vm13 = vmmov %vm4266_vm3 }
 0x332   : > { %vm4272_vm5 = vmmov %vm4271_vm1 }
 0x333   : > { %vm4273_vm6 = vmmov %vm4271_vm1 }
 0x334   : > { %vm4274_vm7 = vmmov %vm4271_vm1 }
 0x335   : > { %2596 = vmatmul.mubr.msk.bf16.gmra.mrb[44].mxu1 %vm1087_vm12, %v1862_v10  ;;  %2624 = vmatmul.mubr.msk.bf16.gmra.mrb[48].mxu0 %vm1087_vm12, %v1862_v10  ;;  %vm4269_vm12 = vmmov %vm4266_vm3 }
 0x336   : > { %vm4275_vm8 = vmmov %vm4271_vm1 }
 0x337   : > { %vm4276_vm10 = vmmov %vm4271_vm1 }
 0x338   : > { %vm4277_vm11 = vmmov %vm4271_vm1 }
 0x339   : > { %vm4278_vm14 = vmmov %vm4271_vm1 }
 0x33a   : > { %vm4279_vm15 = vmmov %vm4271_vm1 }
 0x33b   : > { %vm4280_vm2 = vmmov %vm4271_vm1 }
 0x33c   : > { %vm4281_vm3 = vmmov %vm4271_vm1 }
 0x33d   : > { %vm4282_vm4 = vmmov %vm4271_vm1 }
 0x3e8   : > { %v1946_v45 = vpop.f32.mrb[28].mxu1  ;;  %v2058_v0 = vpop.f32.mrb[32].mxu0 }
 0x3e9   : > { %v2059_v57 = vadd.f32 %v4107_v37, %v2058_v0  ;;  %v2581_v1 = vpop.f32.mrb[29].mxu1  ;;  %v2609_v30 = vpop.f32.mrb[33].mxu0  ;;  %v1947_v10 = vadd.f32 %v4128_v29, %v1946_v45  ;;  %v2218_v45 = vrot.slane %v3797_v50, 5 }
 0x3ea   : > { %v4110_v17 = vpop.f32.mrb[30].mxu1  ;;  %v2061_v52 = vpop.f32.mrb[34].mxu0 }
 0x3eb   : > { %v2448_v59 = vmul.f32 -1.442695, %v2059_v57  ;;  %v2062_v63 = vadd.f32 %v4107_v37, %v2061_v52  ;;  %v2582_v34 = vpop.f32.mrb[31].mxu1  ;;  %v2610_v40 = vpop.f32.mrb[35].mxu0 }
 0x3ed   : > { %2857 = vpow2.f32 %v2448_v59  ;;  %v2449_v13 = vmul.f32 -1.442695, %v2062_v63  ;;  %v1950_v63 = vadd.f32 %v4128_v29, %v4110_v17 }
 0x3ef   : > { %2859 = vpow2.f32 %v2449_v13 }
 0x3f0   : > { %v4113_v19 = vpop.f32.mrb[32].mxu1  ;;  %v2066_v14 = vpop.f32.mrb[36].mxu0 }
 0x3f1   : > { %v2067_v25 = vadd.f32 %v4107_v37, %v2066_v14  ;;  %v2585_v8 = vpop.f32.mrb[33].mxu1  ;;  %v2613_v3 = vpop.f32.mrb[37].mxu0 }
 0x3f2   : > { %v4116_v58 = vpop.f32.mrb[34].mxu1  ;;  %v2069_v48 = vpop.f32.mrb[38].mxu0  ;;  %v2219_v8 = vrot.slane %v3805_v18, 5 }
 0x3f3   : > { %v2450_v7 = vmul.f32 -1.442695, %v2067_v25  ;;  %v2070_v9 = vadd.f32 %v4107_v37, %v2069_v48  ;;  %v2586_v21 = vpop.f32.mrb[35].mxu1  ;;  %v2614_v54 = vpop.f32.mrb[39].mxu0 }
 0x3f4   : > { %v2897_v21 = vld [vmem:[%s3004_s26 + $0x8] sm:$0xff] }
 0x3f5   : > { %2861 = vpow2.f32 %v2450_v7  ;;  %v2451_v38 = vmul.f32 -1.442695, %v2070_v9 }
 0x3f7   : > { %v2858_v16 = vpop.eup %2857  ;;  %2863 = vpow2.f32 %v2451_v38 }
 0x3f8   : > { %v2127_v24 = vadd.f32 1.0, %v2858_v16  ;;  %v4119_v51 = vpop.f32.mrb[36].mxu1  ;;  %v2074_v35 = vpop.f32.mrb[40].mxu0 }
 0x3f9   : > { %v2860_v15 = vpop.eup %2859  ;;  %v2075_v20 = vadd.f32 %v4107_v37, %v2074_v35  ;;  %v2589_v39 = vpop.f32.mrb[37].mxu1 }
 0x3fa   : > { %v2617_v56 = vpop.f32.mrb[41].mxu0  ;;  %2865 = vrcp.f32 %v2127_v24  ;;  %v2128_v62 = vadd.f32 1.0, %v2860_v15  ;;  %v4122_v31 = vpop.f32.mrb[38].mxu1  ;;  %v1955_v39 = vadd.f32 %v4128_v29, %v4113_v19 }
 0x3fb   : > { %v2077_v22 = vpop.f32.mrb[42].mxu0  ;;  %v2452_v47 = vmul.f32 -1.442695, %v2075_v20  ;;  %v2590_v42 = vpop.f32.mrb[39].mxu1 }
 0x3fc   : > { %v2078_v44 = vadd.f32 %v4107_v37, %v2077_v22  ;;  %v2618_v60 = vpop.f32.mrb[43].mxu0  ;;  %2867 = vrcp.f32 %v2128_v62  ;;  %v2898_v42 = vld [vmem:[%s3004_s26 + $0x10] sm:$0xff] }
 0x3fd   : > { %2869 = vpow2.f32 %v2452_v47 }
 0x3fe   : > { %v2453_v28 = vmul.f32 -1.442695, %v2078_v44  ;;  %v2220_v44 = vsel %vm4269_vm12, %v2218_v45, %v2219_v8  ;;  %vm4284_vm12 = vmmov %vm4271_vm1 }
 0x3ff   : > { %v2862_v23 = vpop.eup %2861 }
 0x400   : > { %2871 = vpow2.f32 %v2453_v28  ;;  %v2129_v36 = vadd.f32 1.0, %v2862_v23  ;;  %v4130_v41 = vpop.f32.mrb[40].mxu1  ;;  %v2082_v2 = vpop.f32.mrb[44].mxu0 }
 0x401   : > { %v2864_v27 = vpop.eup %2863  ;;  %v2083_v61 = vadd.f32 %v4107_v37, %v2082_v2  ;;  %v2593_v6 = vpop.f32.mrb[41].mxu1  ;;  %v1958_v2 = vadd.f32 %v4128_v29, %v4116_v58  ;;  %v2223_v58 = vrot.slane %v3823_v46, 5 }
 0x402   : > { %v2621_v32 = vpop.f32.mrb[45].mxu0  ;;  %2873 = vrcp.f32 %v2129_v36  ;;  %v2130_v12 = vadd.f32 1.0, %v2864_v27  ;;  %v4133_v33 = vpop.f32.mrb[42].mxu1 }
 0x403   : > { %v2085_v11 = vpop.f32.mrb[46].mxu0  ;;  %v2454_v0 = vmul.f32 -1.442695, %v2083_v61  ;;  %v2594_v1 = vpop.f32.mrb[43].mxu1  ;;  %v2221_v32 = vrot.slane %v3809_v55, 5 }
 0x404   : > { %v2086_v57 = vadd.f32 %v4107_v37, %v2085_v11  ;;  %v2622_v30 = vpop.f32.mrb[47].mxu0  ;;  %v2866_v52 = vpop.eup %2865  ;;  %2875 = vrcp.f32 %v2130_v12  ;;  %v2899_v1 = vld [vmem:[%s3004_s26 + $0x18] sm:$0xff] }
 0x405   : > { %v2157_v59 = vmul.f32 %v2866_v52, %v1947_v10  ;;  %2877 = vpow2.f32 %v2454_v0  ;;  %v2222_v55 = vsel %vm4272_vm5, %v2219_v8, %v2221_v32  ;;  %vm4286_vm5 = vmmov %vm4271_vm1 }
 0x406   : > { %v2455_v34 = vmul.f32 -1.442695, %v2086_v57  ;;  %v2868_v40 = vpop.eup %2867 }
 0x407   : > { %v2870_v13 = vpop.eup %2869  ;;  %v2177_v14 = vrot.slane %v2157_v59, 5  ;;  %v2158_v25 = vmul.f32 %v2868_v40, %v1950_v63  ;;  %v1963_v63 = vadd.f32 %v4128_v29, %v4119_v51  ;;  %v2225_v51 = vrot.slane %v3834_v4, 5 }
 0x408   : > { %2879 = vpow2.f32 %v2455_v34  ;;  %v2131_v3 = vadd.f32 1.0, %v2870_v13  ;;  %v4141_v48 = vpop.f32.mrb[44].mxu1  ;;  %v2090_v7 = vpop.f32.mrb[48].mxu0  ;;  %v2900_v13 = vld [vmem:[%s3004_s26 + $0x20] sm:$0xff] }
 0x409   : > { %v2207_v54 = vadd.f32 %v2897_v21, %v2177_v14  ;;  %v2178_v38 = vrot.slane %v2158_v25, 5  ;;  %v2091_v17 = vadd.f32 %v4107_v37, %v2090_v7  ;;  %v2597_v16 = vpop.f32.mrb[45].mxu1  ;;  %v2625_v24 = vpop.f32.mrb[49].mxu0 }
 0x40a   : > { %v2872_v9 = vpop.eup %2871  ;;  %2881 = vrcp.f32 %v2131_v3  ;;  %v4145_v15 = vpop.f32.mrb[46].mxu1 }
 0x40b   : > { %v2132_v35 = vadd.f32 1.0, %v2872_v9  ;;  %v2093_v50 = vpop.f32.mrb[50].mxu0  ;;  %v2248_v20 = vmul.f32 %v2218_v45, %v2207_v54  ;;  %v2179_v18 = vsel %vm4268_vm9, %v2177_v14, %v2178_v38  ;;  %v2456_v56 = vmul.f32 -1.442695, %v2091_v17  ;;  %v2598_v62 = vpop.f32.mrb[47].mxu1  ;;  %vm4283_vm9 = vmmov %vm4271_vm1 }
 0x40c   : > { %v2626_v22 = vpop.f32.mrb[51].mxu0  ;;  %v2874_v47 = vpop.eup %2873  ;;  %v2208_v60 = vadd.f32 %v2898_v42, %v2179_v18  ;;  %v2094_v28 = vadd.f32 %v4107_v37, %v2093_v50  ;;  %v2224_v14 = vsel %vm4274_vm7, %v2221_v32, %v2223_v58  ;;  %v1966_v45 = vadd.f32 %v4128_v29, %v4122_v31  ;;  %v2901_v31 = vld [vmem:[%s3004_s26 + $0x28] sm:$0xff] }
 0x40d   : > { %2883 = vrcp.f32 %v2132_v35  ;;  %v2259_v23 = vsel %vm4270_vm13, 0.0, %v2248_v20  ;;  %v2159_v36 = vmul.f32 %v2874_v47, %v1955_v39  ;;  %v2226_v50 = vsel %vm4276_vm10, %v2223_v58, %v2225_v51  ;;  %vm4285_vm13 = vmmov %vm4271_vm1 }
 0x40e   : > { %2885 = vpow2.f32 %v2456_v56  ;;  %v2876_v19 = vpop.eup %2875  ;;  %2262 = vst.msk [vmem:[%s3010_s29 + $0x8] sm:$0xff] %vm633_vm0, %v2259_v23  ;;  %v2249_v27 = vmul.f32 %v2220_v44, %v2208_v60  ;;  %v2457_v61 = vmul.f32 -1.442695, %v2094_v28  ;;  %v1971_v20 = vadd.f32 %v4128_v29, %v4130_v41 }
 0x40f   : > { %v2878_v6 = vpop.eup %2877  ;;  %v2180_v12 = vrot.slane %v2159_v36, 5  ;;  %v2160_v11 = vmul.f32 %v2876_v19, %v1958_v2  ;;  %v1974_v44 = vadd.f32 %v4128_v29, %v4133_v33  ;;  %v2229_v41 = vrot.slane %v3853_v26, 5 }
 0x410   : > { %2263 = vst.msk [vmem:[%s3010_s29 + $0x10] sm:$0xff] %vm633_vm0, %v2249_v27  ;;  %v2133_v37 = vadd.f32 1.0, %v2878_v6  ;;  %2887 = vpow2.f32 %v2457_v61  ;;  %v2231_v36 = vrot.slane %v3859_v43, 5  ;;  %v2903_v27 = vld [vmem:[%s3004_s26 + $0x38] sm:$0xff]  ;;  %v1979_v26 = vadd.f32 %v4128_v29, %v4141_v48 }
 0x411   : > { %v2181_v0 = vsel %vm4271_vm1, %v2178_v38, %v2180_v12  ;;  %v2182_v57 = vrot.slane %v2160_v11, 5  ;;  %v2227_v38 = vrot.slane %v3839_v53, 5  ;;  %v2902_v53 = vld [vmem:[%s3004_s26 + $0x30] sm:$0xff]  ;;  %v2904_v11 = vld [vmem:[%s3004_s26 + $0x40] sm:$0xff] }
 0x412   : > { %v2880_v10 = vpop.eup %2879  ;;  %v2209_v30 = vadd.f32 %v2899_v1, %v2181_v0  ;;  %2889 = vrcp.f32 %v2133_v37  ;;  %v2232_v43 = vsel %vm4282_vm4, %v2229_v41, %v2231_v36  ;;  %v1982_v0 = vadd.f32 %v4128_v29, %v4145_v15 }
 0x413   : > { %v2134_v52 = vadd.f32 1.0, %v2880_v10  ;;  %v2183_v59 = vsel %vm4273_vm6, %v2180_v12, %v2182_v57  ;;  %v2228_v22 = vsel %vm4278_vm14, %v2225_v51, %v2227_v38  ;;  %v2230_v61 = vsel %vm4280_vm2, %v2227_v38, %v2229_v41 }
 0x414   : > { %v2882_v34 = vpop.eup %2881  ;;  %v2250_v40 = vmul.f32 %v2222_v55, %v2209_v30  ;;  %v2210_v46 = vadd.f32 %v2900_v13, %v2183_v59  ;;  %v2233_v1 = vrot.slane %v3886_v5, 5  ;;  %v2235_v55 = vrot.slane %v3896_v49, 5  ;;  %v2905_v59 = vld [vmem:[%s3004_s26 + $0x48] sm:$0xff]  ;;  %v2906_v5 = vld [vmem:[%s3004_s26 + $0x58] sm:$0xff] }
 0x415   : > { %2891 = vrcp.f32 %v2134_v52  ;;  %v2161_v25 = vmul.f32 %v2882_v34, %v1963_v63 }
 0x416   : > { %2264 = vst.msk [vmem:[%s3010_s29 + $0x18] sm:$0xff] %vm633_vm0, %v2250_v40  ;;  %v2251_v8 = vmul.f32 %v2224_v14, %v2210_v46  ;;  %v2234_v29 = vsel %vm4284_vm12, %v2231_v36, %v2233_v1  ;;  %v2907_v46 = vld [vmem:[%s3004_s26 + $0x50] sm:$0xff] }
 0x417   : > { %v2884_v3 = vpop.eup %2883  ;;  %v2184_v9 = vrot.slane %v2161_v25, 5  ;;  %v2236_v25 = vsel %vm4271_vm1, %v2233_v1, %v2235_v55 }
 0x418   : > { %v2886_v7 = vpop.eup %2885  ;;  %v2162_v21 = vmul.f32 %v2884_v3, %v1966_v45  ;;  %2265 = vst.msk [vmem:[%s3010_s29 + $0x20] sm:$0xff] %vm633_vm0, %v2251_v8 }
 0x419   : > { %v2135_v54 = vadd.f32 1.0, %v2886_v7  ;;  %v2185_v17 = vsel %vm4275_vm8, %v2182_v57, %v2184_v9 }
 0x41a   : > { %v2186_v16 = vrot.slane %v2162_v21, 5  ;;  %v2888_v24 = vpop.eup %2887  ;;  %v2211_v35 = vadd.f32 %v2901_v31, %v2185_v17 }
 0x41b   : > { %2893 = vrcp.f32 %v2135_v54  ;;  %v2136_v18 = vadd.f32 1.0, %v2888_v24 }
 0x41c   : > { %v2187_v4 = vsel %vm4277_vm11, %v2184_v9, %v2186_v16  ;;  %v2890_v39 = vpop.eup %2889  ;;  %v2252_v56 = vmul.f32 %v2226_v50, %v2211_v35 }
 0x41d   : > { %v2212_v62 = vadd.f32 %v2902_v53, %v2187_v4  ;;  %v2163_v47 = vmul.f32 %v2890_v39, %v1971_v20  ;;  %2895 = vrcp.f32 %v2136_v18 }
 0x41e   : > { %2266 = vst.msk [vmem:[%s3010_s29 + $0x28] sm:$0xff] %vm633_vm0, %v2252_v56 }
 0x41f   : > { %v2892_v42 = vpop.eup %2891  ;;  %v2253_v60 = vmul.f32 %v2228_v22, %v2212_v62  ;;  %v2188_v28 = vrot.slane %v2163_v47, 5 }
 0x420   : > { %v2164_v23 = vmul.f32 %v2892_v42, %v1974_v44 }
 0x421   : > { %2267 = vst.msk [vmem:[%s3010_s29 + $0x30] sm:$0xff] %vm633_vm0, %v2253_v60  ;;  %v2189_v2 = vsel %vm4279_vm15, %v2186_v16, %v2188_v28 }
 0x422   : > { %v2190_v19 = vrot.slane %v2164_v23, 5  ;;  %v2213_v33 = vadd.f32 %v2903_v27, %v2189_v2 }
 0x424   : > { %v2191_v6 = vsel %vm4281_vm3, %v2188_v28, %v2190_v19  ;;  %v2254_v12 = vmul.f32 %v2230_v61, %v2213_v33 }
 0x425   : > { %v2894_v32 = vpop.eup %2893  ;;  %v2214_v37 = vadd.f32 %v2904_v11, %v2191_v6 }
 0x426   : > { %v2165_v10 = vmul.f32 %v2894_v32, %v1979_v26  ;;  %2268 = vst.msk [vmem:[%s3010_s29 + $0x38] sm:$0xff] %vm633_vm0, %v2254_v12 }
 0x427   : > { %v2255_v58 = vmul.f32 %v2232_v43, %v2214_v37  ;;  %v2896_v57 = vpop.eup %2895 }
 0x428   : > { %v2192_v48 = vrot.slane %v2165_v10, 5  ;;  %v2166_v30 = vmul.f32 %v2896_v57, %v1982_v0 }
 0x429   : > { %2269 = vst.msk [vmem:[%s3010_s29 + $0x40] sm:$0xff] %vm633_vm0, %v2255_v58 }
 0x42a   : > { %v2193_v52 = vsel %vm4283_vm9, %v2190_v19, %v2192_v48  ;;  %v2194_v34 = vrot.slane %v2166_v30, 5 }
 0x42b   : > { %v2215_v63 = vadd.f32 %v2905_v59, %v2193_v52 }
 0x42c   : > { %v2195_v40 = vsel %vm4285_vm13, %v2192_v48, %v2194_v34  ;;  %v2217_v13 = vadd.f32 %v2906_v5, %v2194_v34 }
 0x42d   : > { %v2256_v15 = vmul.f32 %v2234_v29, %v2215_v63  ;;  %v2216_v14 = vadd.f32 %v2907_v46, %v2195_v40 }
 0x42e   : > { %v2258_v45 = vmul.f32 %v2235_v55, %v2217_v13 }
 0x42f   : > { %2270 = vst.msk [vmem:[%s3010_s29 + $0x48] sm:$0xff] %vm633_vm0, %v2256_v15  ;;  %v2257_v49 = vmul.f32 %v2236_v25, %v2216_v14 }
 0x430   : > { %v2260_v3 = vsel %vm4286_vm5, %v2258_v45, 0.0 }
 0x431   : > { %2271 = vst.msk [vmem:[%s3010_s29 + $0x50] sm:$0xff] %vm633_vm0, %v2257_v49  ;;  %2272 = vst.msk [vmem:[%s3010_s29 + $0x58] sm:$0xff] %vm633_vm0, %v2260_v3 }
 0x432 PF: > { %s22_s21 = sadd.s32 1, %s2914_s21  }
 0x433   : > { %p19_p4 = scmp.ge.s32.totalorder %s22_s21, 4  }
 0x435   :  { %21 = sbr.rel (!%p19_p4) target bundleno = 1 (0x1), region = 104 }

</bundles_post_ra>
